<compile_context>
chip_gen: v5e
topology: v5e:2x2
jax: 0.10.0
libtpu: 0.0.40
codegen_flags: <defaults>
</compile_context>

<pallas_src>
import math
import functools

import jax
import jax.numpy as jnp
from jax.experimental import pallas as pl
from jax.experimental.pallas import tpu as pltpu


def _dropout_threshold_u32(dropout_p: float) -> int:
    # keep an element iff its uniform uint32 >= threshold  =>  P(keep) = 1 - p
    return min(int(round(float(dropout_p) * 2.0 ** 32)), 2 ** 32 - 1)


def _attn_dropout_kernel(q_ref, k_ref, v_ref, bits_ref, o_ref, *,
                         scale_factor, dropout_p, flatten_out):
    # blocks: q/k/v (BT, S, D), bits (BT, S, S), o (BT, S*D) or (BT, S, D)
    q = q_ref[...] * jnp.float32(scale_factor)   # fold score scale into Q
    k = k_ref[...]
    v = v_ref[...]

    # scores: (BT, S, S)  (module multiplies by sqrt(dim_head))
    s = jnp.einsum("bqd,bkd->bqk", q, k, preferred_element_type=jnp.float32)

    # numerically-stable softmax along the last axis
    s = s - jnp.max(s, axis=-1, keepdims=True)
    e = jnp.exp(s)
    p = e * pl.reciprocal(jnp.sum(e, axis=-1, keepdims=True), approx=True)

    if dropout_p > 0.0:
        # integer-threshold dropout mask; the 1/(1-p) rescale is applied after P@V
        thr = jnp.uint32(_dropout_threshold_u32(dropout_p))
        keep = bits_ref[...] >= thr
        p = jnp.where(keep, p, jnp.zeros_like(p))

    # P @ V on the MXU in bf16 with f32 accumulation
    out = jnp.einsum("bqk,bkd->bqd",
                     p.astype(jnp.bfloat16), v.astype(jnp.bfloat16),
                     preferred_element_type=jnp.float32)
    if dropout_p > 0.0:
        out = out * jnp.float32(1.0 / (1.0 - dropout_p))

    bt, S, D = out.shape
    if flatten_out:
        # lane-dense store: last dim S*D is a multiple of 128
        o_ref[...] = out.reshape(bt, S * D).astype(o_ref.dtype)
    else:
        o_ref[...] = out.astype(o_ref.dtype)


def _pick_bh_tile(BH, S, D, budget_bytes=8 * 1024 * 1024):
    """Largest BH tile whose per-step working set fits a conservative VMEM budget."""
    # rough per-head f32 footprint: q, k, v, out (S*D each) + bits + scores (S*S each)
    per_head = (4 * S * D + 3 * S * S) * 4
    cap = max(1, budget_bytes // max(per_head, 1))
    if BH <= cap:
        return BH                      # everything in a single grid step
    bt = 1
    for t in range(1, cap + 1):        # prefer sublane-aligned divisors of BH
        if BH % t == 0 and t % 8 == 0:
            bt = t
    if bt == 1:
        for t in range(1, cap + 1):    # fallback: any divisor (3-D output block)
            if BH % t == 0:
                bt = t
    return bt


def attention_dropout(query, key, value, dropout_p, dim_head, *, seed=0, bits=None):
    """query/key/value: (B, H, S, D) float32; mirrors the PyTorch Model forward."""
    B, H, S, D = query.shape
    BH = B * H
    scale_factor = math.sqrt(dim_head)   # module MULTIPLIES by sqrt(dim_head)

    q = query.reshape(BH, S, D)
    k = key.reshape(BH, S, D)
    v = value.reshape(BH, S, D)

    if bits is None:
        bits = jax.random.bits(jax.random.PRNGKey(seed), (BH, S, S), dtype=jnp.uint32)
    else:
        bits = bits.reshape(BH, S, S).astype(jnp.uint32)

    bt = _pick_bh_tile(BH, S, D)
    grid = (BH // bt,)
    flatten_out = (bt == BH) or (bt % 8 == 0)   # legality of (bt, S*D) block

    kernel = functools.partial(
        _attn_dropout_kernel,
        scale_factor=scale_factor,
        dropout_p=float(dropout_p),
        flatten_out=flatten_out,
    )

    qkv_spec = pl.BlockSpec((bt, S, D), lambda i: (i, 0, 0))
    bits_spec = pl.BlockSpec((bt, S, S), lambda i: (i, 0, 0))
    if flatten_out:
        out_spec = pl.BlockSpec((bt, S * D), lambda i: (i, 0))
        out_shape = jax.ShapeDtypeStruct((BH, S * D), jnp.float32)
    else:
        out_spec = pl.BlockSpec((bt, S, D), lambda i: (i, 0, 0))
        out_shape = jax.ShapeDtypeStruct((BH, S, D), jnp.float32)

    out = pl.pallas_call(
        kernel,
        out_shape=out_shape,
        grid_spec=pltpu.PrefetchScalarGridSpec(
            num_scalar_prefetch=0,
            grid=grid,
            in_specs=[qkv_spec, qkv_spec, qkv_spec, bits_spec],
            out_specs=out_spec,
        ),
        compiler_params=pltpu.CompilerParams(
            # heads are independent (no carried accumulator): lets v7x's two
            # TensorCores split the BH axis; neutral on v5e/v6e.
            dimension_semantics=("parallel",),
        ),
    )(q, k, v, bits)

    return out.reshape(B, H, S, D)


def _reference(query, key, value, dropout_p, dim_head, bits):
    """Pure-JAX f32 reference of the PyTorch module (same dropout mask)."""
    B, H, S, D = query.shape
    scale = math.sqrt(dim_head)
    s = jnp.einsum("bhqd,bhkd->bhqk", query, key) * scale
    p = jax.nn.softmax(s, axis=-1)
    if dropout_p > 0.0:
        thr = jnp.uint32(_dropout_threshold_u32(dropout_p))
        keep = bits.reshape(B, H, S, S) >= thr
        p = jnp.where(keep, p, 0.0) / (1.0 - dropout_p)
    return jnp.einsum("bhqk,bhkd->bhqd", p, value)


if __name__ == "__main__":
    # Module spec: tensors of shape (16, dim_head, 8, 64); use dim_head = 4.
    B, H, S, D = 16, 4, 8, 64
    dim_head = H            # module uses sqrt(dim_head) with dim_head = head count
    dropout_p = 0.3

    k0, k1, k2, k3 = jax.random.split(jax.random.PRNGKey(0), 4)
    query = jax.random.normal(k0, (B, H, S, D), dtype=jnp.float32)
    key = jax.random.normal(k1, (B, H, S, D), dtype=jnp.float32)
    value = jax.random.normal(k2, (B, H, S, D), dtype=jnp.float32)
    bits = jax.random.bits(k3, (B * H, S, S), dtype=jnp.uint32)

    out = attention_dropout(query, key, value, dropout_p, dim_head, bits=bits)
    out = jax.block_until_ready(out)

    assert out.shape == (B, H, S, D)
    assert bool(jnp.all(jnp.isfinite(out)))

    # loose tolerance: kernel uses bf16 P@V and approx reciprocal; reference is f32
    ref = _reference(query, key, value, dropout_p, dim_head, bits)
    max_err = float(jnp.max(jnp.abs(out - ref)))
    assert bool(jnp.allclose(out, ref, rtol=0.1, atol=0.1)), max_err

    print("KERNEL_OK")
</pallas_src>

<mosaic_0001>
module attributes {stable_mosaic.version = 11 : i64} {
  func.func @_attn_dropout_kernel(%arg0: i32, %arg1: memref<64x8x64xf32, #tpu.memory_space<vmem>>, %arg2: memref<64x8x64xf32, #tpu.memory_space<vmem>>, %arg3: memref<64x8x64xf32, #tpu.memory_space<vmem>>, %arg4: memref<64x8x8xi32, #tpu.memory_space<vmem>>, %arg5: memref<64x512xf32, #tpu.memory_space<vmem>>) attributes {dimension_semantics = [#tpu.dimension_semantics<parallel>], iteration_bounds = array<i64: 1>, scalar_prefetch = 0 : i64, scratch_operands = 0 : i64, tpu.core_type = #tpu.core_type<tc>, window_params = [{transform_indices = @transform_0, window_bounds = array<i64: 64, 8, 64>}, {transform_indices = @transform_1, window_bounds = array<i64: 64, 8, 64>}, {transform_indices = @transform_2, window_bounds = array<i64: 64, 8, 64>}, {transform_indices = @transform_3, window_bounds = array<i64: 64, 8, 8>}, {transform_indices = @transform_4, window_bounds = array<i64: 64, 512>}]} {
    %c0 = arith.constant 0 : index
    %c0_0 = arith.constant 0 : index
    %c0_1 = arith.constant 0 : index
    %0 = vector.load %arg1[%c0, %c0_0, %c0_1] : memref<64x8x64xf32, #tpu.memory_space<vmem>>, vector<64x8x64xf32>
    %cst = arith.constant 2.000000e+00 : f32
    %1 = vector.broadcast %cst : f32 to vector<64x8x64xf32>
    %2 = arith.mulf %0, %1 : vector<64x8x64xf32>
    %c0_2 = arith.constant 0 : index
    %c0_3 = arith.constant 0 : index
    %c0_4 = arith.constant 0 : index
    %3 = vector.load %arg2[%c0_2, %c0_3, %c0_4] : memref<64x8x64xf32, #tpu.memory_space<vmem>>, vector<64x8x64xf32>
    %c0_5 = arith.constant 0 : index
    %c0_6 = arith.constant 0 : index
    %c0_7 = arith.constant 0 : index
    %4 = vector.load %arg3[%c0_5, %c0_6, %c0_7] : memref<64x8x64xf32, #tpu.memory_space<vmem>>, vector<64x8x64xf32>
    "tpu.trace_start"() <{level = 10 : i32, message = "bqd,bkd->bqk"}> : () -> ()
    %cst_8 = arith.constant dense<0.000000e+00> : vector<64x8x8xf32>
    %5 = tpu.matmul %2, %3, %cst_8 {dimension_numbers = #tpu.dot_dimension_numbers<[2], [2], [1], [1], [0, 0, 0, 1, 1, 1], [0], [0]>} : vector<64x8x64xf32>, vector<64x8x64xf32>, vector<64x8x8xf32> -> vector<64x8x8xf32>
    "tpu.trace_stop"() : () -> ()
    %cst_9 = arith.constant dense<0xFF800000> : vector<64x8xf32>
    %6 = vector.multi_reduction <maximumf>, %5, %cst_9 [2] : vector<64x8x8xf32> to vector<64x8xf32>
    %7 = vector.shape_cast %6 : vector<64x8xf32> to vector<64x8x1xf32>
    %8 = vector.broadcast %7 : vector<64x8x1xf32> to vector<64x8x8xf32>
    %9 = arith.subf %5, %8 : vector<64x8x8xf32>
    %10 = math.exp %9 : vector<64x8x8xf32>
    %cst_10 = arith.constant dense<0.000000e+00> : vector<64x8xf32>
    %11 = vector.multi_reduction <add>, %10, %cst_10 [2] : vector<64x8x8xf32> to vector<64x8xf32>
    %12 = vector.shape_cast %11 : vector<64x8xf32> to vector<64x8x1xf32>
    %13 = tpu.reciprocal %12 {approx = true} : vector<64x8x1xf32> -> vector<64x8x1xf32>
    %14 = vector.broadcast %13 : vector<64x8x1xf32> to vector<64x8x8xf32>
    %15 = arith.mulf %10, %14 : vector<64x8x8xf32>
    %c0_11 = arith.constant 0 : index
    %c0_12 = arith.constant 0 : index
    %c0_13 = arith.constant 0 : index
    %16 = vector.load %arg4[%c0_11, %c0_12, %c0_13] : memref<64x8x8xi32, #tpu.memory_space<vmem>>, vector<64x8x8xi32>
    %c1288490189_i32 = arith.constant 1288490189 : i32
    %17 = vector.broadcast %c1288490189_i32 : i32 to vector<64x8x8xi32>
    %18 = arith.cmpi uge, %16, %17 : vector<64x8x8xi32>
    %cst_14 = arith.constant 0.000000e+00 : f32
    %19 = vector.broadcast %cst_14 : f32 to vector<64x8x8xf32>
    %20 = arith.select %18, %15, %19 : vector<64x8x8xi1>, vector<64x8x8xf32>
    %21 = arith.truncf %20 : vector<64x8x8xf32> to vector<64x8x8xbf16>
    %22 = arith.truncf %4 : vector<64x8x64xf32> to vector<64x8x64xbf16>
    "tpu.trace_start"() <{level = 10 : i32, message = "bqk,bkd->bqd"}> : () -> ()
    %cst_15 = arith.constant dense<0.000000e+00> : vector<64x8x64xf32>
    %23 = tpu.matmul %21, %22, %cst_15 {dimension_numbers = #tpu.dot_dimension_numbers<[2], [1], [1], [2], [0, 0, 0, 1, 1, 2], [0], [0]>} : vector<64x8x8xbf16>, vector<64x8x64xbf16>, vector<64x8x64xf32> -> vector<64x8x64xf32>
    "tpu.trace_stop"() : () -> ()
    %cst_16 = arith.constant 1.42857146 : f32
    %24 = vector.broadcast %cst_16 : f32 to vector<64x8x64xf32>
    %25 = arith.mulf %23, %24 : vector<64x8x64xf32>
    %26 = vector.shape_cast %25 : vector<64x8x64xf32> to vector<64x512xf32>
    %c0_17 = arith.constant 0 : index
    %c0_18 = arith.constant 0 : index
    %27 = vector.load %arg5[%c0_17, %c0_18] : memref<64x512xf32, #tpu.memory_space<vmem>>, vector<64x512xf32>
    tpu.vector_store %arg5[%c0_17, %c0_18], %26 {strides = array<i32>} : memref<64x512xf32, #tpu.memory_space<vmem>>, vector<64x512xf32>,
    return
  }
  func.func @transform_0(%arg0: i32) -> (i32, i32, i32) {
    %c0_i32 = arith.constant 0 : i32
    %c0_i32_0 = arith.constant 0 : i32
    %c0_i32_1 = arith.constant 0 : i32
    return %arg0, %c0_i32, %c0_i32_0 : i32, i32, i32
  }
  func.func @transform_1(%arg0: i32) -> (i32, i32, i32) {
    %c0_i32 = arith.constant 0 : i32
    %c0_i32_0 = arith.constant 0 : i32
    %c0_i32_1 = arith.constant 0 : i32
    return %arg0, %c0_i32, %c0_i32_0 : i32, i32, i32
  }
  func.func @transform_2(%arg0: i32) -> (i32, i32, i32) {
    %c0_i32 = arith.constant 0 : i32
    %c0_i32_0 = arith.constant 0 : i32
    %c0_i32_1 = arith.constant 0 : i32
    return %arg0, %c0_i32, %c0_i32_0 : i32, i32, i32
  }
  func.func @transform_3(%arg0: i32) -> (i32, i32, i32) {
    %c0_i32 = arith.constant 0 : i32
    %c0_i32_0 = arith.constant 0 : i32
    %c0_i32_1 = arith.constant 0 : i32
    return %arg0, %c0_i32, %c0_i32_0 : i32, i32, i32
  }
  func.func @transform_4(%arg0: i32) -> (i32, i32) {
    %c0_i32 = arith.constant 0 : i32
    %c0_i32_0 = arith.constant 0 : i32
    return %arg0, %c0_i32 : i32, i32
  }
}

</mosaic_0001>

<bundles_post_ra>
// kernel: tpu_custom_call.1
= control target key start
LH: loop header
LB: loop body
LE: loop exit
PB: predicated region body
PF: predicated region fallthrough
CT: control target
= control target key end

     0   :  { %9 = vsyncpa [#allocation3], 0  ;;  %s8322_s0 = inlined_call_operand.vmem [shape: f32[64,8,64], index: 0, kind: input, shape index: {}]   ;;  %s8323_s1 = inlined_call_operand.hbm [shape: f32[64,8,64], index: 1, kind: input, shape index: {}]   ;;  %s8324_s2 = inlined_call_operand.hbm [shape: f32[64,8,64], index: 2, kind: input, shape index: {}]   ;;  %s8325_s3 = inlined_call_operand.vmem [shape: u32[64,8,8], index: 3, kind: input, shape index: {}]   ;;  %s8326_s4 = inlined_call_operand.hbm [shape: f32[64,512], index: 4, kind: output, shape index: {}]  }
   0x1   :  { %10 = vsyncpa [#allocation6], 0 }
   0x2   :  { %11 = vsyncpa [#allocation4], 0  ;;  %s18_s17 = sshll.u32 %s8323_s1, 4  ;;  %s6115_s18 = smov [#allocation2]   ;;  %s19_s17 = int_to_ptr.hbm [resolvable:$true] %s18_s17 }
   0x3   :  { %s20_s19 = sshll.u32 %s6115_s18, 4  ;;  %s31_s22 = sshll.u32 %s8324_s2, 4  ;;  %s21_s19 = int_to_ptr.vmem [resolvable:$true] %s20_s19  ;;  %s32_s22 = int_to_ptr.hbm [resolvable:$true] %s31_s22 }
   0x4   :  { %s6116_s23 = smov 128   ;;  %s6117_s24 = smov 8  }
   0x5   :  { %26 = dma.hbm_to_vmem [thread:$0]  %s19_s17, 8192, %s21_s19, [#allocation3], %s6116_s23, %s6116_s23, %s6117_s24  }
   0x6   :  { %s6118_s25 = smov [#allocation5]  }
   0x7   :  { %s33_s26 = sshll.u32 %s6118_s25, 4  ;;  %s34_s26 = int_to_ptr.vmem [resolvable:$true] %s33_s26 }
   0x8   :  { %39 = dma.hbm_to_vmem [thread:$0]  %s32_s22, 8192, %s34_s26, [#allocation6], %s6116_s23, %s6116_s23, %s6117_s24  }
   0x9   :  { %6109 = dma.done.wait [#allocation3], 8192  }
   0xa   :  { %6110 = vsyncadd [#allocation3], 4294959104 }
   0xb   :  { %6111 = dma.done.wait [#allocation6], 8192  }
   0xc   :  { %6112 = vsyncadd [#allocation6], 4294959104  ;;  %vm307_vm0 = vcmask 523264   ;;  %v179_v0 = vld [vmem:[#allocation2] sm:$0xff]  ;;  %v181_v1 = vld [vmem:[#allocation2 + $0x10] sm:$0xff]  ;;  %vm1972_vm1 = vcmask 64512  }
   0xd   :  { %v51_v2 = vld [vmem:[%s8322_s0] sm:$0xff]  ;;  %5515 = vmatpush.xpose.msk.msra.mxu0 %vm307_vm0, %v179_v0  ;;  %5519 = vmatpush.xpose.msk.msra.mxu2 %vm307_vm0, %v181_v1  ;;  %v53_v4 = vld [vmem:[%s8322_s0 + $0x10] sm:$0xff]  ;;  %v180_v5 = vld [vmem:[#allocation2 + $0x8] sm:$0xff]  ;;  %vm3128_vm2 = vcmask 1043456   ;;  %s6121_s7 = smov 64   ;;  %s5501_s28 = sshll.u32 %s8326_s4, 4  ;;  %s5502_s28 = int_to_ptr.hbm [resolvable:$true] %s5501_s28 }
   0xe   :  { %v115_v3 = vmul.f32 2.0, %v51_v2  ;;  %v182_v6 = vld [vmem:[#allocation2 + $0x18] sm:$0xff]  ;;  %v117_v7 = vmul.f32 2.0, %v53_v4  ;;  %5517 = vmatpush.xpose.msk.msra.mxu1 %vm307_vm0, %v180_v5  ;;  %v185_v8 = vld [vmem:[#allocation2 + $0x30] sm:$0xff]  ;;  %v52_v9 = vld [vmem:[%s8322_s0 + $0x8] sm:$0xff]  ;;  %s6123_s29 = smov 512  }
   0xf   :  { %5521 = vmatpush.xpose.msk.msra.mxu3 %vm307_vm0, %v182_v6  ;;  %v54_v10 = vld [vmem:[%s8322_s0 + $0x18] sm:$0xff]  ;;  %v116_v11 = vmul.f32 2.0, %v52_v9  ;;  %v183_v13 = vld [vmem:[#allocation2 + $0x20] sm:$0xff]  ;;  %v184_v14 = vld [vmem:[#allocation2 + $0x28] sm:$0xff]  ;;  %s6124_s30 = smov 32  }
  0x10   :  { %v118_v12 = vmul.f32 2.0, %v54_v10  ;;  %5516 = vmatmul.msk.f32.vlgmr.msra.gmra.mxu0 %vm307_vm0, %v115_v3  ;;  %5520 = vmatmul.msk.f32.vlgmr.msra.gmra.mxu2 %vm307_vm0, %v117_v7  ;;  %v57_v15 = vld [vmem:[%s8322_s0 + $0x30] sm:$0xff]  ;;  %v186_v16 = vld [vmem:[#allocation2 + $0x38] sm:$0xff]  ;;  %v55_v17 = vld [vmem:[%s8322_s0 + $0x20] sm:$0xff] }
  0x11   :  { %5527 = vmatpush.xpose.msk.msrb.mxu2 %vm307_vm0, %v185_v8  ;;  %5518 = vmatmul.msk.f32.vlgmr.msra.gmra.mxu1 %vm307_vm0, %v116_v11  ;;  %v187_v18 = vld [vmem:[#allocation2 + $0x40] sm:$0xff]  ;;  %v189_v19 = vld [vmem:[#allocation2 + $0x50] sm:$0xff]  ;;  %v56_v20 = vld [vmem:[%s8322_s0 + $0x28] sm:$0xff]  ;;  %v121_v24 = vmul.f32 2.0, %v57_v15  ;;  %v119_v25 = vmul.f32 2.0, %v55_v17 }
  0x12   :  { %5522 = vmatmul.msk.f32.vlgmr.msra.gmra.mxu3 %vm307_vm0, %v118_v12  ;;  %5523 = vmatpush.xpose.msk.msrb.mxu0 %vm307_vm0, %v183_v13  ;;  %v58_v21 = vld [vmem:[%s8322_s0 + $0x38] sm:$0xff]  ;;  %v188_v23 = vld [vmem:[#allocation2 + $0x48] sm:$0xff]  ;;  %v120_v26 = vmul.f32 2.0, %v56_v20  ;;  %v191_v28 = vld [vmem:[#allocation2 + $0x60] sm:$0xff] }
  0x13   :  { %5525 = vmatpush.xpose.msk.msrb.mxu1 %vm307_vm0, %v184_v14  ;;  %v190_v22 = vld [vmem:[#allocation2 + $0x58] sm:$0xff]  ;;  %5529 = vmatpush.xpose.msk.msrb.mxu3 %vm307_vm0, %v186_v16  ;;  %v122_v27 = vmul.f32 2.0, %v58_v21  ;;  %v193_v29 = vld [vmem:[#allocation2 + $0x70] sm:$0xff]  ;;  %v192_v31 = vld [vmem:[#allocation2 + $0x68] sm:$0xff] }
  0x14   :  { %v194_v30 = vld [vmem:[#allocation2 + $0x78] sm:$0xff]  ;;  %v59_v32 = vld [vmem:[%s8322_s0 + $0x40] sm:$0xff]  ;;  %v61_v33 = vld [vmem:[%s8322_s0 + $0x50] sm:$0xff] }
  0x15   :  { %5535 = vmatpush.xpose.msk.msra.mxu2 %vm307_vm0, %v189_v19  ;;  %v62_v34 = vld [vmem:[%s8322_s0 + $0x58] sm:$0xff]  ;;  %v60_v35 = vld [vmem:[%s8322_s0 + $0x48] sm:$0xff]  ;;  %v123_v36 = vmul.f32 2.0, %v59_v32  ;;  %v125_v37 = vmul.f32 2.0, %v61_v33  ;;  %v197_v40 = vld [vmem:[#allocation2 + $0x90] sm:$0xff] }
  0x16   :  { %5531 = vmatpush.xpose.msk.msra.mxu0 %vm307_vm0, %v187_v18  ;;  %v126_v38 = vmul.f32 2.0, %v62_v34  ;;  %v124_v39 = vmul.f32 2.0, %v60_v35  ;;  %v195_v41 = vld [vmem:[#allocation2 + $0x80] sm:$0xff]  ;;  %v196_v42 = vld [vmem:[#allocation2 + $0x88] sm:$0xff]  ;;  %v198_v43 = vld [vmem:[#allocation2 + $0x98] sm:$0xff] }
  0x17   :  { %5537 = vmatpush.xpose.msk.msra.mxu3 %vm307_vm0, %v190_v22  ;;  %5533 = vmatpush.xpose.msk.msra.mxu1 %vm307_vm0, %v188_v23  ;;  %v63_v44 = vld [vmem:[%s8322_s0 + $0x60] sm:$0xff]  ;;  %v65_v45 = vld [vmem:[%s8322_s0 + $0x70] sm:$0xff]  ;;  %v66_v46 = vld [vmem:[%s8322_s0 + $0x78] sm:$0xff] }
  0x18   :  { %5528 = vmatmul.msk.f32.vlgmr.msrb.gmra.mxu2 %vm307_vm0, %v121_v24  ;;  %5524 = vmatmul.msk.f32.vlgmr.msrb.gmra.mxu0 %vm307_vm0, %v119_v25  ;;  %v64_v47 = vld [vmem:[%s8322_s0 + $0x68] sm:$0xff]  ;;  %v127_v48 = vmul.f32 2.0, %v63_v44  ;;  %v129_v49 = vmul.f32 2.0, %v65_v45  ;;  %v130_v50 = vmul.f32 2.0, %v66_v46  ;;  %v201_v52 = vld [vmem:[#allocation2 + $0xb0] sm:$0xff]  ;;  %v199_v53 = vld [vmem:[#allocation2 + $0xa0] sm:$0xff] }
  0x19   :  { %5526 = vmatmul.msk.f32.vlgmr.msrb.gmra.mxu1 %vm307_vm0, %v120_v26  ;;  %5543 = vmatpush.xpose.msk.msrb.mxu2 %vm307_vm0, %v193_v29  ;;  %v128_v51 = vmul.f32 2.0, %v64_v47  ;;  %v202_v54 = vld [vmem:[#allocation2 + $0xb8] sm:$0xff]  ;;  %v200_v55 = vld [vmem:[#allocation2 + $0xa8] sm:$0xff]  ;;  %v69_v56 = vld [vmem:[%s8322_s0 + $0x90] sm:$0xff] }
  0x1a   :  { %5530 = vmatmul.msk.f32.vlgmr.msrb.gmra.mxu3 %vm307_vm0, %v122_v27  ;;  %5539 = vmatpush.xpose.msk.msrb.mxu0 %vm307_vm0, %v191_v28  ;;  %v67_v57 = vld [vmem:[%s8322_s0 + $0x80] sm:$0xff]  ;;  %v68_v58 = vld [vmem:[%s8322_s0 + $0x88] sm:$0xff]  ;;  %v70_v59 = vld [vmem:[%s8322_s0 + $0x98] sm:$0xff]  ;;  %v133_v60 = vmul.f32 2.0, %v69_v56 }
  0x1b   :  { %5545 = vmatpush.xpose.msk.msrb.mxu3 %vm307_vm0, %v194_v30  ;;  %5541 = vmatpush.xpose.msk.msrb.mxu1 %vm307_vm0, %v192_v31  ;;  %v131_v61 = vmul.f32 2.0, %v67_v57  ;;  %v132_v62 = vmul.f32 2.0, %v68_v58  ;;  %v134_v63 = vmul.f32 2.0, %v70_v59  ;;  %v203_v0 = vld [vmem:[#allocation2 + $0xc0] sm:$0xff]  ;;  %v205_v1 = vld [vmem:[#allocation2 + $0xd0] sm:$0xff]  ;;  %v206_v2 = vld [vmem:[#allocation2 + $0xd8] sm:$0xff] }
  0x1c   :  { %v204_v3 = vld [vmem:[#allocation2 + $0xc8] sm:$0xff]  ;;  %v73_v4 = vld [vmem:[%s8322_s0 + $0xb0] sm:$0xff]  ;;  %v71_v5 = vld [vmem:[%s8322_s0 + $0xa0] sm:$0xff] }
  0x1d   :  { %v74_v6 = vld [vmem:[%s8322_s0 + $0xb8] sm:$0xff]  ;;  %v72_v7 = vld [vmem:[%s8322_s0 + $0xa8] sm:$0xff]  ;;  %v137_v8 = vmul.f32 2.0, %v73_v4  ;;  %v135_v9 = vmul.f32 2.0, %v71_v5  ;;  %v209_v12 = vld [vmem:[#allocation2 + $0xf0] sm:$0xff] }
  0x1e   :  { %v138_v10 = vmul.f32 2.0, %v74_v6  ;;  %v136_v11 = vmul.f32 2.0, %v72_v7  ;;  %v207_v13 = vld [vmem:[#allocation2 + $0xe0] sm:$0xff]  ;;  %v208_v14 = vld [vmem:[#allocation2 + $0xe8] sm:$0xff]  ;;  %v210_v15 = vld [vmem:[#allocation2 + $0xf8] sm:$0xff] }
  0x1f   :  { %v75_v16 = vld [vmem:[%s8322_s0 + $0xc0] sm:$0xff]  ;;  %v77_v17 = vld [vmem:[%s8322_s0 + $0xd0] sm:$0xff]  ;;  %v78_v18 = vld [vmem:[%s8322_s0 + $0xd8] sm:$0xff] }
  0x20   :  { %5532 = vmatmul.msk.f32.vlgmr.msra.gmra.mxu0 %vm307_vm0, %v123_v36  ;;  %5536 = vmatmul.msk.f32.vlgmr.msra.gmra.mxu2 %vm307_vm0, %v125_v37  ;;  %v76_v19 = vld [vmem:[%s8322_s0 + $0xc8] sm:$0xff]  ;;  %v139_v20 = vmul.f32 2.0, %v75_v16  ;;  %v141_v21 = vmul.f32 2.0, %v77_v17  ;;  %v142_v22 = vmul.f32 2.0, %v78_v18  ;;  %v213_v24 = vld [vmem:[#allocation2 + $0x110] sm:$0xff]  ;;  %v211_v25 = vld [vmem:[#allocation2 + $0x100] sm:$0xff] }
  0x21   :  { %5534 = vmatmul.msk.f32.vlgmr.msra.gmra.mxu1 %vm307_vm0, %v124_v39  ;;  %5551 = vmatpush.xpose.msk.msra.mxu2 %vm307_vm0, %v197_v40  ;;  %v140_v23 = vmul.f32 2.0, %v76_v19  ;;  %v212_v26 = vld [vmem:[#allocation2 + $0x108] sm:$0xff]  ;;  %v214_v27 = vld [vmem:[#allocation2 + $0x118] sm:$0xff]  ;;  %v81_v28 = vld [vmem:[%s8322_s0 + $0xf0] sm:$0xff] }
  0x22   :  { %5538 = vmatmul.msk.f32.vlgmr.msra.gmra.mxu3 %vm307_vm0, %v126_v38  ;;  %5547 = vmatpush.xpose.msk.msra.mxu0 %vm307_vm0, %v195_v41  ;;  %v79_v29 = vld [vmem:[%s8322_s0 + $0xe0] sm:$0xff]  ;;  %v80_v30 = vld [vmem:[%s8322_s0 + $0xe8] sm:$0xff]  ;;  %v82_v31 = vld [vmem:[%s8322_s0 + $0xf8] sm:$0xff]  ;;  %v145_v32 = vmul.f32 2.0, %v81_v28 }
  0x23   :  { %5549 = vmatpush.xpose.msk.msra.mxu1 %vm307_vm0, %v196_v42  ;;  %5553 = vmatpush.xpose.msk.msra.mxu3 %vm307_vm0, %v198_v43  ;;  %v143_v33 = vmul.f32 2.0, %v79_v29  ;;  %v144_v34 = vmul.f32 2.0, %v80_v30  ;;  %v146_v35 = vmul.f32 2.0, %v82_v31  ;;  %v85_v36 = vld [vmem:[%s8322_s0 + $0x110] sm:$0xff]  ;;  %v83_v37 = vld [vmem:[%s8322_s0 + $0x100] sm:$0xff]  ;;  %v84_v38 = vld [vmem:[%s8322_s0 + $0x108] sm:$0xff] }
  0x24   :  { %v86_v39 = vld [vmem:[%s8322_s0 + $0x118] sm:$0xff]  ;;  %v149_v40 = vmul.f32 2.0, %v85_v36  ;;  %v147_v41 = vmul.f32 2.0, %v83_v37  ;;  %v148_v42 = vmul.f32 2.0, %v84_v38  ;;  %v217_v45 = vld [vmem:[#allocation2 + $0x130] sm:$0xff]  ;;  %v216_v59 = vld [vmem:[#allocation2 + $0x128] sm:$0xff] }
  0x25   :  { %v150_v43 = vmul.f32 2.0, %v86_v39  ;;  %v218_v44 = vld [vmem:[#allocation2 + $0x138] sm:$0xff]  ;;  %v93_v4 = vld [vmem:[%s8322_s0 + $0x150] sm:$0xff]  ;;  %v220_v19 = vld [vmem:[#allocation2 + $0x148] sm:$0xff] }
  0x26   :  { %v90_v46 = vld [vmem:[%s8322_s0 + $0x138] sm:$0xff]  ;;  %v157_v5 = vmul.f32 2.0, %v93_v4  ;;  %v97_v30 = vld [vmem:[%s8322_s0 + $0x170] sm:$0xff] }
  0x27   :  { %v154_v47 = vmul.f32 2.0, %v90_v46  ;;  %v161_v31 = vmul.f32 2.0, %v97_v30  ;;  %v98_v46 = vld [vmem:[%s8322_s0 + $0x178] sm:$0xff] }
  0x28   :  { %5540 = vmatmul.msk.f32.vlgmr.msrb.gmra.mxu0 %vm307_vm0, %v127_v48  ;;  %5544 = vmatmul.msk.f32.vlgmr.msrb.gmra.mxu2 %vm307_vm0, %v129_v49  ;;  %v89_v48 = vld [vmem:[%s8322_s0 + $0x130] sm:$0xff] }
  0x29   :  { %5542 = vmatmul.msk.f32.vlgmr.msrb.gmra.mxu1 %vm307_vm0, %v128_v51  ;;  %5559 = vmatpush.xpose.msk.msrb.mxu2 %vm307_vm0, %v201_v52  ;;  %v153_v49 = vmul.f32 2.0, %v89_v48  ;;  %v87_v51 = vld [vmem:[%s8322_s0 + $0x120] sm:$0xff] }
  0x2a   :  { %5546 = vmatmul.msk.f32.vlgmr.msrb.gmra.mxu3 %vm307_vm0, %v130_v50  ;;  %5555 = vmatpush.xpose.msk.msrb.mxu0 %vm307_vm0, %v199_v53  ;;  %v215_v50 = vld [vmem:[#allocation2 + $0x120] sm:$0xff]  ;;  %v151_v52 = vmul.f32 2.0, %v87_v51  ;;  %v222_v53 = vld [vmem:[#allocation2 + $0x158] sm:$0xff] }
  0x2b   :  { %5561 = vmatpush.xpose.msk.msrb.mxu3 %vm307_vm0, %v202_v54  ;;  %5557 = vmatpush.xpose.msk.msrb.mxu1 %vm307_vm0, %v200_v55  ;;  %v94_v55 = vld [vmem:[%s8322_s0 + $0x158] sm:$0xff] }
  0x2c   :  { %v158_v57 = vmul.f32 2.0, %v94_v55 }
  0x30   :  { %5552 = vmatmul.msk.f32.vlgmr.msra.gmra.mxu2 %vm307_vm0, %v133_v60  ;;  %5548 = vmatmul.msk.f32.vlgmr.msra.gmra.mxu0 %vm307_vm0, %v131_v61  ;;  %v221_v60 = vld [vmem:[#allocation2 + $0x150] sm:$0xff] }
  0x31   :  { %5550 = vmatmul.msk.f32.vlgmr.msra.gmra.mxu1 %vm307_vm0, %v132_v62  ;;  %5563 = vmatpush.xpose.msk.msra.mxu0 %vm307_vm0, %v203_v0  ;;  %v88_v62 = vld [vmem:[%s8322_s0 + $0x128] sm:$0xff] }
  0x32   :  { %5554 = vmatmul.msk.f32.vlgmr.msra.gmra.mxu3 %vm307_vm0, %v134_v63  ;;  %5567 = vmatpush.xpose.msk.msra.mxu2 %vm307_vm0, %v205_v1 }
  0x33   :  { %5569 = vmatpush.xpose.msk.msra.mxu3 %vm307_vm0, %v206_v2  ;;  %5565 = vmatpush.xpose.msk.msra.mxu1 %vm307_vm0, %v204_v3  ;;  %v152_v2 = vmul.f32 2.0, %v88_v62 }
  0x38   :  { %5560 = vmatmul.msk.f32.vlgmr.msrb.gmra.mxu2 %vm307_vm0, %v137_v8  ;;  %5556 = vmatmul.msk.f32.vlgmr.msrb.gmra.mxu0 %vm307_vm0, %v135_v9 }
  0x39   :  { %5558 = vmatmul.msk.f32.vlgmr.msrb.gmra.mxu1 %vm307_vm0, %v136_v11  ;;  %5575 = vmatpush.xpose.msk.msrb.mxu2 %vm307_vm0, %v209_v12 }
  0x3a   :  { %5562 = vmatmul.msk.f32.vlgmr.msrb.gmra.mxu3 %vm307_vm0, %v138_v10  ;;  %5571 = vmatpush.xpose.msk.msrb.mxu0 %vm307_vm0, %v207_v13 }
  0x3b   :  { %5573 = vmatpush.xpose.msk.msrb.mxu1 %vm307_vm0, %v208_v14  ;;  %5577 = vmatpush.xpose.msk.msrb.mxu3 %vm307_vm0, %v210_v15 }
  0x40   :  { %5564 = vmatmul.msk.f32.vlgmr.msra.gmra.mxu0 %vm307_vm0, %v139_v20  ;;  %5568 = vmatmul.msk.f32.vlgmr.msra.gmra.mxu2 %vm307_vm0, %v141_v21 }
  0x41   :  { %5566 = vmatmul.msk.f32.vlgmr.msra.gmra.mxu1 %vm307_vm0, %v140_v23  ;;  %5583 = vmatpush.xpose.msk.msra.mxu2 %vm307_vm0, %v213_v24  ;;  %v219_v24 = vld [vmem:[#allocation2 + $0x140] sm:$0xff] }
  0x42   :  { %5570 = vmatmul.msk.f32.vlgmr.msra.gmra.mxu3 %vm307_vm0, %v142_v22  ;;  %5579 = vmatpush.xpose.msk.msra.mxu0 %vm307_vm0, %v211_v25  ;;  %v225_v25 = vld [vmem:[#allocation2 + $0x170] sm:$0xff] }
  0x43   :  { %5581 = vmatpush.xpose.msk.msra.mxu1 %vm307_vm0, %v212_v26  ;;  %5585 = vmatpush.xpose.msk.msra.mxu3 %vm307_vm0, %v214_v27  ;;  %v92_v26 = vld [vmem:[%s8322_s0 + $0x148] sm:$0xff] }
  0x44   :  { %v156_v27 = vmul.f32 2.0, %v92_v26 }
  0x48   :  { %5576 = vmatmul.msk.f32.vlgmr.msrb.gmra.mxu2 %vm307_vm0, %v145_v32  ;;  %5572 = vmatmul.msk.f32.vlgmr.msrb.gmra.mxu0 %vm307_vm0, %v143_v33 }
  0x49   :  { %5574 = vmatmul.msk.f32.vlgmr.msrb.gmra.mxu1 %vm307_vm0, %v144_v34  ;;  %5591 = vmatpush.xpose.msk.msrb.mxu2 %vm307_vm0, %v217_v45  ;;  %v224_v45 = vld [vmem:[#allocation2 + $0x168] sm:$0xff] }
  0x4a   :  { %5578 = vmatmul.msk.f32.vlgmr.msrb.gmra.mxu3 %vm307_vm0, %v146_v35  ;;  %5587 = vmatpush.xpose.msk.msrb.mxu0 %vm307_vm0, %v215_v50  ;;  %v91_v35 = vld [vmem:[%s8322_s0 + $0x140] sm:$0xff] }
  0x4b   :  { %5593 = vmatpush.xpose.msk.msrb.mxu3 %vm307_vm0, %v218_v44  ;;  %5589 = vmatpush.xpose.msk.msrb.mxu1 %vm307_vm0, %v216_v59  ;;  %v155_v37 = vmul.f32 2.0, %v91_v35 }
  0x50   :  { %5584 = vmatmul.msk.f32.vlgmr.msra.gmra.mxu2 %vm307_vm0, %v149_v40  ;;  %5580 = vmatmul.msk.f32.vlgmr.msra.gmra.mxu0 %vm307_vm0, %v147_v41  ;;  %v226_v40 = vld [vmem:[#allocation2 + $0x178] sm:$0xff] }
  0x51   :  { %5582 = vmatmul.msk.f32.vlgmr.msra.gmra.mxu1 %vm307_vm0, %v148_v42  ;;  %5599 = vmatpush.xpose.msk.msra.mxu2 %vm307_vm0, %v221_v60  ;;  %v223_v60 = vld [vmem:[#allocation2 + $0x160] sm:$0xff] }
  0x52   :  { %5586 = vmatmul.msk.f32.vlgmr.msra.gmra.mxu3 %vm307_vm0, %v150_v43  ;;  %5597 = vmatpush.xpose.msk.msra.mxu1 %vm307_vm0, %v220_v19  ;;  %v230_v19 = vld [vmem:[#allocation2 + $0x198] sm:$0xff] }
  0x53   :  { %5601 = vmatpush.xpose.msk.msra.mxu3 %vm307_vm0, %v222_v53  ;;  %5595 = vmatpush.xpose.msk.msra.mxu0 %vm307_vm0, %v219_v24  ;;  %v96_v53 = vld [vmem:[%s8322_s0 + $0x168] sm:$0xff]  ;;  %v101_v24 = vld [vmem:[%s8322_s0 + $0x190] sm:$0xff] }
  0x58   :  { %5592 = vmatmul.msk.f32.vlgmr.msrb.gmra.mxu2 %vm307_vm0, %v153_v49  ;;  %5588 = vmatmul.msk.f32.vlgmr.msrb.gmra.mxu0 %vm307_vm0, %v151_v52 }
  0x59   :  { %5590 = vmatmul.msk.f32.vlgmr.msrb.gmra.mxu1 %vm307_vm0, %v152_v2  ;;  %5607 = vmatpush.xpose.msk.msrb.mxu2 %vm307_vm0, %v225_v25  ;;  %v95_v2 = vld [vmem:[%s8322_s0 + $0x160] sm:$0xff] }
  0x5a   :  { %5594 = vmatmul.msk.f32.vlgmr.msrb.gmra.mxu3 %vm307_vm0, %v154_v47  ;;  %5605 = vmatpush.xpose.msk.msrb.mxu1 %vm307_vm0, %v224_v45  ;;  %v162_v47 = vmul.f32 2.0, %v98_v46 }
  0x5b   :  { %5609 = vmatpush.xpose.msk.msrb.mxu3 %vm307_vm0, %v226_v40  ;;  %5603 = vmatpush.xpose.msk.msrb.mxu0 %vm307_vm0, %v223_v60 }
  0x60   :  { %5600 = vmatmul.msk.f32.vlgmr.msra.gmra.mxu2 %vm307_vm0, %v157_v5  ;;  %5596 = vmatmul.msk.f32.vlgmr.msra.gmra.mxu0 %vm307_vm0, %v155_v37  ;;  %v159_v5 = vmul.f32 2.0, %v95_v2  ;;  %v100_v2 = vld [vmem:[%s8322_s0 + $0x188] sm:$0xff] }
  0x61   :  { %5598 = vmatmul.msk.f32.vlgmr.msra.gmra.mxu1 %vm307_vm0, %v156_v27  ;;  %v165_v27 = vmul.f32 2.0, %v101_v24 }
  0x62   :  { %5602 = vmatmul.msk.f32.vlgmr.msra.gmra.mxu3 %vm307_vm0, %v158_v57 }
  0x63   :  { %5617 = vmatpush.xpose.msk.msra.mxu3 %vm307_vm0, %v230_v19 }
  0x68   :  { %5608 = vmatmul.msk.f32.vlgmr.msrb.gmra.mxu2 %vm307_vm0, %v161_v31  ;;  %5604 = vmatmul.msk.f32.vlgmr.msrb.gmra.mxu0 %vm307_vm0, %v159_v5  ;;  %v164_v5 = vmul.f32 2.0, %v100_v2 }
  0x6a   :  { %5610 = vmatmul.msk.f32.vlgmr.msrb.gmra.mxu3 %vm307_vm0, %v162_v47 }
  0x8d   :  { %v6352_v54 = vpop.f32.mrf.mxu0 }
  0x8e   :  { %v1973_v56 = vsel %vm1972_vm1, %v6352_v54, -inf  ;;  %v6359_v58 = vpop.f32.mrf.mxu1 }
  0x8f   :  { %1974 = vmax.xlane.f32.xlu1 %v1973_v56  ;;  %v1976_v0 = vsel %vm1972_vm1, %v6359_v58, -inf  ;;  %v160_v56 = vmul.f32 2.0, %v96_v53  ;;  %v234_v53 = vld [vmem:[#allocation2 + $0x1b8] sm:$0xff] }
  0x90   :  { %5625 = vmatpush.xpose.msk.msrb.mxu3 %vm307_vm0, %v234_v53 }
  0x91   :  { %5606 = vmatmul.msk.f32.vlgmr.msrb.gmra.mxu1 %vm307_vm0, %v160_v56 }
  0x93   :  { %v6364_v61 = vpop.f32.mrf.mxu2 }
  0x94   :  { %v1979_v63 = vsel %vm1972_vm1, %v6364_v61, -inf }
  0x95   :  { %v6373_v1 = vpop.f32.mrf.mxu3  ;;  %1980 = vmax.xlane.f32.xlu0 %v1979_v63  ;;  %v6375_v3 = vpop.f32.mrf.mxu0 }
  0x96   :  { %v6382_v6 = vpop.f32.mrf.mxu1  ;;  %v1982_v7 = vsel %vm1972_vm1, %v6373_v1, -inf  ;;  %v1985_v14 = vsel %vm1972_vm1, %v6375_v3, -inf }
  0x97   :  { %1977 = vmax.xlane.f32.xlu1 %v1976_v0  ;;  %v1988_v10 = vsel %vm1972_vm1, %v6382_v6, -inf }
  0x9b   :  { %v6386_v8 = vpop.f32.mrf.mxu2 }
  0x9c   :  { %v1991_v9 = vsel %vm1972_vm1, %v6386_v8, -inf }
  0x9d   :  { %1983 = vmax.xlane.f32.xlu0 %v1982_v7  ;;  %1992 = vmax.xlane.f32.xlu2 %v1991_v9  ;;  %v6392_v11 = vpop.f32.mrf.mxu3  ;;  %v6394_v12 = vpop.f32.mrf.mxu0 }
  0x9e   :  { %v1994_v13 = vsel %vm1972_vm1, %v6392_v11, -inf  ;;  %v1997_v15 = vsel %vm1972_vm1, %v6394_v12, -inf  ;;  %v6404_v17 = vpop.f32.mrf.mxu1 }
  0x9f   :  { %1989 = vmax.xlane.f32.xlu1 %v1988_v10  ;;  %v2000_v21 = vsel %vm1972_vm1, %v6404_v17, -inf }
  0xa3   :  { %v6402_v16 = vpop.f32.mrf.mxu2 }
  0xa4   :  { %v2003_v33 = vsel %vm1972_vm1, %v6402_v16, -inf }
  0xa5   :  { %1995 = vmax.xlane.f32.xlu2 %v1994_v13  ;;  %1986 = vmax.xlane.f32.xlu0 %v1985_v14  ;;  %v6406_v18 = vpop.f32.mrf.mxu3  ;;  %v6409_v20 = vpop.f32.mrf.mxu0 }
  0xa6   :  { %v2006_v22 = vsel %vm1972_vm1, %v6406_v18, -inf  ;;  %v2009_v23 = vsel %vm1972_vm1, %v6409_v20, -inf  ;;  %v6424_v29 = vpop.f32.mrf.mxu1 }
  0xa7   :  { %1998 = vmax.xlane.f32.xlu1 %v1997_v15  ;;  %v2012_v42 = vsel %vm1972_vm1, %v6424_v29, -inf }
  0xab   :  { %v6422_v28 = vpop.f32.mrf.mxu2 }
  0xac   :  { %v2015_v34 = vsel %vm1972_vm1, %v6422_v28, -inf }
  0xad   :  { %2001 = vmax.xlane.f32.xlu2 %v2000_v21  ;;  %2007 = vmax.xlane.f32.xlu0 %v2006_v22  ;;  %v6430_v32 = vpop.f32.mrf.mxu3  ;;  %v6443_v38 = vpop.f32.mrf.mxu0  ;;  %v229_v21 = vld [vmem:[#allocation2 + $0x190] sm:$0xff]  ;;  %v102_v22 = vld [vmem:[%s8322_s0 + $0x198] sm:$0xff] }
  0xae   :  { %v2018_v36 = vsel %vm1972_vm1, %v6430_v32, -inf  ;;  %v6448_v41 = vpop.f32.mrf.mxu1  ;;  %v2021_v43 = vsel %vm1972_vm1, %v6443_v38, -inf  ;;  %5615 = vmatpush.xpose.msk.msra.mxu2 %vm307_vm0, %v229_v21 }
  0xaf   :  { %2010 = vmax.xlane.f32.xlu1 %v2009_v23  ;;  %v2024_v44 = vsel %vm1972_vm1, %v6448_v41, -inf  ;;  %v166_v23 = vmul.f32 2.0, %v102_v22 }
  0xb1   :  { %5618 = vmatmul.msk.f32.vlgmr.msra.gmra.mxu3 %vm307_vm0, %v166_v23  ;;  %5616 = vmatmul.msk.f32.vlgmr.msra.gmra.mxu2 %vm307_vm0, %v165_v27 }
  0xb3   :  { %v6445_v39 = vpop.f32.mrf.mxu2 }
  0xb4   :  { %v2027_v51 = vsel %vm1972_vm1, %v6445_v39, -inf }
  0xb5   :  { %2004 = vmax.xlane.f32.xlu2 %v2003_v33  ;;  %2016 = vmax.xlane.f32.xlu0 %v2015_v34  ;;  %v6460_v48 = vpop.f32.mrf.mxu3  ;;  %v6462_v49 = vpop.f32.mrf.mxu0 }
  0xb6   :  { %v2030_v52 = vsel %vm1972_vm1, %v6460_v48, -inf  ;;  %v6477_v57 = vpop.f32.mrf.mxu1  ;;  %v2033_v0 = vsel %vm1972_vm1, %v6462_v49, -inf }
  0xb7   :  { %2019 = vmax.xlane.f32.xlu1 %v2018_v36  ;;  %v2036_v63 = vsel %vm1972_vm1, %v6477_v57, -inf }
  0xbb   :  { %v6465_v50 = vpop.f32.mrf.mxu2 }
  0xbc   :  { %v2039_v55 = vsel %vm1972_vm1, %v6465_v50, -inf }
  0xbd   :  { %2013 = vmax.xlane.f32.xlu2 %v2012_v42  ;;  %2022 = vmax.xlane.f32.xlu0 %v2021_v43  ;;  %v6479_v59 = vpop.f32.mrf.mxu3  ;;  %v6482_v62 = vpop.f32.mrf.mxu0  ;;  %v227_v43 = vld [vmem:[#allocation2 + $0x180] sm:$0xff] }
  0xbe   :  { %v2045_v4 = vsel %vm1972_vm1, %v6482_v62, -inf  ;;  %v6496_v9 = vpop.f32.mrf.mxu1  ;;  %v2042_v14 = vsel %vm1972_vm1, %v6479_v59, -inf  ;;  %5611 = vmatpush.xpose.msk.msra.mxu0 %vm307_vm0, %v227_v43 }
  0xbf   :  { %2025 = vmax.xlane.f32.xlu1 %v2024_v44  ;;  %v2048_v31 = vsel %vm1972_vm1, %v6496_v9, -inf  ;;  %v99_v44 = vld [vmem:[%s8322_s0 + $0x180] sm:$0xff] }
  0xc0   :  { %v163_v45 = vmul.f32 2.0, %v99_v44 }
  0xc2   :  { %5612 = vmatmul.msk.f32.vlgmr.msra.gmra.mxu0 %vm307_vm0, %v163_v45  ;;  %v231_v45 = vld [vmem:[#allocation2 + $0x1a0] sm:$0xff] }
  0xc3   :  { %v6494_v7 = vpop.f32.mrf.mxu2  ;;  %5619 = vmatpush.xpose.msk.msrb.mxu0 %vm307_vm0, %v231_v45 }
  0xc4   :  { %v2051_v13 = vsel %vm1972_vm1, %v6494_v7, -inf }
  0xc5   :  { %2028 = vmax.xlane.f32.xlu2 %v2027_v51  ;;  %2031 = vmax.xlane.f32.xlu0 %v2030_v52  ;;  %v6498_v10 = vpop.f32.mrf.mxu3  ;;  %v6514_v25 = vpop.f32.mrf.mxu0 }
  0xc6   :  { %v2054_v15 = vsel %vm1972_vm1, %v6498_v10, -inf  ;;  %v6518_v30 = vpop.f32.mrf.mxu1  ;;  %v2057_v33 = vsel %vm1972_vm1, %v6514_v25, -inf }
  0xc7   :  { %2040 = vmax.xlane.f32.xlu1 %v2039_v55  ;;  %v2060_v34 = vsel %vm1972_vm1, %v6518_v30, -inf  ;;  %v106_v55 = vld [vmem:[%s8322_s0 + $0x1b8] sm:$0xff] }
  0xc8   :  { %v170_v56 = vmul.f32 2.0, %v106_v55 }
  0xca   :  { %5626 = vmatmul.msk.f32.vlgmr.msrb.gmra.mxu3 %vm307_vm0, %v170_v56 }
  0xcb   :  { %v6516_v26 = vpop.f32.mrf.mxu2 }
  0xcc   :  { %v2063_v37 = vsel %vm1972_vm1, %v6516_v26, -inf }
  0xcd   :  { %2037 = vmax.xlane.f32.xlu0 %v2036_v63  ;;  %2034 = vmax.xlane.f32.xlu2 %v2033_v0  ;;  %v6528_v35 = vpop.f32.mrf.mxu3  ;;  %v6542_v46 = vpop.f32.mrf.mxu0  ;;  %v228_v0 = vld [vmem:[#allocation2 + $0x188] sm:$0xff] }
  0xce   :  { %v2066_v40 = vsel %vm1972_vm1, %v6528_v35, -inf  ;;  %v6544_v47 = vpop.f32.mrf.mxu1  ;;  %v2069_v52 = vsel %vm1972_vm1, %v6542_v46, -inf  ;;  %5613 = vmatpush.xpose.msk.msra.mxu1 %vm307_vm0, %v228_v0 }
  0xcf   :  { %2046 = vmax.xlane.f32.xlu1 %v2045_v4  ;;  %v2072_v51 = vsel %vm1972_vm1, %v6544_v47, -inf  ;;  %v233_v4 = vld [vmem:[#allocation2 + $0x1b0] sm:$0xff] }
  0xd0   :  { %5623 = vmatpush.xpose.msk.msrb.mxu2 %vm307_vm0, %v233_v4 }
  0xd1   :  { %5614 = vmatmul.msk.f32.vlgmr.msra.gmra.mxu1 %vm307_vm0, %v164_v5 }
  0xd3   :  { %v6530_v36 = vpop.f32.mrf.mxu2 }
  0xd4   :  { %v2075_v42 = vsel %vm1972_vm1, %v6530_v36, -inf }
  0xd5   :  { %2052 = vmax.xlane.f32.xlu0 %v2051_v13  ;;  %2043 = vmax.xlane.f32.xlu2 %v2042_v14  ;;  %v6555_v60 = vpop.f32.mrf.mxu3  ;;  %v105_v13 = vld [vmem:[%s8322_s0 + $0x1b0] sm:$0xff] }
  0xd6   :  { %v2078_v63 = vsel %vm1972_vm1, %v6555_v60, -inf  ;;  %v169_v14 = vmul.f32 2.0, %v105_v13  ;;  %v232_v13 = vld [vmem:[#allocation2 + $0x1a8] sm:$0xff] }
  0xd7   :  { %2055 = vmax.xlane.f32.xlu1 %v2054_v15  ;;  %5621 = vmatpush.xpose.msk.msrb.mxu1 %vm307_vm0, %v232_v13 }
  0xd8   :  { %5624 = vmatmul.msk.f32.vlgmr.msrb.gmra.mxu2 %vm307_vm0, %v169_v14 }
  0xdd   :  { %2049 = vmax.xlane.f32.xlu2 %v2048_v31  ;;  %2058 = vmax.xlane.f32.xlu0 %v2057_v33  ;;  %v6591_v0 = vpop.f32.mrf.mxu3 }
  0xdf   :  { %2061 = vmax.xlane.f32.xlu1 %v2060_v34 }
  0xe5   :  { %2064 = vmax.xlane.f32.xlu2 %v2063_v37  ;;  %2067 = vmax.xlane.f32.xlu0 %v2066_v40 }
  0xe7   :  { %2076 = vmax.xlane.f32.xlu1 %v2075_v42 }
  0xed   :  { %2073 = vmax.xlane.f32.xlu0 %v2072_v51  ;;  %2070 = vmax.xlane.f32.xlu2 %v2069_v52 }
  0xf5   :  { %2079 = vmax.xlane.f32.xlu2 %v2078_v63 }
 0x102   :  { %v1975_v15 = vpop.xlane.xlu1 %1974 }
 0x103   :  { %v2165_v19 = vsub.f32 %v6352_v54, %v1975_v15 }
 0x105   :  { %v2229_v21 = vmul.f32 1.442695, %v2165_v19  ;;  %v2090_v19 = vsel %vm1972_vm1, %v6591_v0, -inf }
 0x107   :  { %5781 = vpow2.f32 %v2229_v21 }
 0x108   :  { %v1981_v22 = vpop.xlane.xlu0 %1980 }
 0x109   :  { %v2167_v23 = vsub.f32 %v6364_v61, %v1981_v22  ;;  %v109_v22 = vld [vmem:[%s8322_s0 + $0x1d0] sm:$0xff] }
 0x10a   :  { %v1978_v24 = vpop.xlane.xlu1 %1977 }
 0x10b   :  { %v2233_v27 = vmul.f32 1.442695, %v2167_v23  ;;  %v2166_v31 = vsub.f32 %v6359_v58, %v1978_v24  ;;  %v6611_v24 = vpop.f32.mrf.mxu2 }
 0x10d   :  { %v6573_v33 = vpop.eup %5781  ;;  %5783 = vpow2.f32 %v2233_v27  ;;  %v2231_v34 = vmul.f32 1.442695, %v2166_v31  ;;  %v173_v27 = vmul.f32 2.0, %v109_v22 }
 0x10e   :  { %v2357_v37 = vsel %vm1972_vm1, %v6573_v33, 0.0 }
 0x10f   :  { %5785 = vpow2.f32 %v2231_v34  ;;  %2358 = vadd.xlane.f32.xlu0 %v2357_v37  ;;  %v6614_v37 = vpop.f32.mrf.mxu0 }
 0x110   :  { %v1984_v40 = vpop.xlane.xlu0 %1983  ;;  %v1993_v54 = vpop.xlane.xlu2 %1992 }
 0x111   :  { %v2168_v42 = vsub.f32 %v6373_v1, %v1984_v40  ;;  %v103_v1 = vld [vmem:[%s8322_s0 + $0x1a0] sm:$0xff]  ;;  %v2171_v21 = vsub.f32 %v6386_v8, %v1993_v54  ;;  %v2087_v54 = vsel %vm1972_vm1, %v6611_v24, -inf }
 0x112   :  { %v1990_v52 = vpop.xlane.xlu1 %1989  ;;  %v167_v53 = vmul.f32 2.0, %v103_v1 }
 0x113   :  { %v6578_v43 = vpop.eup %5783  ;;  %v2235_v61 = vmul.f32 1.442695, %v2168_v42  ;;  %v2170_v4 = vsub.f32 %v6382_v6, %v1990_v52  ;;  %v237_v6 = vld [vmem:[#allocation2 + $0x1d0] sm:$0xff]  ;;  %v2241_v8 = vmul.f32 1.442695, %v2171_v21 }
 0x114   :  { %v2363_v44 = vsel %vm1972_vm1, %v6578_v43, 0.0  ;;  %5620 = vmatmul.msk.f32.vlgmr.msrb.gmra.mxu0 %vm307_vm0, %v167_v53  ;;  %5631 = vmatpush.xpose.msk.msra.mxu2 %vm307_vm0, %v237_v6 }
 0x115   :  { %v6582_v58 = vpop.eup %5785  ;;  %5787 = vpow2.f32 %v2235_v61  ;;  %2364 = vadd.xlane.f32.xlu2 %v2363_v44  ;;  %v2239_v23 = vmul.f32 1.442695, %v2170_v4  ;;  %v2081_v61 = vsel %vm1972_vm1, %v6614_v37, -inf }
 0x116   :  { %v2360_v51 = vsel %vm1972_vm1, %v6582_v58, 0.0 }
 0x117   :  { %2361 = vadd.xlane.f32.xlu1 %v2360_v51  ;;  %5632 = vmatmul.msk.f32.vlgmr.msra.gmra.mxu2 %vm307_vm0, %v173_v27 }
 0x118   :  { %v1996_v55 = vpop.xlane.xlu2 %1995  ;;  %v1987_v56 = vpop.xlane.xlu0 %1986 }
 0x119   :  { %v2169_v63 = vsub.f32 %v6375_v3, %v1987_v56  ;;  %v2172_v14 = vsub.f32 %v6392_v11, %v1996_v55  ;;  %v104_v3 = vld [vmem:[%s8322_s0 + $0x1a8] sm:$0xff] }
 0x11a   :  { %v168_v11 = vmul.f32 2.0, %v104_v3  ;;  %v1999_v40 = vpop.xlane.xlu1 %1998 }
 0x11b   :  { %v6594_v2 = vpop.eup %5787  ;;  %v2237_v5 = vmul.f32 1.442695, %v2169_v63  ;;  %v2243_v31 = vmul.f32 1.442695, %v2172_v14  ;;  %v2173_v44 = vsub.f32 %v6394_v12, %v1999_v40 }
 0x11c   :  { %v2366_v15 = vsel %vm1972_vm1, %v6594_v2, 0.0  ;;  %5622 = vmatmul.msk.f32.vlgmr.msrb.gmra.mxu1 %vm307_vm0, %v168_v11 }
 0x11d   :  { %2367 = vadd.xlane.f32.xlu0 %v2366_v15  ;;  %5789 = vpow2.f32 %v2237_v5  ;;  %v2245_v52 = vmul.f32 1.442695, %v2173_v44  ;;  %v6659_v44 = vpop.f32.mrf.mxu2 }
 0x11e   :  { %5791 = vpow2.f32 %v2239_v23 }
 0x11f   :  { %2091 = vmax.xlane.f32.xlu1 %v2090_v19  ;;  %5793 = vpow2.f32 %v2243_v31  ;;  %v6640_v19 = vpop.f32.mrf.mxu3 }
 0x120   :  { %v2002_v34 = vpop.xlane.xlu2 %2001  ;;  %5795 = vpow2.f32 %v2241_v8  ;;  %v2008_v55 = vpop.xlane.xlu0 %2007  ;;  %v236_v8 = vld [vmem:[#allocation2 + $0x1c8] sm:$0xff] }
 0x121   :  { %5797 = vpow2.f32 %v2245_v52  ;;  %v2176_v4 = vsub.f32 %v6406_v18, %v2008_v55  ;;  %v2102_v18 = vsel %vm1972_vm1, %v6640_v19, -inf  ;;  %v2174_v23 = vsub.f32 %v6404_v17, %v2002_v34  ;;  %5629 = vmatpush.xpose.msk.msra.mxu1 %vm307_vm0, %v236_v8 }
 0x122   :  { %v2011_v13 = vpop.xlane.xlu1 %2010  ;;  %v2099_v55 = vsel %vm1972_vm1, %v6659_v44, -inf }
 0x123   :  { %v6619_v42 = vpop.eup %5789  ;;  %v2251_v3 = vmul.f32 1.442695, %v2176_v4  ;;  %v2177_v11 = vsub.f32 %v6409_v20, %v2011_v13  ;;  %v108_v20 = vld [vmem:[%s8322_s0 + $0x1c8] sm:$0xff]  ;;  %v2247_v17 = vmul.f32 1.442695, %v2174_v23  ;;  %v238_v4 = vld [vmem:[#allocation2 + $0x1d8] sm:$0xff] }
 0x124   :  { %v2369_v45 = vsel %vm1972_vm1, %v6619_v42, 0.0  ;;  %v6626_v1 = vpop.eup %5791  ;;  %5633 = vmatpush.xpose.msk.msra.mxu3 %vm307_vm0, %v238_v4 }
 0x125   :  { %2088 = vmax.xlane.f32.xlu0 %v2087_v54  ;;  %2370 = vadd.xlane.f32.xlu2 %v2369_v45  ;;  %v6628_v53 = vpop.eup %5793  ;;  %v2372_v12 = vsel %vm1972_vm1, %v6626_v1, 0.0  ;;  %v2253_v54 = vmul.f32 1.442695, %v2177_v11 }
 0x126   :  { %v6630_v56 = vpop.eup %5795  ;;  %v2378_v5 = vsel %vm1972_vm1, %v6628_v53, 0.0 }
 0x127   :  { %2082 = vmax.xlane.f32.xlu1 %v2081_v61  ;;  %v2375_v14 = vsel %vm1972_vm1, %v6630_v56, 0.0  ;;  %v6646_v6 = vpop.eup %5797  ;;  %v172_v61 = vmul.f32 2.0, %v108_v20 }
 0x128   :  { %v2005_v51 = vpop.xlane.xlu2 %2004  ;;  %v2017_v27 = vpop.xlane.xlu0 %2016  ;;  %v2381_v40 = vsel %vm1972_vm1, %v6646_v6, 0.0 }
 0x129   :  { %v2175_v63 = vsub.f32 %v6402_v16, %v2005_v51  ;;  %v6642_v16 = vpop.f32.mrf.mxu1  ;;  %5630 = vmatmul.msk.f32.vlgmr.msra.gmra.mxu1 %vm307_vm0, %v172_v61 }
 0x12a   :  { %v2084_v22 = vsel %vm1972_vm1, %v6642_v16, -inf  ;;  %v2020_v34 = vpop.xlane.xlu1 %2019 }
 0x12b   :  { %v2249_v15 = vmul.f32 1.442695, %v2175_v63  ;;  %v2180_v52 = vsub.f32 %v6430_v32, %v2020_v34  ;;  %v2179_v63 = vsub.f32 %v6422_v28, %v2017_v27  ;;  %v110_v32 = vld [vmem:[%s8322_s0 + $0x1d8] sm:$0xff]  ;;  %v241_v28 = vld [vmem:[#allocation2 + $0x1f0] sm:$0xff] }
 0x12c   :  { %5639 = vmatpush.xpose.msk.msrb.mxu2 %vm307_vm0, %v241_v28  ;;  %v6716_v28 = vpop.f32.mrf.mxu0 }
 0x12d   :  { %2373 = vadd.xlane.f32.xlu0 %v2372_v12  ;;  %2379 = vadd.xlane.f32.xlu2 %v2378_v5  ;;  %5799 = vpow2.f32 %v2249_v15  ;;  %v174_v15 = vmul.f32 2.0, %v110_v32 }
 0x12e   :  { %5801 = vpow2.f32 %v2251_v3  ;;  %v2257_v3 = vmul.f32 1.442695, %v2179_v63 }
 0x12f   :  { %2376 = vadd.xlane.f32.xlu1 %v2375_v14  ;;  %5803 = vpow2.f32 %v2253_v54  ;;  %v2259_v14 = vmul.f32 1.442695, %v2180_v52  ;;  %5634 = vmatmul.msk.f32.vlgmr.msra.gmra.mxu3 %vm307_vm0, %v174_v15  ;;  %v242_v15 = vld [vmem:[#allocation2 + $0x1f8] sm:$0xff] }
 0x130   :  { %v2014_v21 = vpop.xlane.xlu2 %2013  ;;  %5805 = vpow2.f32 %v2247_v17  ;;  %v2023_v5 = vpop.xlane.xlu0 %2022  ;;  %5641 = vmatpush.xpose.msk.msrb.mxu3 %vm307_vm0, %v242_v15 }
 0x131   :  { %v2178_v31 = vsub.f32 %v6424_v29, %v2014_v21  ;;  %v113_v21 = vld [vmem:[%s8322_s0 + $0x1f0] sm:$0xff]  ;;  %v2181_v27 = vsub.f32 %v6443_v38, %v2023_v5  ;;  %v107_v5 = vld [vmem:[%s8322_s0 + $0x1c0] sm:$0xff] }
 0x132   :  { %v177_v11 = vmul.f32 2.0, %v113_v21  ;;  %v2026_v61 = vpop.xlane.xlu1 %2025 }
 0x133   :  { %v6661_v29 = vpop.eup %5799  ;;  %v2255_v45 = vmul.f32 1.442695, %v2178_v31  ;;  %v2261_v54 = vmul.f32 1.442695, %v2181_v27  ;;  %v2182_v52 = vsub.f32 %v6448_v41, %v2026_v61  ;;  %v114_v61 = vld [vmem:[%s8322_s0 + $0x1f8] sm:$0xff] }
 0x134   :  { %v6664_v51 = vpop.eup %5801  ;;  %v2387_v12 = vsel %vm1972_vm1, %v6661_v29, 0.0  ;;  %5640 = vmatmul.msk.f32.vlgmr.msrb.gmra.mxu2 %vm307_vm0, %v177_v11  ;;  %v6720_v11 = vpop.f32.mrf.mxu2 }
 0x135   :  { %2103 = vmax.xlane.f32.xlu0 %v2102_v18  ;;  %2085 = vmax.xlane.f32.xlu2 %v2084_v22  ;;  %5807 = vpow2.f32 %v2255_v45  ;;  %v2390_v13 = vsel %vm1972_vm1, %v6664_v51, 0.0  ;;  %v6682_v18 = vpop.eup %5803  ;;  %v6699_v45 = vpop.f32.mrf.mxu1 }
 0x136   :  { %v6685_v22 = vpop.eup %5805  ;;  %5809 = vpow2.f32 %v2259_v14  ;;  %v2393_v8 = vsel %vm1972_vm1, %v6682_v18, 0.0  ;;  %v2096_v4 = vsel %vm1972_vm1, %v6699_v45, -inf  ;;  %v2263_v14 = vmul.f32 1.442695, %v2182_v52 }
 0x137   :  { %2382 = vadd.xlane.f32.xlu1 %v2381_v40  ;;  %5811 = vpow2.f32 %v2257_v3  ;;  %v2384_v40 = vsel %vm1972_vm1, %v6685_v22, 0.0 }
 0x138   :  { %v2029_v31 = vpop.xlane.xlu2 %2028  ;;  %v2032_v17 = vpop.xlane.xlu0 %2031  ;;  %5813 = vpow2.f32 %v2261_v54 }
 0x139   :  { %v2184_v63 = vsub.f32 %v6460_v48, %v2032_v17  ;;  %v171_v48 = vmul.f32 2.0, %v107_v5  ;;  %5815 = vpow2.f32 %v2263_v14  ;;  %v178_v17 = vmul.f32 2.0, %v114_v61 }
 0x13b   :  { %v6687_v23 = vpop.eup %5807  ;;  %v2267_v3 = vmul.f32 1.442695, %v2184_v63  ;;  %5642 = vmatmul.msk.f32.vlgmr.msrb.gmra.mxu3 %vm307_vm0, %v178_v17  ;;  %v111_v17 = vld [vmem:[%s8322_s0 + $0x1e0] sm:$0xff] }
 0x13c   :  { %v2396_v20 = vsel %vm1972_vm1, %v6687_v23, 0.0  ;;  %v6697_v34 = vpop.eup %5809 }
 0x13d   :  { %2388 = vadd.xlane.f32.xlu0 %v2387_v12  ;;  %2100 = vmax.xlane.f32.xlu2 %v2099_v55  ;;  %v6701_v38 = vpop.eup %5811  ;;  %v235_v55 = vld [vmem:[#allocation2 + $0x1c0] sm:$0xff]  ;;  %v2402_v12 = vsel %vm1972_vm1, %v6697_v34, 0.0  ;;  %5817 = vpow2.f32 %v2267_v3  ;;  %v6753_v3 = vpop.f32.mrf.mxu3 }
 0x13e   :  { %5627 = vmatpush.xpose.msk.msra.mxu0 %vm307_vm0, %v235_v55  ;;  %v2399_v41 = vsel %vm1972_vm1, %v6701_v38, 0.0 }
 0x13f   :  { %2391 = vadd.xlane.f32.xlu1 %v2390_v13  ;;  %v2183_v13 = vsub.f32 %v6445_v39, %v2029_v31  ;;  %v6722_v39 = vpop.eup %5813  ;;  %v2093_v31 = vsel %vm1972_vm1, %v6716_v28, -inf }
 0x140   :  { %v2035_v32 = vpop.xlane.xlu2 %2034  ;;  %v2038_v27 = vpop.xlane.xlu0 %2037  ;;  %v2405_v54 = vsel %vm1972_vm1, %v6722_v39, 0.0 }
 0x141   :  { %5628 = vmatmul.msk.f32.vlgmr.msra.gmra.mxu0 %vm307_vm0, %v171_v48  ;;  %v2265_v21 = vmul.f32 1.442695, %v2183_v13  ;;  %v6734_v55 = vpop.eup %5815  ;;  %v2186_v61 = vsub.f32 %v6477_v57, %v2038_v27 }
 0x142   :  { %v2408_v13 = vsel %vm1972_vm1, %v6734_v55, 0.0 }
 0x143   :  { %5819 = vpow2.f32 %v2265_v21  ;;  %v2271_v57 = vmul.f32 1.442695, %v2186_v61 }
 0x145   :  { %2394 = vadd.xlane.f32.xlu0 %v2393_v8  ;;  %2385 = vadd.xlane.f32.xlu2 %v2384_v40  ;;  %v2041_v8 = vpop.xlane.xlu1 %2040  ;;  %v2111_v40 = vsel %vm1972_vm1, %v6720_v11, -inf }
 0x147   :  { %2397 = vadd.xlane.f32.xlu1 %v2396_v20  ;;  %v2185_v20 = vsub.f32 %v6462_v49, %v2035_v32 }
 0x148   :  { %v2044_v52 = vpop.xlane.xlu2 %2043  ;;  %v6742_v5 = vpop.xlane.xlu0 %2052 }
 0x149   :  { %v2269_v63 = vmul.f32 1.442695, %v2185_v20  ;;  %v2114_v20 = vsel %vm1972_vm1, %v6753_v3, -inf }
 0x14b   :  { %5821 = vpow2.f32 %v2269_v63  ;;  %v175_v63 = vmul.f32 2.0, %v111_v17 }
 0x14d   :  { %2403 = vadd.xlane.f32.xlu0 %v2402_v12  ;;  %2400 = vadd.xlane.f32.xlu2 %v2399_v41  ;;  %v6737_v12 = vpop.eup %5817  ;;  %v2188_v41 = vsub.f32 %v6479_v59, %v2044_v52  ;;  %v2047_v48 = vpop.xlane.xlu1 %2046 }
 0x14e   :  { %v6739_v49 = vpop.eup %5819  ;;  %v2414_v32 = vsel %vm1972_vm1, %v6737_v12, 0.0 }
 0x14f   :  { %2097 = vmax.xlane.f32.xlu1 %v2096_v4  ;;  %v2187_v4 = vsub.f32 %v6465_v50, %v2041_v8  ;;  %v2411_v14 = vsel %vm1972_vm1, %v6739_v49, 0.0  ;;  %v6751_v50 = vpop.f32.mrf.mxu1  ;;  %v2275_v21 = vmul.f32 1.442695, %v2188_v41  ;;  %v6771_v41 = vpop.f32.mrf.mxu0 }
 0x150   :  { %v2108_v59 = vsel %vm1972_vm1, %v6751_v50, -inf }
 0x151   :  { %v2273_v15 = vmul.f32 1.442695, %v2187_v4  ;;  %v6757_v8 = vpop.eup %5821  ;;  %v2059_v4 = vpop.xlane.xlu0 %2058 }
 0x153   :  { %5823 = vpow2.f32 %v2273_v15 }
 0x154   :  { %5825 = vpow2.f32 %v2275_v21 }
 0x155   :  { %2094 = vmax.xlane.f32.xlu0 %v2093_v31  ;;  %2406 = vadd.xlane.f32.xlu2 %v2405_v54  ;;  %v2050_v31 = vpop.xlane.xlu2 %2049  ;;  %v239_v54 = vld [vmem:[#allocation2 + $0x1e0] sm:$0xff]  ;;  %v2056_v27 = vpop.xlane.xlu1 %2055 }
 0x156   :  { %5635 = vmatpush.xpose.msk.msrb.mxu0 %vm307_vm0, %v239_v54  ;;  %v2190_v52 = vsub.f32 %v6496_v9, %v2050_v31  ;;  %v2192_v21 = vsub.f32 %v6498_v10, %v2056_v27  ;;  %v2105_v31 = vsel %vm1972_vm1, %v6771_v41, -inf  ;;  %v112_v10 = vld [vmem:[%s8322_s0 + $0x1e8] sm:$0xff] }
 0x157   :  { %2112 = vmax.xlane.f32.xlu1 %v2111_v40  ;;  %v2189_v40 = vsub.f32 %v6482_v62, %v2047_v48  ;;  %v2417_v62 = vsel %vm1972_vm1, %v6757_v8, 0.0  ;;  %v176_v17 = vmul.f32 2.0, %v112_v10  ;;  %v244_v27 = vld [vmem:[#allocation5 + $0x8] sm:$0xff] }
 0x158   :  { %v2279_v48 = vmul.f32 1.442695, %v2190_v52  ;;  %v245_v52 = vld [vmem:[#allocation5 + $0x10] sm:$0xff] }
 0x159   :  { %5636 = vmatmul.msk.f32.vlgmr.msrb.gmra.mxu0 %vm307_vm0, %v175_v63 }
 0x15d   :  { %2409 = vadd.xlane.f32.xlu0 %v2408_v13  ;;  %2415 = vadd.xlane.f32.xlu2 %v2414_v32  ;;  %v2277_v13 = vmul.f32 1.442695, %v2189_v40  ;;  %v6773_v32 = vpop.eup %5823  ;;  %v2191_v40 = vsub.f32 %v6494_v7, %v6742_v5  ;;  %v2283_v5 = vmul.f32 1.442695, %v2192_v21  ;;  %v2193_v21 = vsub.f32 %v6514_v25, %v2059_v4 }
 0x15e   :  { %v6775_v15 = vpop.eup %5825  ;;  %v2423_v54 = vsel %vm1972_vm1, %v6773_v32, 0.0 }
 0x15f   :  { %2412 = vadd.xlane.f32.xlu1 %v2411_v14  ;;  %v243_v14 = vld [vmem:[#allocation5] sm:$0xff]  ;;  %5827 = vpow2.f32 %v2277_v13  ;;  %v2426_v7 = vsel %vm1972_vm1, %v6775_v15, 0.0  ;;  %v2281_v63 = vmul.f32 1.442695, %v2191_v40  ;;  %v3063_v13 = vpack.c.bf16 %v245_v52, %v245_v52 }
 0x160   :  { %v3061_v9 = vpack.c.bf16 %v243_v14, %v243_v14  ;;  %5829 = vpow2.f32 %v2271_v57 }
 0x161   :  { %5831 = vpow2.f32 %v2279_v48  ;;  %v3168_v48 = vsel %vm3128_vm2, %v3063_v13, 0 }
 0x162   :  { %v3130_v61 = vsel %vm3128_vm2, %v3061_v9, 0  ;;  %v3062_v9 = vpack.c.bf16 %v244_v27, %v244_v27  ;;  %5833 = vpow2.f32 %v2283_v5  ;;  %3177 = vmatpush.bf16.msra.mxu2 %v3168_v48  ;;  %v2285_v5 = vmul.f32 1.442695, %v2193_v21 }
 0x163   :  { %3139 = vmatpush.bf16.msra.mxu0 %v3130_v61  ;;  %5835 = vpow2.f32 %v2281_v63  ;;  %v2062_v61 = vpop.xlane.xlu1 %2061  ;;  %v6812_v63 = vpop.f32.mrf.mxu3 }
 0x164   :  { %v3149_v40 = vsel %vm3128_vm2, %v3062_v9, 0  ;;  %v2194_v52 = vsub.f32 %v6518_v30, %v2062_v61  ;;  %5837 = vpow2.f32 %v2285_v5  ;;  %v247_v61 = vld [vmem:[#allocation5 + $0x20] sm:$0xff] }
 0x165   :  { %2109 = vmax.xlane.f32.xlu0 %v2108_v59  ;;  %2115 = vmax.xlane.f32.xlu2 %v2114_v20  ;;  %v240_v59 = vld [vmem:[#allocation2 + $0x1e8] sm:$0xff]  ;;  %v6782_v20 = vpop.xlane.xlu2 %2064  ;;  %v6794_v57 = vpop.eup %5827 }
 0x166   :  { %5637 = vmatpush.xpose.msk.msrb.mxu1 %vm307_vm0, %v240_v59  ;;  %v6796_v14 = vpop.eup %5829  ;;  %v2429_v59 = vsel %vm1972_vm1, %v6794_v57, 0.0  ;;  %v2195_v30 = vsub.f32 %v6516_v26, %v6782_v20  ;;  %v2677_v20 = vld [vmem:[%s8325_s3] sm:$0xff] }
 0x167   :  { %2418 = vadd.xlane.f32.xlu1 %v2417_v62  ;;  %v2068_v62 = vpop.xlane.xlu0 %2067 }
 0x168   :  { %v2196_v27 = vsub.f32 %v6528_v35, %v2068_v62  ;;  %v2289_v5 = vmul.f32 1.442695, %v2195_v30  ;;  %v5643_v30 = vxor.u32 2147483648, %v2677_v20 }
 0x169   :  { %5638 = vmatmul.msk.f32.vlgmr.msrb.gmra.mxu1 %vm307_vm0, %v176_v17 }
 0x16a   :  { %3158 = vmatpush.bf16.msra.mxu1 %v3149_v40  ;;  %v2287_v40 = vmul.f32 1.442695, %v2194_v52  ;;  %v2291_v62 = vmul.f32 1.442695, %v2196_v27  ;;  %vm2743_vm3 = vcmp.ge.s32.totalorder %v5643_v30, 3435973837 }
 0x16b   :  { %v2077_v26 = vpop.xlane.xlu1 %2076 }
 0x16c   :  { %5839 = vpow2.f32 %v2287_v40 }
 0x16d   :  { %2424 = vadd.xlane.f32.xlu0 %v2423_v54  ;;  %2106 = vmax.xlane.f32.xlu2 %v2105_v31  ;;  %v6799_v31 = vpop.eup %5831  ;;  %v2420_v54 = vsel %vm1972_vm1, %v6796_v14, 0.0  ;;  %v2071_v10 = vpop.xlane.xlu2 %2070  ;;  %5841 = vpow2.f32 %v2291_v62 }
 0x16e   :  { %8332 = vst [vmem:[#allocation11_spill] sm:$0xff] %v6799_v31  ;;  %v2432_v17 = vsel %vm1972_vm1, %v6799_v31, 0.0  ;;  %v6809_v4 = vpop.eup %5833  ;;  %v250_v31 = vld [vmem:[#allocation5 + $0x38] sm:$0xff] }
 0x16f   :  { %2427 = vadd.xlane.f32.xlu1 %v2426_v7  ;;  %v246_v7 = vld [vmem:[#allocation5 + $0x18] sm:$0xff]  ;;  %v6814_v13 = vpop.eup %5835  ;;  %v6817_v48 = vpop.xlane.xlu0 %2073  ;;  %v2438_v21 = vsel %vm1972_vm1, %v6809_v4, 0.0  ;;  %v3068_v20 = vpack.c.bf16 %v250_v31, %v250_v31 }
 0x170   :  { %v3064_v25 = vpack.c.bf16 %v246_v7, %v246_v7  ;;  %8333 = vst [vmem:[#allocation12_spill] sm:$0xff] %v6814_v13  ;;  %v2435_v35 = vsel %vm1972_vm1, %v6814_v13, 0.0  ;;  %v3065_v7 = vpack.c.bf16 %v247_v61, %v247_v61  ;;  %v6834_v52 = vpop.eup %5837  ;;  %v248_v61 = vld [vmem:[#allocation5 + $0x28] sm:$0xff] }
 0x171   :  { %8336 = vst [vmem:[#allocation15_spill] sm:$0xff] %v6834_v52  ;;  %v3263_v31 = vsel %vm3128_vm2, %v3068_v20, 0 }
 0x172   :  { %v3187_v9 = vsel %vm3128_vm2, %v3064_v25, 0  ;;  %v6832_v25 = vpop.f32.mrf.mxu0  ;;  %v6847_v62 = vpop.eup %5839 }
 0x173   :  { %3196 = vmatpush.bf16.msra.mxu3 %v3187_v9  ;;  %8335 = vst [vmem:[#allocation14_spill] sm:$0xff] %v6832_v25  ;;  %v2117_v40 = vsel %vm1972_vm1, %v6832_v25, -inf }
 0x175   :  { %2430 = vadd.xlane.f32.xlu0 %v2429_v59  ;;  %2421 = vadd.xlane.f32.xlu2 %v2420_v54  ;;  %v2126_v59 = vsel %vm1972_vm1, %v6812_v63, -inf  ;;  %v6828_v54 = vpop.f32.mrf.mxu2 }
 0x176   :  { %8334 = vst [vmem:[#allocation13_spill] sm:$0xff] %v6828_v54  ;;  %v2123_v9 = vsel %vm1972_vm1, %v6828_v54, -inf }
 0x177   :  { %2433 = vadd.xlane.f32.xlu1 %v2432_v17  ;;  %v6830_v17 = vpop.xlane.xlu2 %2079  ;;  %3272 = vmatpush.bf16.msrb.mxu3 %v3263_v31 }
 0x17d   :  { %2439 = vadd.xlane.f32.xlu0 %v2438_v21  ;;  %2436 = vadd.xlane.f32.xlu2 %v2435_v35  ;;  %v3206_v21 = vsel %vm3128_vm2, %v3065_v7, 0  ;;  %v2441_v35 = vsel %vm1972_vm1, %v6834_v52, 0.0  ;;  %v6849_v7 = vpop.eup %5841  ;;  %v2678_v52 = vld [vmem:[%s8325_s3 + $0x8] sm:$0xff] }
 0x17e   :  { %3215 = vmatpush.bf16.msrb.mxu0 %v3206_v21  ;;  %v249_v21 = vld [vmem:[#allocation5 + $0x30] sm:$0xff] }
 0x17f   :  { %2127 = vmax.xlane.f32.xlu1 %v2126_v59  ;;  %v2197_v59 = vsub.f32 %v6542_v46, %v2071_v10  ;;  %v2679_v46 = vld [vmem:[%s8325_s3 + $0x10] sm:$0xff]  ;;  %v3067_v30 = vpack.c.bf16 %v249_v21, %v249_v21  ;;  %v6879_v21 = vpop.f32.mrf.mxu1 }
 0x180   :  { %v5645_v13 = vxor.u32 2147483648, %v2679_v46 }
 0x182   :  { %v2359_v27 = vpop.xlane.xlu0 %2358  ;;  %vm2749_vm4 = vcmp.ge.s32.totalorder %v5645_v13, 3435973837  ;;  %v251_v13 = vld [vmem:[#allocation5 + $0x40] sm:$0xff] }
 0x183   :  { %5843 = vrcp.f32 %v2359_v27  ;;  %v2293_v27 = vmul.f32 1.442695, %v2197_v59 }
 0x184   :  { %5845 = vpow2.f32 %v2289_v5  ;;  %v3066_v5 = vpack.c.bf16 %v248_v61, %v248_v61 }
 0x185   :  { %2124 = vmax.xlane.f32.xlu0 %v2123_v9  ;;  %2442 = vadd.xlane.f32.xlu2 %v2441_v35  ;;  %v2199_v35 = vsub.f32 %v6530_v36, %v2077_v26  ;;  %v2444_v36 = vsel %vm1972_vm1, %v6847_v62, 0.0  ;;  %v2200_v26 = vsub.f32 %v6555_v60, %v6830_v17  ;;  %v2680_v17 = vld [vmem:[%s8325_s3 + $0x18] sm:$0xff] }
 0x186   :  { %v3225_v25 = vsel %vm3128_vm2, %v3066_v5, 0  ;;  %v5644_v5 = vxor.u32 2147483648, %v2678_v52 }
 0x187   :  { %2118 = vmax.xlane.f32.xlu1 %v2117_v40  ;;  %3234 = vmatpush.bf16.msrb.mxu1 %v3225_v25  ;;  %v3244_v25 = vsel %vm3128_vm2, %v3067_v30, 0  ;;  %v2297_v20 = vmul.f32 1.442695, %v2199_v35  ;;  %v2299_v35 = vmul.f32 1.442695, %v2200_v26 }
 0x188   :  { %v2365_v10 = vpop.xlane.xlu2 %2364  ;;  %3253 = vmatpush.bf16.msrb.mxu2 %v3244_v25  ;;  %vm2746_vm5 = vcmp.ge.s32.totalorder %v5644_v5, 3435973837  ;;  %v5646_v25 = vxor.u32 2147483648, %v2680_v17  ;;  %v6896_v17 = vpop.f32.mrf.mxu2 }
 0x189   :  { %v5844_v9 = vpop.eup %5843  ;;  %5847 = vrcp.f32 %v2365_v10 }
 0x18a   :  { %v2613_v40 = vmul.f32 %v5844_v9, %v6573_v33  ;;  %v2362_v59 = vpop.xlane.xlu1 %2361  ;;  %v6860_v54 = vpop.eup %5845  ;;  %v2450_v33 = vsel %vm1972_vm1, %v6849_v7, 0.0  ;;  %vm2752_vm6 = vcmp.ge.s32.totalorder %v5646_v25, 3435973837  ;;  %v2135_v25 = vsel %vm1972_vm1, %v6896_v17, -inf }
 0x18b   :  { %5849 = vrcp.f32 %v2362_v59  ;;  %v6873_v9 = vpop.f32.mrf.mxu3  ;;  %v2198_v59 = vsub.f32 %v6544_v47, %v6817_v48  ;;  %v2120_v47 = vsel %vm1972_vm1, %v6879_v21, -inf }
 0x18c   :  { %5851 = vpow2.f32 %v2293_v27  ;;  %v2933_v61 = vsel %vm2743_vm3, %v2613_v40, 0.0  ;;  %v2447_v27 = vsel %vm1972_vm1, %v6860_v54, 0.0 }
 0x18d   :  { %v2997_v10 = vpack.c.bf16 %v2933_v61, %v2933_v61  ;;  %2445 = vadd.xlane.f32.xlu0 %v2444_v36  ;;  %2451 = vadd.xlane.f32.xlu2 %v2450_v33  ;;  %v2138_v36 = vsel %vm1972_vm1, %v6873_v9, -inf  ;;  %v3069_v33 = vpack.c.bf16 %v251_v13, %v251_v13  ;;  %v2295_v5 = vmul.f32 1.442695, %v2198_v59  ;;  %v254_v13 = vld [vmem:[#allocation5 + $0x58] sm:$0xff] }
 0x18f   :  { %v5848_v46 = vpop.eup %5847  ;;  %5707 = vmatmul.msk.bf16.vlgmr.msra.gmra.mxu0 %vm1972_vm1, %v2997_v10  ;;  %2448 = vadd.xlane.f32.xlu1 %v2447_v27  ;;  %v3282_v26 = vsel %vm3128_vm2, %v3069_v33, 0 }
 0x190   :  { %v2615_v60 = vmul.f32 %v5848_v46, %v6578_v43  ;;  %v2368_v52 = vpop.xlane.xlu0 %2367  ;;  %3291 = vmatpush.bf16.msra.mxu0 %v3282_v26 }
 0x191   :  { %v5850_v40 = vpop.eup %5849  ;;  %5853 = vrcp.f32 %v2368_v52 }
 0x192   :  { %v6883_v31 = vpop.eup %5851  ;;  %v2935_v30 = vsel %vm2749_vm4, %v2615_v60, 0.0  ;;  %v2614_v43 = vmul.f32 %v5850_v40, %v6582_v58  ;;  %v2092_v61 = vpop.xlane.xlu1 %2091  ;;  %5855 = vpow2.f32 %v2297_v20  ;;  %v2681_v40 = vld [vmem:[%s8325_s3 + $0x20] sm:$0xff] }
 0x193   :  { %v2999_v10 = vpack.c.bf16 %v2935_v30, %v2935_v30  ;;  %5857 = vpow2.f32 %v2299_v35  ;;  %v2453_v58 = vsel %vm1972_vm1, %v6883_v31, 0.0  ;;  %v253_v35 = vld [vmem:[#allocation5 + $0x50] sm:$0xff]  ;;  %v5647_v26 = vxor.u32 2147483648, %v2681_v40 }
 0x194   :  { %v2934_v48 = vsel %vm2746_vm5, %v2614_v43, 0.0  ;;  %5859 = vpow2.f32 %v2295_v5 }
 0x195   :  { %v2998_v27 = vpack.c.bf16 %v2934_v48, %v2934_v48  ;;  %5709 = vmatmul.msk.bf16.vlgmr.msra.gmra.mxu2 %vm1972_vm1, %v2999_v10  ;;  %2139 = vmax.xlane.f32.xlu0 %v2138_v36  ;;  %v3071_v36 = vpack.c.bf16 %v253_v35, %v253_v35  ;;  %vm2755_vm7 = vcmp.ge.s32.totalorder %v5647_v26, 3435973837 }
 0x196   :  { %2121 = vmax.xlane.f32.xlu2 %v2120_v47  ;;  %v3072_v47 = vpack.c.bf16 %v254_v13, %v254_v13 }
 0x197   :  { %v5854_v46 = vpop.eup %5853  ;;  %5708 = vmatmul.msk.bf16.vlgmr.msra.gmra.mxu1 %vm1972_vm1, %v2998_v27  ;;  %2454 = vadd.xlane.f32.xlu1 %v2453_v58  ;;  %v3320_v27 = vsel %vm3128_vm2, %v3071_v36, 0  ;;  %v2204_v58 = vsub.f32 %v6591_v0, %v2092_v61  ;;  %v2682_v0 = vld [vmem:[%s8325_s3 + $0x28] sm:$0xff] }
 0x198   :  { %v2616_v20 = vmul.f32 %v5854_v46, %v6594_v2  ;;  %v2089_v60 = vpop.xlane.xlu0 %2088  ;;  %v6898_v52 = vpop.eup %5855  ;;  %3329 = vmatpush.bf16.msra.mxu2 %v3320_v27  ;;  %v5648_v26 = vxor.u32 2147483648, %v2682_v0 }
 0x199   :  { %v2371_v59 = vpop.xlane.xlu2 %2370  ;;  %v6903_v33 = vpop.eup %5857  ;;  %v2203_v48 = vsub.f32 %v6611_v24, %v2089_v60  ;;  %v2459_v5 = vsel %vm1972_vm1, %v6898_v52, 0.0  ;;  %v252_v60 = vld [vmem:[#allocation5 + $0x48] sm:$0xff]  ;;  %v2307_v13 = vmul.f32 1.442695, %v2204_v58 }
 0x19a   :  { %v2936_v30 = vsel %vm2752_vm6, %v2616_v20, 0.0  ;;  %5861 = vrcp.f32 %v2371_v59  ;;  %v2083_v43 = vpop.xlane.xlu1 %2082  ;;  %v2462_v20 = vsel %vm1972_vm1, %v6903_v33, 0.0  ;;  %v6917_v24 = vpop.eup %5859  ;;  %v3070_v35 = vpack.c.bf16 %v252_v60, %v252_v60 }
 0x19b   :  { %v3000_v2 = vpack.c.bf16 %v2936_v30, %v2936_v30  ;;  %v2201_v10 = vsub.f32 %v6614_v37, %v2083_v43  ;;  %v3339_v37 = vsel %vm3128_vm2, %v3072_v47, 0  ;;  %v2305_v59 = vmul.f32 1.442695, %v2203_v48  ;;  %v2684_v43 = vld [vmem:[%s8325_s3 + $0x38] sm:$0xff] }
 0x19c   :  { %v3301_v47 = vsel %vm3128_vm2, %v3070_v35, 0  ;;  %v5650_v27 = vxor.u32 2147483648, %v2684_v43  ;;  %vm2758_vm8 = vcmp.ge.s32.totalorder %v5648_v26, 3435973837  ;;  %v258_v26 = vld [vmem:[#allocation5 + $0x78] sm:$0xff] }
 0x19d   :  { %v2301_v46 = vmul.f32 1.442695, %v2201_v10  ;;  %5710 = vmatmul.msk.bf16.vlgmr.msra.gmra.mxu3 %vm1972_vm1, %v3000_v2  ;;  %2460 = vadd.xlane.f32.xlu0 %v2459_v5  ;;  %v255_v2 = vld [vmem:[#allocation5 + $0x60] sm:$0xff]  ;;  %v2683_v10 = vld [vmem:[%s8325_s3 + $0x30] sm:$0xff] }
 0x19e   :  { %2136 = vmax.xlane.f32.xlu2 %v2135_v25  ;;  %3348 = vmatpush.bf16.msra.mxu3 %v3339_v37  ;;  %v2456_v37 = vsel %vm1972_vm1, %v6917_v24, 0.0  ;;  %vm6939_vm9 = vcmp.ge.s32.totalorder %v5650_v27, 3435973837 }
 0x19f   :  { %5863 = vpow2.f32 %v2301_v46  ;;  %2463 = vadd.xlane.f32.xlu1 %v2462_v20  ;;  %3310 = vmatpush.bf16.msra.mxu1 %v3301_v47  ;;  %v5649_v46 = vxor.u32 2147483648, %v2683_v10 }
 0x1a0   :  { %v5862_v40 = vpop.eup %5861  ;;  %v2374_v61 = vpop.xlane.xlu0 %2373 }
 0x1a1   :  { %v2617_v30 = vmul.f32 %v5862_v40, %v6619_v42  ;;  %5865 = vrcp.f32 %v2374_v61  ;;  %v2380_v36 = vpop.xlane.xlu2 %2379  ;;  %v3073_v42 = vpack.c.bf16 %v255_v2, %v255_v2  ;;  %vm2761_vm10 = vcmp.ge.s32.totalorder %v5649_v46, 3435973837 }
 0x1a2   :  { %5867 = vrcp.f32 %v2380_v36  ;;  %v2377_v25 = vpop.xlane.xlu1 %2376  ;;  %v257_v36 = vld [vmem:[#allocation5 + $0x70] sm:$0xff] }
 0x1a3   :  { %v2937_v48 = vsel %vm2755_vm7, %v2617_v30, 0.0  ;;  %5869 = vrcp.f32 %v2377_v25  ;;  %v3358_v20 = vsel %vm3128_vm2, %v3073_v42, 0 }
 0x1a4   :  { %5871 = vpow2.f32 %v2305_v59  ;;  %v3001_v5 = vpack.c.bf16 %v2937_v48, %v2937_v48 }
 0x1a5   :  { %v6930_v58 = vpop.eup %5863  ;;  %5873 = vpow2.f32 %v2307_v13 }
 0x1a6   :  { %5711 = vmatmul.msk.bf16.vlgmr.msrb.gmra.mxu0 %vm1972_vm1, %v3001_v5  ;;  %2457 = vadd.xlane.f32.xlu2 %v2456_v37  ;;  %v2465_v60 = vsel %vm1972_vm1, %v6930_v58, 0.0 }
 0x1a7   :  { %v5866_v40 = vpop.eup %5865  ;;  %2466 = vadd.xlane.f32.xlu0 %v2465_v60  ;;  %3367 = vmatpush.bf16.msrb.mxu0 %v3358_v20  ;;  %v3075_v20 = vpack.c.bf16 %v257_v36, %v257_v36 }
 0x1a8   :  { %v5868_v59 = vpop.eup %5867  ;;  %v2618_v0 = vmul.f32 %v5866_v40, %v6626_v1  ;;  %v6943_v35 = vpop.xlane.xlu0 %2103  ;;  %v2685_v1 = vld [vmem:[%s8325_s3 + $0x40] sm:$0xff]  ;;  %v3076_v40 = vpack.c.bf16 %v258_v26, %v258_v26  ;;  %v2688_v26 = vld [vmem:[%s8325_s3 + $0x58] sm:$0xff] }
 0x1a9   :  { %v5870_v13 = vpop.eup %5869  ;;  %v2620_v30 = vmul.f32 %v5868_v59, %v6628_v53  ;;  %v2086_v43 = vpop.xlane.xlu2 %2085  ;;  %v5651_v60 = vxor.u32 2147483648, %v2685_v1  ;;  %v259_v1 = vld [vmem:[#allocation5 + $0x80] sm:$0xff] }
 0x1aa   :  { %v6946_v2 = vpop.eup %5871  ;;  %v2938_v10 = vsel %vm2758_vm8, %v2618_v0, 0.0  ;;  %v2619_v25 = vmul.f32 %v5870_v13, %v6630_v56  ;;  %v2202_v47 = vsub.f32 %v6642_v16, %v2086_v43  ;;  %v2383_v48 = vpop.xlane.xlu1 %2382  ;;  %v3396_v0 = vsel %vm3128_vm2, %v3075_v20, 0  ;;  %v256_v13 = vld [vmem:[#allocation5 + $0x68] sm:$0xff] }
 0x1ab   :  { %v6953_v42 = vpop.eup %5873  ;;  %v3002_v5 = vpack.c.bf16 %v2938_v10, %v2938_v10  ;;  %v2940_v53 = vsel %vm6939_vm9, %v2620_v30, 0.0  ;;  %5875 = vrcp.f32 %v2383_v48  ;;  %v2471_v16 = vsel %vm1972_vm1, %v6946_v2, 0.0  ;;  %v2687_v30 = vld [vmem:[%s8325_s3 + $0x50] sm:$0xff] }
 0x1ac   :  { %v3004_v27 = vpack.c.bf16 %v2940_v53, %v2940_v53  ;;  %v2939_v46 = vsel %vm2761_vm10, %v2619_v25, 0.0  ;;  %v2303_v37 = vmul.f32 1.442695, %v2202_v47  ;;  %v2474_v59 = vsel %vm1972_vm1, %v6953_v42, 0.0  ;;  %v6969_v47 = vpop.f32.mrf.mxu0 }
 0x1ad   :  { %v3003_v56 = vpack.c.bf16 %v2939_v46, %v2939_v46  ;;  %5712 = vmatmul.msk.bf16.vlgmr.msrb.gmra.mxu1 %vm1972_vm1, %v3002_v5  ;;  %v3415_v61 = vsel %vm3128_vm2, %v3076_v40, 0  ;;  %v3074_v36 = vpack.c.bf16 %v256_v13, %v256_v13  ;;  %vm2767_vm11 = vcmp.ge.s32.totalorder %v5651_v60, 3435973837 }
 0x1ae   :  { %5877 = vpow2.f32 %v2303_v37  ;;  %5714 = vmatmul.msk.bf16.vlgmr.msrb.gmra.mxu3 %vm1972_vm1, %v3004_v27  ;;  %2472 = vadd.xlane.f32.xlu2 %v2471_v16  ;;  %v3077_v27 = vpack.c.bf16 %v259_v1, %v259_v1  ;;  %v5653_v46 = vxor.u32 2147483648, %v2687_v30  ;;  %v5654_v16 = vxor.u32 2147483648, %v2688_v26  ;;  %v2689_v30 = vld [vmem:[%s8325_s3 + $0x60] sm:$0xff]  ;;  %v2686_v1 = vld [vmem:[%s8325_s3 + $0x48] sm:$0xff]  ;;  %v261_v26 = vld [vmem:[#allocation5 + $0x90] sm:$0xff] }
 0x1af   :  { %5713 = vmatmul.msk.bf16.vlgmr.msrb.gmra.mxu2 %vm1972_vm1, %v3003_v56  ;;  %2475 = vadd.xlane.f32.xlu0 %v2474_v59  ;;  %v3377_v53 = vsel %vm3128_vm2, %v3074_v36, 0  ;;  %v2129_v56 = vsel %vm1972_vm1, %v6969_v47, -inf  ;;  %v6993_v36 = vpop.f32.mrf.mxu1 }
 0x1b0   :  { %v2389_v43 = vpop.xlane.xlu0 %2388  ;;  %3405 = vmatpush.bf16.msrb.mxu2 %v3396_v0  ;;  %3424 = vmatpush.bf16.msrb.mxu3 %v3415_v61  ;;  %v3434_v40 = vsel %vm3128_vm2, %v3077_v27, 0  ;;  %vm6983_vm12 = vcmp.ge.s32.totalorder %v5653_v46, 3435973837  ;;  %vm2776_vm13 = vcmp.ge.s32.totalorder %v5654_v16, 3435973837  ;;  %v2132_v27 = vsel %vm1972_vm1, %v6993_v36, -inf }
 0x1b1   :  { %v5876_v10 = vpop.eup %5875  ;;  %5879 = vrcp.f32 %v2389_v43  ;;  %v2101_v25 = vpop.xlane.xlu2 %2100  ;;  %3386 = vmatpush.bf16.msrb.mxu1 %v3377_v53  ;;  %v5655_v53 = vxor.u32 2147483648, %v2689_v30  ;;  %v3079_v46 = vpack.c.bf16 %v261_v26, %v261_v26 }
 0x1b2   :  { %v2621_v48 = vmul.f32 %v5876_v10, %v6646_v6  ;;  %v2392_v5 = vpop.xlane.xlu1 %2391  ;;  %v2207_v13 = vsub.f32 %v6659_v44, %v2101_v25  ;;  %v7014_v30 = vpop.f32.mrf.mxu2 }
 0x1b3   :  { %5881 = vrcp.f32 %v2392_v5  ;;  %vm7005_vm14 = vcmp.ge.s32.totalorder %v5655_v53, 3435973837  ;;  %v263_v53 = vld [vmem:[#allocation5 + $0xa0] sm:$0xff] }
 0x1b4   :  { %v6976_v37 = vpop.eup %5877  ;;  %v2941_v20 = vsel %vm2767_vm11, %v2621_v48, 0.0 }
 0x1b5   :  { %v3005_v60 = vpack.c.bf16 %v2941_v20, %v2941_v20  ;;  %v2468_v6 = vsel %vm1972_vm1, %v6976_v37, 0.0  ;;  %v2313_v20 = vmul.f32 1.442695, %v2207_v13  ;;  %v2692_v13 = vld [vmem:[%s8325_s3 + $0x78] sm:$0xff] }
 0x1b6   :  { %2469 = vadd.xlane.f32.xlu1 %v2468_v6 }
 0x1b7   :  { %v5880_v59 = vpop.eup %5879  ;;  %5715 = vmatmul.msk.bf16.vlgmr.msra.gmra.mxu0 %vm1972_vm1, %v3005_v60  ;;  %2130 = vmax.xlane.f32.xlu0 %v2129_v56  ;;  %v5652_v60 = vxor.u32 2147483648, %v2686_v1 }
 0x1b8   :  { %v2623_v61 = vmul.f32 %v5880_v59, %v6661_v29  ;;  %v2395_v43 = vpop.xlane.xlu0 %2394  ;;  %3443 = vmatpush.bf16.msra.mxu0 %v3434_v40  ;;  %v262_v29 = vld [vmem:[#allocation5 + $0x98] sm:$0xff]  ;;  %v3472_v59 = vsel %vm3128_vm2, %v3079_v46, 0  ;;  %v5658_v46 = vxor.u32 2147483648, %v2692_v13 }
 0x1b9   :  { %v5882_v10 = vpop.eup %5881  ;;  %5883 = vrcp.f32 %v2395_v43  ;;  %v2386_v48 = vpop.xlane.xlu2 %2385  ;;  %v3080_v16 = vpack.c.bf16 %v262_v29, %v262_v29  ;;  %v260_v43 = vld [vmem:[#allocation5 + $0x88] sm:$0xff]  ;;  %vm2770_vm15 = vcmp.ge.s32.totalorder %v5652_v60, 3435973837  ;;  %v3081_v60 = vpack.c.bf16 %v263_v53, %v263_v53  ;;  %v265_v53 = vld [vmem:[#allocation5 + $0xb0] sm:$0xff] }
 0x1ba   :  { %v2943_v44 = vsel %vm6983_vm12, %v2623_v61, 0.0  ;;  %v2624_v25 = vmul.f32 %v5882_v10, %v6664_v51  ;;  %5885 = vrcp.f32 %v2386_v48  ;;  %v2398_v5 = vpop.xlane.xlu1 %2397  ;;  %v3078_v26 = vpack.c.bf16 %v260_v43, %v260_v43  ;;  %v264_v43 = vld [vmem:[#allocation5 + $0xa8] sm:$0xff] }
 0x1bb   :  { %v3007_v6 = vpack.c.bf16 %v2943_v44, %v2943_v44  ;;  %v3491_v0 = vsel %vm3128_vm2, %v3080_v16, 0  ;;  %5887 = vpow2.f32 %v2313_v20  ;;  %v2691_v44 = vld [vmem:[%s8325_s3 + $0x70] sm:$0xff]  ;;  %v2147_v20 = vsel %vm1972_vm1, %v7014_v30, -inf }
 0x1bc   :  { %v2944_v56 = vsel %vm2776_vm13, %v2624_v25, 0.0  ;;  %vm7036_vm3 = vcmp.ge.s32.totalorder %v5658_v46, 3435973837 }
 0x1bd   :  { %v3008_v40 = vpack.c.bf16 %v2944_v56, %v2944_v56 }
 0x1be   :  { %2133 = vmax.xlane.f32.xlu1 %v2132_v27 }
 0x1bf   :  { %v5884_v61 = vpop.eup %5883  ;;  %5717 = vmatmul.msk.bf16.vlgmr.msra.gmra.mxu2 %vm1972_vm1, %v3007_v6  ;;  %5718 = vmatmul.msk.bf16.vlgmr.msra.gmra.mxu3 %vm1972_vm1, %v3008_v40  ;;  %v5657_v6 = vxor.u32 2147483648, %v2691_v44  ;;  %v3453_v40 = vsel %vm3128_vm2, %v3078_v26, 0 }
 0x1c0   :  { %v5886_v10 = vpop.eup %5885  ;;  %v2625_v1 = vmul.f32 %v5884_v61, %v6682_v18  ;;  %v2404_v48 = vpop.xlane.xlu0 %2403  ;;  %3481 = vmatpush.bf16.msra.mxu2 %v3472_v59  ;;  %3500 = vmatpush.bf16.msra.mxu3 %v3491_v0  ;;  %v3510_v61 = vsel %vm3128_vm2, %v3081_v60, 0 }
 0x1c1   :  { %v2622_v29 = vmul.f32 %v5886_v10, %v6685_v22  ;;  %5889 = vrcp.f32 %v2404_v48  ;;  %v2401_v25 = vpop.xlane.xlu2 %2400  ;;  %v7028_v51 = vpop.eup %5887  ;;  %vm7042_vm4 = vcmp.ge.s32.totalorder %v5657_v6, 3435973837 }
 0x1c2   :  { %v2945_v27 = vsel %vm7005_vm14, %v2625_v1, 0.0  ;;  %5891 = vrcp.f32 %v2401_v25  ;;  %v2098_v18 = vpop.xlane.xlu1 %2097 }
 0x1c3   :  { %v2942_v56 = vsel %vm2770_vm15, %v2622_v29, 0.0  ;;  %5893 = vrcp.f32 %v2398_v5  ;;  %v2206_v22 = vsub.f32 %v6699_v45, %v2098_v18  ;;  %v3009_v59 = vpack.c.bf16 %v2945_v27, %v2945_v27  ;;  %v2690_v45 = vld [vmem:[%s8325_s3 + $0x68] sm:$0xff]  ;;  %v2693_v29 = vld [vmem:[%s8325_s3 + $0x80] sm:$0xff]  ;;  %v266_v27 = vld [vmem:[#allocation5 + $0xb8] sm:$0xff] }
 0x1c4   :  { %v3006_v16 = vpack.c.bf16 %v2942_v56, %v2942_v56  ;;  %v2208_v5 = vsub.f32 %v6640_v19, %v6943_v35  ;;  %v5656_v46 = vxor.u32 2147483648, %v2690_v45  ;;  %v3084_v6 = vpack.c.bf16 %v266_v27, %v266_v27 }
 0x1c5   :  { %v2311_v0 = vmul.f32 1.442695, %v2206_v22 }
 0x1c6   :  { %5716 = vmatmul.msk.bf16.vlgmr.msra.gmra.mxu1 %vm1972_vm1, %v3006_v16  ;;  %2148 = vmax.xlane.f32.xlu1 %v2147_v20  ;;  %v3083_v20 = vpack.c.bf16 %v265_v53, %v265_v53  ;;  %v2315_v56 = vmul.f32 1.442695, %v2208_v5  ;;  %v5659_v16 = vxor.u32 2147483648, %v2693_v29  ;;  %vm7061_vm5 = vcmp.ge.s32.totalorder %v5656_v46, 3435973837  ;;  %v2695_v53 = vld [vmem:[%s8325_s3 + $0x90] sm:$0xff]  ;;  %v7084_v46 = vpop.f32.mrf.mxu1 }
 0x1c7   :  { %v5890_v13 = vpop.eup %5889  ;;  %5895 = vpow2.f32 %v2311_v0  ;;  %5719 = vmatmul.msk.bf16.vlgmr.msrb.gmra.mxu0 %vm1972_vm1, %v3009_v59  ;;  %3462 = vmatpush.bf16.msra.mxu1 %v3453_v40  ;;  %v3567_v45 = vsel %vm3128_vm2, %v3084_v6, 0 }
 0x1c8   :  { %v5892_v10 = vpop.eup %5891  ;;  %v2628_v1 = vmul.f32 %v5890_v13, %v6697_v34  ;;  %v2095_v19 = vpop.xlane.xlu0 %2094  ;;  %3519 = vmatpush.bf16.msrb.mxu0 %v3510_v61  ;;  %v3548_v61 = vsel %vm3128_vm2, %v3083_v20, 0  ;;  %vm7071_vm6 = vcmp.ge.s32.totalorder %v5659_v16, 3435973837  ;;  %v5661_v16 = vxor.u32 2147483648, %v2695_v53 }
 0x1c9   :  { %v5894_v35 = vpop.eup %5893  ;;  %v2627_v26 = vmul.f32 %v5892_v10, %v6701_v38  ;;  %v2407_v44 = vpop.xlane.xlu2 %2406  ;;  %v2205_v25 = vsub.f32 %v6716_v28, %v2095_v19  ;;  %v2483_v28 = vsel %vm1972_vm1, %v7028_v51, 0.0  ;;  %v3082_v19 = vpack.c.bf16 %v264_v43, %v264_v43  ;;  %v2697_v43 = vld [vmem:[%s8325_s3 + $0xa0] sm:$0xff] }
 0x1ca   :  { %v2948_v34 = vsel %vm7036_vm3, %v2628_v1, 0.0  ;;  %5897 = vrcp.f32 %v2407_v44  ;;  %v2113_v18 = vpop.xlane.xlu1 %2112  ;;  %v2626_v60 = vmul.f32 %v5894_v35, %v6687_v23  ;;  %v267_v44 = vld [vmem:[#allocation5 + $0xc0] sm:$0xff]  ;;  %vm2797_vm8 = vcmp.ge.s32.totalorder %v5661_v16, 3435973837 }
 0x1cb   :  { %v2947_v38 = vsel %vm7042_vm4, %v2627_v26, 0.0  ;;  %v2309_v22 = vmul.f32 1.442695, %v2205_v25  ;;  %v3012_v59 = vpack.c.bf16 %v2948_v34, %v2948_v34  ;;  %v2211_v5 = vsub.f32 %v6720_v11, %v2113_v18  ;;  %v2696_v11 = vld [vmem:[%s8325_s3 + $0x98] sm:$0xff] }
 0x1cc   :  { %v3011_v0 = vpack.c.bf16 %v2947_v38, %v2947_v38  ;;  %v2946_v35 = vsel %vm7061_vm5, %v2626_v60, 0.0  ;;  %v5662_v20 = vxor.u32 2147483648, %v2696_v11 }
 0x1cd   :  { %v7058_v40 = vpop.eup %5895  ;;  %5899 = vpow2.f32 %v2309_v22  ;;  %v2321_v25 = vmul.f32 1.442695, %v2211_v5  ;;  %v3529_v22 = vsel %vm3128_vm2, %v3082_v19, 0 }
 0x1ce   :  { %2484 = vadd.xlane.f32.xlu1 %v2483_v28  ;;  %v2480_v23 = vsel %vm1972_vm1, %v7058_v40, 0.0  ;;  %5901 = vpow2.f32 %v2315_v56  ;;  %v3010_v56 = vpack.c.bf16 %v2946_v35, %v2946_v35  ;;  %v2144_v28 = vsel %vm1972_vm1, %v7084_v46, -inf  ;;  %v270_v35 = vld [vmem:[#allocation5 + $0xd8] sm:$0xff] }
 0x1cf   :  { %5721 = vmatmul.msk.bf16.vlgmr.msrb.gmra.mxu2 %vm1972_vm1, %v3011_v0  ;;  %5722 = vmatmul.msk.bf16.vlgmr.msrb.gmra.mxu3 %vm1972_vm1, %v3012_v59  ;;  %v2694_v0 = vld [vmem:[%s8325_s3 + $0x88] sm:$0xff]  ;;  %vm2800_vm7 = vcmp.ge.s32.totalorder %v5662_v20, 3435973837 }
 0x1d0   :  { %v5898_v10 = vpop.eup %5897  ;;  %2481 = vadd.xlane.f32.xlu0 %v2480_v23  ;;  %v2410_v48 = vpop.xlane.xlu0 %2409  ;;  %3557 = vmatpush.bf16.msrb.mxu2 %v3548_v61  ;;  %v5660_v11 = vxor.u32 2147483648, %v2694_v0 }
 0x1d1   :  { %v2629_v26 = vmul.f32 %v5898_v10, %v6722_v39  ;;  %v2416_v29 = vpop.xlane.xlu2 %2415  ;;  %3576 = vmatpush.bf16.msrb.mxu3 %v3567_v45  ;;  %v3085_v39 = vpack.c.bf16 %v267_v44, %v267_v44  ;;  %v269_v10 = vld [vmem:[#allocation5 + $0xd0] sm:$0xff] }
 0x1d2   :  { %5903 = vrcp.f32 %v2416_v29  ;;  %v2413_v27 = vpop.xlane.xlu1 %2412  ;;  %v3087_v53 = vpack.c.bf16 %v269_v10, %v269_v10  ;;  %vm2794_vm9 = vcmp.ge.s32.totalorder %v5660_v11, 3435973837 }
 0x1d3   :  { %v7086_v34 = vpop.eup %5899  ;;  %v2949_v18 = vsel %vm7071_vm6, %v2629_v26, 0.0  ;;  %5905 = vrcp.f32 %v2413_v27  ;;  %v3586_v6 = vsel %vm3128_vm2, %v3085_v39, 0  ;;  %v3088_v39 = vpack.c.bf16 %v270_v35, %v270_v35 }
 0x1d4   :  { %5907 = vrcp.f32 %v2410_v48  ;;  %v2477_v38 = vsel %vm1972_vm1, %v7086_v34, 0.0  ;;  %v3013_v60 = vpack.c.bf16 %v2949_v18, %v2949_v18  ;;  %v7097_v59 = vpop.eup %5901 }
 0x1d5   :  { %2478 = vadd.xlane.f32.xlu2 %v2477_v38  ;;  %5909 = vpow2.f32 %v2321_v25  ;;  %v2486_v25 = vsel %vm1972_vm1, %v7097_v59, 0.0  ;;  %v7122_v38 = vpop.f32.mrf.mxu3 }
 0x1d6   :  { %5720 = vmatmul.msk.bf16.vlgmr.msrb.gmra.mxu1 %vm1972_vm1, %v3010_v56 }
 0x1d7   :  { %5723 = vmatmul.msk.bf16.vlgmr.msra.gmra.mxu0 %vm1972_vm1, %v3013_v60  ;;  %3538 = vmatpush.bf16.msrb.mxu1 %v3529_v22  ;;  %v3643_v22 = vsel %vm3128_vm2, %v3088_v39, 0  ;;  %v268_v60 = vld [vmem:[#allocation5 + $0xc8] sm:$0xff]  ;;  %v7157_v39 = vpop.f32.mrf.mxu0 }
 0x1d8   :  { %v5904_v61 = vpop.eup %5903  ;;  %2145 = vmax.xlane.f32.xlu0 %v2144_v28  ;;  %v7103_v13 = vpop.xlane.xlu0 %2109  ;;  %3595 = vmatpush.bf16.msra.mxu0 %v3586_v6  ;;  %v3086_v28 = vpack.c.bf16 %v268_v60, %v268_v60 }
 0x1d9   :  { %v5906_v5 = vpop.eup %5905  ;;  %v2632_v23 = vmul.f32 %v5904_v61, %v6737_v12  ;;  %v7106_v45 = vpop.xlane.xlu2 %2115  ;;  %v5663_v12 = vxor.u32 2147483648, %v2697_v43 }
 0x1da   :  { %v5908_v1 = vpop.eup %5907  ;;  %v2631_v48 = vmul.f32 %v5906_v5, %v6739_v49  ;;  %v2419_v19 = vpop.xlane.xlu1 %2418  ;;  %v3624_v49 = vsel %vm3128_vm2, %v3087_v53, 0  ;;  %v3605_v53 = vsel %vm3128_vm2, %v3086_v28, 0  ;;  %v2698_v28 = vld [vmem:[%s8325_s3 + $0xa8] sm:$0xff] }
 0x1db   :  { %v2952_v26 = vsel %vm2800_vm7, %v2632_v23, 0.0  ;;  %5911 = vrcp.f32 %v2419_v19  ;;  %v7112_v29 = vpop.eup %5909  ;;  %v2630_v18 = vmul.f32 %v5908_v1, %v6734_v55  ;;  %v2699_v55 = vld [vmem:[%s8325_s3 + $0xb0] sm:$0xff]  ;;  %vm7128_vm10 = vcmp.ge.s32.totalorder %v5663_v12, 3435973837  ;;  %v271_v23 = vld [vmem:[#allocation5 + $0xe0] sm:$0xff]  ;;  %v2700_v1 = vld [vmem:[%s8325_s3 + $0xb8] sm:$0xff] }
 0x1dc   :  { %v2951_v44 = vsel %vm2797_vm8, %v2631_v48, 0.0  ;;  %v3016_v27 = vpack.c.bf16 %v2952_v26, %v2952_v26  ;;  %v2495_v56 = vsel %vm1972_vm1, %v7112_v29, 0.0  ;;  %v7137_v48 = vpop.f32.mrf.mxu2  ;;  %v2150_v19 = vsel %vm1972_vm1, %v7122_v38, -inf }
 0x1dd   :  { %v3015_v20 = vpack.c.bf16 %v2951_v44, %v2951_v44  ;;  %2487 = vadd.xlane.f32.xlu2 %v2486_v25  ;;  %v2950_v0 = vsel %vm2794_vm9, %v2630_v18, 0.0  ;;  %v3089_v35 = vpack.c.bf16 %v271_v23, %v271_v23  ;;  %v2212_v26 = vsub.f32 %v6753_v3, %v7106_v45 }
 0x1de   :  { %v2210_v44 = vsub.f32 %v6751_v50, %v7103_v13  ;;  %v5666_v18 = vxor.u32 2147483648, %v2700_v1 }
 0x1df   :  { %5725 = vmatmul.msk.bf16.vlgmr.msra.gmra.mxu2 %vm1972_vm1, %v3015_v20  ;;  %5726 = vmatmul.msk.bf16.vlgmr.msra.gmra.mxu3 %vm1972_vm1, %v3016_v27  ;;  %v2159_v20 = vsel %vm1972_vm1, %v7137_v48, -inf  ;;  %v3662_v3 = vsel %vm3128_vm2, %v3089_v35, 0  ;;  %v5664_v35 = vxor.u32 2147483648, %v2698_v28 }
 0x1e0   :  { %2496 = vadd.xlane.f32.xlu0 %v2495_v56  ;;  %v2425_v16 = vpop.xlane.xlu0 %2424  ;;  %3633 = vmatpush.bf16.msra.mxu2 %v3624_v49  ;;  %v2319_v13 = vmul.f32 1.442695, %v2210_v44  ;;  %v2323_v49 = vmul.f32 1.442695, %v2212_v26  ;;  %vm7163_vm12 = vcmp.ge.s32.totalorder %v5666_v18, 3435973837 }
 0x1e1   :  { %v5912_v6 = vpop.eup %5911  ;;  %5913 = vrcp.f32 %v2425_v16  ;;  %v2107_v5 = vpop.xlane.xlu2 %2106  ;;  %3652 = vmatpush.bf16.msra.mxu3 %v3643_v22  ;;  %v2701_v22 = vld [vmem:[%s8325_s3 + $0xc0] sm:$0xff]  ;;  %v272_v18 = vld [vmem:[#allocation5 + $0xe8] sm:$0xff]  ;;  %vm7193_vm14 = vcmp.ge.s32.totalorder %v5664_v35, 3435973837 }
 0x1e2   :  { %v2633_v43 = vmul.f32 %v5912_v6, %v6757_v8  ;;  %v2209_v10 = vsub.f32 %v6771_v41, %v2107_v5  ;;  %v2428_v11 = vpop.xlane.xlu1 %2427  ;;  %v5665_v8 = vxor.u32 2147483648, %v2699_v55  ;;  %v3014_v41 = vpack.c.bf16 %v2950_v0, %v2950_v0  ;;  %v273_v0 = vld [vmem:[#allocation5 + $0xf0] sm:$0xff] }
 0x1e3   :  { %5915 = vrcp.f32 %v2428_v11  ;;  %v3091_v1 = vpack.c.bf16 %v273_v0, %v273_v0  ;;  %v3090_v45 = vpack.c.bf16 %v272_v18, %v272_v18 }
 0x1e4   :  { %v2953_v12 = vsel %vm7128_vm10, %v2633_v43, 0.0  ;;  %v2317_v25 = vmul.f32 1.442695, %v2209_v10  ;;  %vm7152_vm11 = vcmp.ge.s32.totalorder %v5665_v8, 3435973837  ;;  %v2141_v43 = vsel %vm1972_vm1, %v7157_v39, -inf }
 0x1e5   :  { %v3017_v27 = vpack.c.bf16 %v2953_v12, %v2953_v12  ;;  %2151 = vmax.xlane.f32.xlu2 %v2150_v19  ;;  %v5667_v10 = vxor.u32 2147483648, %v2701_v22  ;;  %v2703_v22 = vld [vmem:[%s8325_s3 + $0xd0] sm:$0xff] }
 0x1e6   :  { %5917 = vpow2.f32 %v2317_v25  ;;  %5724 = vmatmul.msk.bf16.vlgmr.msra.gmra.mxu1 %vm1972_vm1, %v3014_v41  ;;  %v3700_v41 = vsel %vm3128_vm2, %v3091_v1, 0 }
 0x1e7   :  { %v5914_v50 = vpop.eup %5913  ;;  %5727 = vmatmul.msk.bf16.vlgmr.msrb.gmra.mxu0 %vm1972_vm1, %v3017_v27  ;;  %3614 = vmatpush.bf16.msra.mxu1 %v3605_v53  ;;  %vm7183_vm13 = vcmp.ge.s32.totalorder %v5667_v10, 3435973837  ;;  %v2704_v27 = vld [vmem:[%s8325_s3 + $0xd8] sm:$0xff]  ;;  %v3681_v10 = vsel %vm3128_vm2, %v3090_v45, 0  ;;  %v277_v45 = vld [vmem:[#allocation5 + $0x110] sm:$0xff] }
 0x1e8   :  { %v2635_v56 = vmul.f32 %v5914_v50, %v6773_v32  ;;  %2160 = vmax.xlane.f32.xlu0 %v2159_v20  ;;  %v2431_v60 = vpop.xlane.xlu0 %2430  ;;  %3671 = vmatpush.bf16.msrb.mxu0 %v3662_v3  ;;  %v274_v32 = vld [vmem:[#allocation5 + $0xf8] sm:$0xff]  ;;  %v5670_v28 = vxor.u32 2147483648, %v2704_v27  ;;  %v8365_v27 = vld [vmem:[#allocation12_spill] sm:$0xff]  ;;  %v2705_v50 = vld [vmem:[%s8325_s3 + $0xe0] sm:$0xff] }
 0x1e9   :  { %v5916_v55 = vpop.eup %5915  ;;  %5919 = vrcp.f32 %v2431_v60  ;;  %v2422_v6 = vpop.xlane.xlu2 %2421  ;;  %v3092_v26 = vpack.c.bf16 %v274_v32, %v274_v32 }
 0x1ea   :  { %v2955_v61 = vsel %vm7152_vm11, %v2635_v56, 0.0  ;;  %v2636_v5 = vmul.f32 %v5916_v55, %v6775_v15  ;;  %5921 = vrcp.f32 %v2422_v6  ;;  %v2434_v23 = vpop.xlane.xlu1 %2433  ;;  %v275_v55 = vld [vmem:[#allocation5 + $0x100] sm:$0xff]  ;;  %vm7220_vm15 = vcmp.ge.s32.totalorder %v5670_v28, 3435973837 }
 0x1eb   :  { %5923 = vpow2.f32 %v2319_v13  ;;  %v3019_v44 = vpack.c.bf16 %v2955_v61, %v2955_v61  ;;  %v3719_v12 = vsel %vm3128_vm2, %v3092_v26, 0  ;;  %v3093_v32 = vpack.c.bf16 %v275_v55, %v275_v55  ;;  %v278_v55 = vld [vmem:[#allocation5 + $0x118] sm:$0xff] }
 0x1ec   :  { %v7175_v11 = vpop.eup %5917  ;;  %5925 = vpow2.f32 %v2323_v49  ;;  %v2956_v19 = vsel %vm7163_vm12, %v2636_v5, 0.0  ;;  %v5669_v5 = vxor.u32 2147483648, %v2703_v22  ;;  %vm4407_vm12 = vcmask 1047556  }
 0x1ed   :  { %v3020_v8 = vpack.c.bf16 %v2956_v19, %v2956_v19  ;;  %v2489_v15 = vsel %vm1972_vm1, %v7175_v11, 0.0  ;;  %2142 = vmax.xlane.f32.xlu2 %v2141_v43  ;;  %v3738_v26 = vsel %vm3128_vm2, %v3093_v32, 0  ;;  %v8368_v32 = vld [vmem:[#allocation11_spill] sm:$0xff] }
 0x1ee   :  { %2490 = vadd.xlane.f32.xlu1 %v2489_v15  ;;  %vm7226_vm3 = vcmp.ge.s32.totalorder %v5669_v5, 3435973837 }
 0x1ef   :  { %v5920_v25 = vpop.eup %5919  ;;  %5729 = vmatmul.msk.bf16.vlgmr.msrb.gmra.mxu2 %vm1972_vm1, %v3019_v44  ;;  %5730 = vmatmul.msk.bf16.vlgmr.msrb.gmra.mxu3 %vm1972_vm1, %v3020_v8  ;;  %v276_v44 = vld [vmem:[#allocation5 + $0x108] sm:$0xff] }
 0x1f0   :  { %v5922_v20 = vpop.eup %5921  ;;  %v2637_v3 = vmul.f32 %v5920_v25, %v6794_v57  ;;  %v2440_v13 = vpop.xlane.xlu0 %2439  ;;  %3709 = vmatpush.bf16.msrb.mxu2 %v3700_v41  ;;  %3728 = vmatpush.bf16.msrb.mxu3 %v3719_v12 }
 0x1f1   :  { %v7197_v49 = vpop.eup %5923  ;;  %v2634_v56 = vmul.f32 %v5922_v20, %v6796_v14  ;;  %5927 = vrcp.f32 %v2440_v13  ;;  %v2437_v60 = vpop.xlane.xlu2 %2436  ;;  %v8366_v20 = vld [vmem:[#allocation13_spill] sm:$0xff] }
 0x1f2   :  { %v7203_v57 = vpop.eup %5925  ;;  %v2957_v16 = vsel %vm7183_vm13, %v2637_v3, 0.0  ;;  %5929 = vrcp.f32 %v2437_v60  ;;  %v2128_v6 = vpop.xlane.xlu1 %2127  ;;  %v2492_v43 = vsel %vm1972_vm1, %v7197_v49, 0.0  ;;  %v3095_v60 = vpack.c.bf16 %v277_v45, %v277_v45  ;;  %v2707_v45 = vld [vmem:[%s8325_s3 + $0xf0] sm:$0xff] }
 0x1f3   :  { %v2954_v0 = vsel %vm7193_vm14, %v2634_v56, 0.0  ;;  %5931 = vrcp.f32 %v2434_v23  ;;  %v2216_v14 = vsub.f32 %v6812_v63, %v2128_v6  ;;  %v3021_v1 = vpack.c.bf16 %v2957_v16, %v2957_v16  ;;  %v2702_v23 = vld [vmem:[%s8325_s3 + $0xc8] sm:$0xff]  ;;  %v7230_v25 = vpop.f32.mrf.mxu3  ;;  %v8367_v6 = vld [vmem:[#allocation14_spill] sm:$0xff] }
 0x1f4   :  { %v3018_v61 = vpack.c.bf16 %v2954_v0, %v2954_v0  ;;  %v2498_v35 = vsel %vm1972_vm1, %v7203_v57, 0.0 }
 0x1f5   :  { %v2331_v19 = vmul.f32 1.442695, %v2216_v14  ;;  %2493 = vadd.xlane.f32.xlu2 %v2492_v43  ;;  %v2162_v14 = vsel %vm1972_vm1, %v7230_v25, -inf }
 0x1f6   :  { %5728 = vmatmul.msk.bf16.vlgmr.msrb.gmra.mxu1 %vm1972_vm1, %v3018_v61  ;;  %2499 = vadd.xlane.f32.xlu1 %v2498_v35  ;;  %v3776_v35 = vsel %vm3128_vm2, %v3095_v60, 0 }
 0x1f7   :  { %v5928_v63 = vpop.eup %5927  ;;  %5933 = vpow2.f32 %v2331_v19  ;;  %5731 = vmatmul.msk.bf16.vlgmr.msra.gmra.mxu0 %vm1972_vm1, %v3021_v1  ;;  %3690 = vmatpush.bf16.msrb.mxu1 %v3681_v10  ;;  %v5671_v10 = vxor.u32 2147483648, %v2705_v50 }
 0x1f8   :  { %v5930_v8 = vpop.eup %5929  ;;  %v2640_v15 = vmul.f32 %v5928_v63, %v6809_v4  ;;  %v2125_v12 = vpop.xlane.xlu0 %2124  ;;  %3747 = vmatpush.bf16.msra.mxu0 %v3738_v26  ;;  %v5668_v4 = vxor.u32 2147483648, %v2702_v23  ;;  %v3096_v26 = vpack.c.bf16 %v278_v55, %v278_v55 }
 0x1f9   :  { %v5932_v53 = vpop.eup %5931  ;;  %v2639_v18 = vmul.f32 %v5930_v8, %v8365_v27  ;;  %v2215_v3 = vsub.f32 %v8366_v20, %v2125_v12  ;;  %v2443_v13 = vpop.xlane.xlu2 %2442  ;;  %vm7253_vm5 = vcmp.ge.s32.totalorder %v5671_v10, 3435973837 }
 0x1fa   :  { %v2960_v56 = vsel %vm7220_vm15, %v2640_v15, 0.0  ;;  %5935 = vrcp.f32 %v2443_v13  ;;  %v2119_v22 = vpop.xlane.xlu1 %2118  ;;  %v2638_v61 = vmul.f32 %v5932_v53, %v8368_v32  ;;  %vm2818_vm4 = vcmp.ge.s32.totalorder %v5668_v4, 3435973837  ;;  %v7257_v12 = vpop.f32.mrf.mxu0  ;;  %v279_v13 = vld [vmem:[#allocation5 + $0x120] sm:$0xff] }
 0x1fb   :  { %v2959_v16 = vsel %vm7226_vm3, %v2639_v18, 0.0  ;;  %v2329_v28 = vmul.f32 1.442695, %v2215_v3  ;;  %v2213_v0 = vsub.f32 %v8367_v6, %v2119_v22  ;;  %v3024_v5 = vpack.c.bf16 %v2960_v56, %v2960_v56  ;;  %v8371_v18 = vld [vmem:[#allocation15_spill] sm:$0xff]  ;;  %v2708_v3 = vld [vmem:[%s8325_s3 + $0xf8] sm:$0xff] }
 0x1fc   :  { %v3023_v43 = vpack.c.bf16 %v2959_v16, %v2959_v16  ;;  %v3795_v23 = vsel %vm3128_vm2, %v3096_v26, 0  ;;  %v3094_v53 = vpack.c.bf16 %v276_v44, %v276_v44  ;;  %v2958_v27 = vsel %vm2818_vm4, %v2638_v61, 0.0  ;;  %v7285_v26 = vpop.f32.mrf.mxu1 }
 0x1fd   :  { %v7245_v1 = vpop.eup %5933  ;;  %5937 = vpow2.f32 %v2329_v28  ;;  %v2325_v19 = vmul.f32 1.442695, %v2213_v0  ;;  %v2153_v60 = vsel %vm1972_vm1, %v7257_v12, -inf  ;;  %v3097_v55 = vpack.c.bf16 %v279_v13, %v279_v13  ;;  %v2706_v28 = vld [vmem:[%s8325_s3 + $0xe8] sm:$0xff]  ;;  %v281_v13 = vld [vmem:[#allocation5 + $0x130] sm:$0xff] }
 0x1fe   :  { %2163 = vmax.xlane.f32.xlu1 %v2162_v14  ;;  %v2510_v63 = vsel %vm1972_vm1, %v7245_v1, 0.0  ;;  %v3022_v16 = vpack.c.bf16 %v2958_v27, %v2958_v27  ;;  %v5674_v6 = vxor.u32 2147483648, %v2708_v3  ;;  %v3757_v14 = vsel %vm3128_vm2, %v3094_v53, 0  ;;  %v2709_v27 = vld [vmem:[%s8325_s3 + $0x100] sm:$0xff] }
 0x1ff   :  { %5939 = vpow2.f32 %v2325_v19  ;;  %5733 = vmatmul.msk.bf16.vlgmr.msra.gmra.mxu2 %vm1972_vm1, %v3023_v43  ;;  %5734 = vmatmul.msk.bf16.vlgmr.msra.gmra.mxu3 %vm1972_vm1, %v3024_v5  ;;  %v5673_v5 = vxor.u32 2147483648, %v2707_v45  ;;  %v3814_v43 = vsel %vm3128_vm2, %v3097_v55, 0 }
 0x200   :  { %v5936_v8 = vpop.eup %5935  ;;  %2511 = vadd.xlane.f32.xlu0 %v2510_v63  ;;  %v2446_v41 = vpop.xlane.xlu0 %2445  ;;  %3785 = vmatpush.bf16.msra.mxu2 %v3776_v35  ;;  %v5672_v35 = vxor.u32 2147483648, %v2706_v28  ;;  %vm7287_vm6 = vcmp.ge.s32.totalorder %v5674_v6, 3435973837  ;;  %v3099_v6 = vpack.c.bf16 %v281_v13, %v281_v13 }
 0x201   :  { %v2641_v20 = vmul.f32 %v5936_v8, %v8371_v18  ;;  %5941 = vrcp.f32 %v2446_v41  ;;  %v2452_v50 = vpop.xlane.xlu2 %2451  ;;  %3804 = vmatpush.bf16.msra.mxu3 %v3795_v23  ;;  %vm2833_vm7 = vcmp.ge.s32.totalorder %v5673_v5, 3435973837 }
 0x202   :  { %5943 = vrcp.f32 %v2452_v50  ;;  %v2449_v4 = vpop.xlane.xlu1 %2448  ;;  %v2156_v50 = vsel %vm1972_vm1, %v7285_v26, -inf  ;;  %vm7300_vm8 = vcmp.ge.s32.totalorder %v5672_v35, 3435973837 }
 0x203   :  { %v7266_v56 = vpop.eup %5937  ;;  %v2961_v22 = vsel %vm7253_vm5, %v2641_v20, 0.0  ;;  %5945 = vrcp.f32 %v2449_v4  ;;  %v282_v4 = vld [vmem:[#allocation5 + $0x138] sm:$0xff] }
 0x204   :  { %v2507_v0 = vsel %vm1972_vm1, %v7266_v56, 0.0  ;;  %v3025_v61 = vpack.c.bf16 %v2961_v22, %v2961_v22 }
 0x205   :  { %v7278_v32 = vpop.eup %5939  ;;  %2508 = vadd.xlane.f32.xlu2 %v2507_v0  ;;  %v3100_v0 = vpack.c.bf16 %v282_v4, %v282_v4 }
 0x206   :  { %5732 = vmatmul.msk.bf16.vlgmr.msra.gmra.mxu1 %vm1972_vm1, %v3022_v16  ;;  %2154 = vmax.xlane.f32.xlu1 %v2153_v60  ;;  %v2501_v10 = vsel %vm1972_vm1, %v7278_v32, 0.0 }
 0x207   :  { %v5942_v19 = vpop.eup %5941  ;;  %5735 = vmatmul.msk.bf16.vlgmr.msrb.gmra.mxu0 %vm1972_vm1, %v3025_v61  ;;  %3766 = vmatpush.bf16.msra.mxu1 %v3757_v14  ;;  %v2711_v14 = vld [vmem:[%s8325_s3 + $0x110] sm:$0xff]  ;;  %v280_v61 = vld [vmem:[#allocation5 + $0x128] sm:$0xff] }
 0x208   :  { %v5944_v63 = vpop.eup %5943  ;;  %2502 = vadd.xlane.f32.xlu0 %v2501_v10  ;;  %v2140_v44 = vpop.xlane.xlu0 %2139  ;;  %3823 = vmatpush.bf16.msrb.mxu0 %v3814_v43  ;;  %v2642_v22 = vmul.f32 %v5942_v19, %v6847_v62  ;;  %v3852_v62 = vsel %vm3128_vm2, %v3099_v6, 0  ;;  %v2712_v10 = vld [vmem:[%s8325_s3 + $0x118] sm:$0xff]  ;;  %v3871_v19 = vsel %vm3128_vm2, %v3100_v0, 0  ;;  %v3098_v35 = vpack.c.bf16 %v280_v61, %v280_v61  ;;  %v2713_v61 = vld [vmem:[%s8325_s3 + $0x120] sm:$0xff] }
 0x209   :  { %v5946_v8 = vpop.eup %5945  ;;  %v2644_v15 = vmul.f32 %v5944_v63, %v6849_v7  ;;  %v2220_v41 = vsub.f32 %v6873_v9, %v2140_v44  ;;  %v2122_v53 = vpop.xlane.xlu2 %2121 }
 0x20a   :  { %v2643_v18 = vmul.f32 %v5946_v8, %v6860_v54  ;;  %v2214_v20 = vsub.f32 %v6879_v21, %v2122_v53  ;;  %v2455_v3 = vpop.xlane.xlu1 %2454  ;;  %v5675_v21 = vxor.u32 2147483648, %v2709_v27  ;;  %v2962_v5 = vsel %vm7300_vm8, %v2642_v22, 0.0 }
 0x20b   :  { %v2964_v7 = vsel %vm7287_vm6, %v2644_v15, 0.0  ;;  %v2339_v9 = vmul.f32 1.442695, %v2220_v41  ;;  %5947 = vrcp.f32 %v2455_v3  ;;  %v5677_v8 = vxor.u32 2147483648, %v2711_v14  ;;  %v2710_v14 = vld [vmem:[%s8325_s3 + $0x108] sm:$0xff] }
 0x20c   :  { %v2963_v54 = vsel %vm2833_vm7, %v2643_v18, 0.0  ;;  %v2327_v60 = vmul.f32 1.442695, %v2214_v20  ;;  %v3141_v55 = vpop.f32.mrf.mxu0  ;;  %v3028_v16 = vpack.c.bf16 %v2964_v7, %v2964_v7  ;;  %vm2839_vm9 = vcmp.ge.s32.totalorder %v5675_v21, 3435973837 }
 0x20d   :  { %v3027_v28 = vpack.c.bf16 %v2963_v54, %v2963_v54  ;;  %5949 = vpow2.f32 %v2339_v9  ;;  %2157 = vmax.xlane.f32.xlu2 %v2156_v50  ;;  %v3026_v27 = vpack.c.bf16 %v2962_v5, %v2962_v5  ;;  %v5678_v18 = vxor.u32 2147483648, %v2712_v10 }
 0x20e   :  { %5951 = vpow2.f32 %v2327_v60  ;;  %v4342_v4 = vmul.f32 1.4285715, %v3141_v55  ;;  %vm2845_vm10 = vcmp.ge.s32.totalorder %v5677_v8, 3435973837  ;;  %v6119_v54 = vmov 1983009808  }
 0x20f   :  { %5737 = vmatmul.msk.bf16.vlgmr.msrb.gmra.mxu2 %vm1972_vm1, %v3027_v28  ;;  %5738 = vmatmul.msk.bf16.vlgmr.msrb.gmra.mxu3 %vm1972_vm1, %v3028_v16  ;;  %v4412_v60 = vunpack.c.l.s4 %v6119_v54  ;;  %vm7333_vm11 = vcmp.ge.s32.totalorder %v5678_v18, 3435973837  ;;  %v5676_v8 = vxor.u32 2147483648, %v2710_v14 }
 0x210   :  { %v2461_v43 = vpop.xlane.xlu0 %2460  ;;  %3861 = vmatpush.bf16.msrb.mxu2 %v3852_v62  ;;  %3880 = vmatpush.bf16.msrb.mxu3 %v3871_v19  ;;  %v4409_v6 = vrot.slane %v4342_v4, 4 }
 0x211   :  { %v5948_v63 = vpop.eup %5947  ;;  %5953 = vrcp.f32 %v2461_v43  ;;  %v2137_v23 = vpop.xlane.xlu2 %2136  ;;  %vm2842_vm13 = vcmp.ge.s32.totalorder %v5676_v8, 3435973837 }
 0x212   :  { %v2645_v44 = vmul.f32 %v5948_v63, %v6883_v31  ;;  %v2219_v15 = vsub.f32 %v6896_v17, %v2137_v23  ;;  %v2464_v41 = vpop.xlane.xlu1 %2463  ;;  %v3833_v31 = vsel %vm3128_vm2, %v3098_v35, 0  ;;  %v7345_v35 = vunpack.c.0.s8 %v4412_v60 }
 0x213   :  { %v7321_v53 = vpop.eup %5949  ;;  %5955 = vrcp.f32 %v2464_v41 }
 0x214   :  { %v7323_v20 = vpop.eup %5951  ;;  %v2965_v3 = vsel %vm2839_vm9, %v2645_v44, 0.0  ;;  %v2337_v50 = vmul.f32 1.442695, %v2219_v15  ;;  %v3143_v13 = vpop.f32.mrf.mxu0  ;;  %v2522_v7 = vsel %vm1972_vm1, %v7321_v53, 0.0  ;;  %v5679_v15 = vxor.u32 2147483648, %v2713_v61 }
 0x215   :  { %v3160_v45 = vpop.f32.mrf.mxu1  ;;  %v3029_v9 = vpack.c.bf16 %v2965_v3, %v2965_v3  ;;  %2523 = vadd.xlane.f32.xlu0 %v2522_v7  ;;  %v2504_v17 = vsel %vm1972_vm1, %v7323_v20, 0.0 }
 0x216   :  { %5957 = vpow2.f32 %v2337_v50  ;;  %5736 = vmatmul.msk.bf16.vlgmr.msrb.gmra.mxu1 %vm1972_vm1, %v3026_v27  ;;  %2505 = vadd.xlane.f32.xlu1 %v2504_v17  ;;  %v4343_v44 = vmul.f32 1.4285715, %v3160_v45  ;;  %v2715_v50 = vld [vmem:[%s8325_s3 + $0x130] sm:$0xff]  ;;  %vm7361_vm14 = vcmp.ge.s32.totalorder %v5679_v15, 3435973837 }
 0x217   :  { %v5954_v22 = vpop.eup %5953  ;;  %5739 = vmatmul.msk.bf16.vlgmr.msra.gmra.mxu0 %vm1972_vm1, %v3029_v9  ;;  %3842 = vmatpush.bf16.msrb.mxu1 %v3833_v31 }
 0x218   :  { %v2647_v21 = vmul.f32 %v5954_v22, %v6898_v52  ;;  %v3179_v55 = vpop.f32.mrf.mxu2 }
 0x219   :  { %v5956_v28 = vpop.eup %5955  ;;  %v4344_v0 = vmul.f32 1.4285715, %v3179_v55  ;;  %v2458_v62 = vpop.xlane.xlu2 %2457  ;;  %v5681_v55 = vxor.u32 2147483648, %v2715_v50 }
 0x21a   :  { %v2967_v5 = vsel %vm2845_vm10, %v2647_v21, 0.0  ;;  %v2648_v52 = vmul.f32 %v5956_v28, %v6903_v33  ;;  %5959 = vrcp.f32 %v2458_v62  ;;  %v2467_v43 = vpop.xlane.xlu0 %2466  ;;  %v2716_v28 = vld [vmem:[%s8325_s3 + $0x138] sm:$0xff] }
 0x21b   :  { %v4406_v10 = vrot.slane %v4344_v0, 4  ;;  %v4410_v19 = vsel %vm4407_vm12, %v4344_v0, %v4409_v6  ;;  %5961 = vrcp.f32 %v2467_v43  ;;  %v3031_v27 = vpack.c.bf16 %v2967_v5, %v2967_v5 }
 0x21c   :  { %v7347_v63 = vpop.eup %5957  ;;  %v2968_v23 = vsel %vm7333_vm11, %v2648_v52, 0.0  ;;  %v4418_v45 = vperm.slane %v4410_v19, %v7345_v35  ;;  %v5682_v19 = vxor.u32 2147483648, %v2716_v28  ;;  %vm7381_vm15 = vcmp.ge.s32.totalorder %v5681_v55, 3435973837 }
 0x21d   :  { %v3162_v41 = vpop.f32.mrf.mxu1  ;;  %v3032_v18 = vpack.c.bf16 %v2968_v23, %v2968_v23  ;;  %v4408_v33 = vsel %vm4407_vm12, %v4406_v10, %v4342_v4  ;;  %v2519_v3 = vsel %vm1972_vm1, %v7347_v63, 0.0  ;;  %v4421_v4 = vrot.slane %v4343_v44, 4 }
 0x21e   :  { %2520 = vadd.xlane.f32.xlu2 %v2519_v3  ;;  %v4414_v21 = vperm.slane %v4408_v33, %v7345_v35  ;;  %v4469_v61 = vrot.slane %v4418_v45, 4  ;;  %vm2860_vm3 = vcmp.ge.s32.totalorder %v5682_v19, 3435973837  ;;  %v283_v19 = vld [vmem:[#allocation5 + $0x140] sm:$0xff] }
 0x21f   :  { %5741 = vmatmul.msk.bf16.vlgmr.msra.gmra.mxu2 %vm1972_vm1, %v3031_v27  ;;  %5742 = vmatmul.msk.bf16.vlgmr.msra.gmra.mxu3 %vm1972_vm1, %v3032_v18 }
 0x220   :  { %v5960_v13 = vpop.eup %5959  ;;  %v3181_v7 = vpop.f32.mrf.mxu2  ;;  %v4457_v23 = vrot.slane %v4414_v21, 4 }
 0x221   :  { %v3198_v31 = vpop.f32.mrf.mxu3  ;;  %v5962_v9 = vpop.eup %5961  ;;  %v2646_v17 = vmul.f32 %v5960_v13, %v6917_v24 }
 0x222   :  { %v4345_v54 = vmul.f32 1.4285715, %v3198_v31  ;;  %v2473_v60 = vpop.xlane.xlu2 %2472  ;;  %v2649_v16 = vmul.f32 %v5962_v9, %v6930_v58  ;;  %v2476_v6 = vpop.xlane.xlu0 %2475  ;;  %v2714_v9 = vld [vmem:[%s8325_s3 + $0x128] sm:$0xff] }
 0x223   :  { %5963 = vrcp.f32 %v2473_v60  ;;  %v2966_v0 = vsel %vm2842_vm13, %v2646_v17, 0.0  ;;  %v3217_v62 = vpop.f32.mrf.mxu0 }
 0x224   :  { %v4419_v14 = vrot.slane %v4345_v54, 4  ;;  %v4422_v24 = vsel %vm4407_vm12, %v4345_v54, %v4421_v4  ;;  %5965 = vrcp.f32 %v2476_v6  ;;  %v3030_v5 = vpack.c.bf16 %v2966_v0, %v2966_v0 }
 0x225   :  { %v2969_v52 = vsel %vm7361_vm14, %v2649_v16, 0.0  ;;  %v4430_v58 = vperm.slane %v4422_v24, %v7345_v35  ;;  %v284_v16 = vld [vmem:[#allocation5 + $0x148] sm:$0xff] }
 0x226   :  { %v3033_v43 = vpack.c.bf16 %v2969_v52, %v2969_v52  ;;  %v4420_v10 = vsel %vm4407_vm12, %v4419_v14, %v4343_v44  ;;  %5740 = vmatmul.msk.bf16.vlgmr.msra.gmra.mxu1 %vm1972_vm1, %v3030_v5  ;;  %v285_v44 = vld [vmem:[#allocation5 + $0x150] sm:$0xff]  ;;  %v5680_v14 = vxor.u32 2147483648, %v2714_v9  ;;  %v3102_v24 = vpack.c.bf16 %v284_v16, %v284_v16 }
 0x227   :  { %v4426_v8 = vperm.slane %v4420_v10, %v7345_v35  ;;  %v4467_v15 = vrot.slane %v4430_v58, 4  ;;  %v7378_v41 = vsel %vm4407_vm12, %v4430_v58, %v4469_v61  ;;  %v3103_v17 = vpack.c.bf16 %v285_v44, %v285_v44 }
 0x228   :  { %5743 = vmatmul.msk.bf16.vlgmr.msrb.gmra.mxu0 %vm1972_vm1, %v3033_v43  ;;  %v6120_v52 = vmov 1934713408   ;;  %v4346_v43 = vmul.f32 1.4285715, %v3217_v62  ;;  %vm2854_vm4 = vcmp.ge.s32.totalorder %v5680_v14, 3435973837 }
 0x229   :  { %v5964_v27 = vpop.eup %5963  ;;  %v4455_v18 = vrot.slane %v4426_v8, 4  ;;  %v3200_v3 = vpop.f32.mrf.mxu3  ;;  %v4468_v50 = vsel %vm4407_vm12, %v4467_v15, %v4418_v45  ;;  %v7387_v13 = vsel %vm4407_vm12, %v4426_v8, %v4457_v23  ;;  %v3928_v6 = vsel %vm3128_vm2, %v3103_v17, 0 }
 0x22a   :  { %v5966_v7 = vpop.eup %5965  ;;  %v2651_v31 = vmul.f32 %v5964_v27, %v6946_v2  ;;  %v2470_v4 = vpop.xlane.xlu1 %2469  ;;  %3937 = vmatpush.bf16.msra.mxu2 %v3928_v6  ;;  %v4460_v58 = vunpack.c.l.s4 %v6120_v52  ;;  %v3101_v27 = vpack.c.bf16 %v283_v19, %v283_v19  ;;  %v4433_v62 = vrot.slane %v4346_v43, 4 }
 0x22b   :  { %v2652_v22 = vmul.f32 %v5966_v7, %v6953_v42  ;;  %5967 = vrcp.f32 %v2470_v4  ;;  %v3236_v54 = vpop.f32.mrf.mxu1  ;;  %v2131_v60 = vpop.xlane.xlu0 %2130  ;;  %v4456_v45 = vsel %vm4407_vm12, %v4455_v18, %v4414_v21  ;;  %v3909_v21 = vsel %vm3128_vm2, %v3102_v24, 0 }
 0x22c   :  { %v2971_v55 = vsel %vm7381_vm15, %v2651_v31, 0.0  ;;  %v2217_v2 = vsub.f32 %v6969_v47, %v2131_v60  ;;  %v3219_v28 = vpop.f32.mrf.mxu0  ;;  %v4347_v10 = vmul.f32 1.4285715, %v3236_v54  ;;  %3918 = vmatpush.bf16.msra.mxu1 %v3909_v21  ;;  %v7403_v18 = vunpack.c.0.s8 %v4460_v58  ;;  %v286_v58 = vld [vmem:[#allocation5 + $0x158] sm:$0xff] }
 0x22d   :  { %v2972_v0 = vsel %vm2860_vm3, %v2652_v22, 0.0  ;;  %v3035_v61 = vpack.c.bf16 %v2971_v55, %v2971_v55  ;;  %v3890_v17 = vsel %vm3128_vm2, %v3101_v27, 0 }
 0x22e   :  { %v3036_v42 = vpack.c.bf16 %v2972_v0, %v2972_v0  ;;  %v2333_v5 = vmul.f32 1.442695, %v2217_v2  ;;  %v4445_v33 = vrot.slane %v4347_v10, 4  ;;  %v7408_v22 = vperm.slane %v4468_v50, %v7403_v18  ;;  %3899 = vmatpush.bf16.msra.mxu0 %v3890_v17 }
 0x22f   :  { %5745 = vmatmul.msk.bf16.vlgmr.msrb.gmra.mxu2 %vm1972_vm1, %v3035_v61  ;;  %v4462_v0 = vperm.slane %v4456_v45, %v7403_v18  ;;  %v4466_v45 = vperm.slane %v7387_v13, %v7403_v18 }
 0x230   :  { %5969 = vpow2.f32 %v2333_v5  ;;  %5746 = vmatmul.msk.bf16.vlgmr.msrb.gmra.mxu3 %vm1972_vm1, %v3036_v42 }
 0x231   :  { %v5968_v47 = vpop.eup %5967  ;;  %v3274_v8 = vpop.f32.mrf.mxu3 }
 0x232   :  { %v2650_v23 = vmul.f32 %v5968_v47, %v6976_v37  ;;  %v2134_v15 = vpop.xlane.xlu1 %2133  ;;  %v4349_v3 = vmul.f32 1.4285715, %v3274_v8  ;;  %v3255_v31 = vpop.f32.mrf.mxu2 }
 0x233   :  { %v2218_v44 = vsub.f32 %v6993_v36, %v2134_v15  ;;  %v3238_v7 = vpop.f32.mrf.mxu1  ;;  %v4348_v4 = vmul.f32 1.4285715, %v3255_v31  ;;  %v4513_v15 = vrot.slane %v7408_v22, 4 }
 0x234   :  { %v2970_v9 = vsel %vm2854_vm4, %v2650_v23, 0.0  ;;  %v4443_v54 = vrot.slane %v4349_v3, 4  ;;  %v4446_v60 = vsel %vm4407_vm12, %v4349_v3, %v4445_v33  ;;  %v3293_v55 = vpop.f32.mrf.mxu0  ;;  %v3104_v23 = vpack.c.bf16 %v286_v58, %v286_v58  ;;  %v289_v33 = vld [vmem:[#allocation5 + $0x170] sm:$0xff] }
 0x235   :  { %v3034_v37 = vpack.c.bf16 %v2970_v9, %v2970_v9  ;;  %v2335_v16 = vmul.f32 1.442695, %v2218_v44  ;;  %v4454_v36 = vperm.slane %v4446_v60, %v7345_v35  ;;  %v4431_v28 = vrot.slane %v4348_v4, 4 }
 0x236   :  { %v7411_v2 = vpop.eup %5969  ;;  %v4434_v6 = vsel %vm4407_vm12, %v4348_v4, %v4433_v62  ;;  %v4444_v14 = vsel %vm4407_vm12, %v4443_v54, %v4347_v10  ;;  %v4478_v10 = vperm.slane %v7378_v41, %v7403_v18  ;;  %v4505_v3 = vrot.slane %v4462_v0, 4 }
 0x237   :  { %5971 = vpow2.f32 %v2335_v16  ;;  %v4442_v50 = vperm.slane %v4434_v6, %v7345_v35  ;;  %5744 = vmatmul.msk.bf16.vlgmr.msrb.gmra.mxu1 %vm1972_vm1, %v3034_v37  ;;  %v2513_v24 = vsel %vm1972_vm1, %v7411_v2, 0.0  ;;  %v4450_v61 = vperm.slane %v4444_v14, %v7345_v35  ;;  %v2719_v14 = vld [vmem:[%s8325_s3 + $0x150] sm:$0xff] }
 0x238   :  { %v4491_v42 = vrot.slane %v4454_v36, 4  ;;  %v4432_v5 = vsel %vm4407_vm12, %v4431_v28, %v4346_v43  ;;  %2514 = vadd.xlane.f32.xlu1 %v2513_v24  ;;  %v3947_v7 = vsel %vm3128_vm2, %v3104_v23, 0  ;;  %v3107_v41 = vpack.c.bf16 %v289_v33, %v289_v33 }
 0x239   :  { %v4438_v52 = vperm.slane %v4432_v5, %v7345_v35  ;;  %v4479_v21 = vrot.slane %v4450_v61, 4  ;;  %v3276_v47 = vpop.f32.mrf.mxu3  ;;  %v4493_v13 = vrot.slane %v4442_v50, 4  ;;  %3956 = vmatpush.bf16.msra.mxu3 %v3947_v7  ;;  %v4509_v6 = vrot.slane %v4466_v45, 4 }
 0x23a   :  { %v2149_v19 = vpop.xlane.xlu1 %2148  ;;  %v4492_v8 = vsel %vm4407_vm12, %v4491_v42, %v4442_v50  ;;  %v3257_v62 = vpop.f32.mrf.mxu2  ;;  %v4004_v16 = vsel %vm3128_vm2, %v3107_v41, 0  ;;  %v4350_v5 = vmul.f32 1.4285715, %v3293_v55  ;;  %v4517_v58 = vrot.slane %v4478_v10, 4 }
 0x23b   :  { %v4481_v27 = vrot.slane %v4438_v52, 4  ;;  %v2223_v43 = vsub.f32 %v7014_v30, %v2149_v19  ;;  %v4498_v44 = vperm.slane %v4492_v8, %v7403_v18  ;;  %v4480_v31 = vsel %vm4407_vm12, %v4479_v21, %v4438_v52  ;;  %4013 = vmatpush.bf16.msrb.mxu2 %v4004_v16 }
 0x23c   :  { %v3295_v17 = vpop.f32.mrf.mxu0  ;;  %v4486_v37 = vperm.slane %v4480_v31, %v7403_v18  ;;  %v4494_v52 = vsel %vm4407_vm12, %v4454_v36, %v4493_v13  ;;  %v5685_v8 = vxor.u32 2147483648, %v2719_v14  ;;  %v4521_v62 = vrot.slane %v4350_v5, 4 }
 0x23d   :  { %v7434_v9 = vpop.eup %5971  ;;  %v2345_v4 = vmul.f32 1.442695, %v2223_v43  ;;  %v4511_v54 = vrot.slane %v4498_v44, 4  ;;  %v7438_v30 = vsel %vm4407_vm12, %v4498_v44, %v4513_v15  ;;  %v4482_v28 = vsel %vm4407_vm12, %v4450_v61, %v4481_v27 }
 0x23e   :  { %v2516_v60 = vsel %vm1972_vm1, %v7434_v9, 0.0  ;;  %v7448_v50 = vsel %vm4407_vm12, %v4486_v37, %v4505_v3  ;;  %v4503_v24 = vrot.slane %v4486_v37, 4  ;;  %v4490_v42 = vperm.slane %v4482_v28, %v7403_v18 }
 0x23f   :  { %5973 = vpow2.f32 %v2345_v4  ;;  %2517 = vadd.xlane.f32.xlu2 %v2516_v60  ;;  %v7454_v61 = vsel %vm4407_vm12, %v4511_v54, %v7408_v22  ;;  %v4502_v19 = vperm.slane %v4494_v52, %v7403_v18  ;;  %vm7481_vm5 = vcmp.ge.s32.totalorder %v5685_v8, 3435973837 }
 0x240   :  { %v4507_v21 = vrot.slane %v4490_v42, 4  ;;  %v7457_v47 = vsel %vm4407_vm12, %v4490_v42, %v4509_v6  ;;  %v7461_v23 = vsel %vm4407_vm12, %v4503_v24, %v4462_v0  ;;  %v2718_v0 = vld [vmem:[%s8325_s3 + $0x148] sm:$0xff]  ;;  %v2717_v24 = vld [vmem:[%s8325_s3 + $0x140] sm:$0xff] }
 0x241   :  { %v4515_v36 = vrot.slane %v4502_v19, 4  ;;  %v7464_v43 = vsel %vm4407_vm12, %v4502_v19, %v4517_v58  ;;  %v5684_v16 = vxor.u32 2147483648, %v2718_v0  ;;  %v5683_v0 = vxor.u32 2147483648, %v2717_v24 }
 0x242   :  { %v2485_v15 = vpop.xlane.xlu1 %2484  ;;  %v3331_v55 = vpop.f32.mrf.mxu2  ;;  %v7467_v22 = vsel %vm4407_vm12, %v4507_v21, %v4466_v45 }
 0x243   :  { %5975 = vrcp.f32 %v2485_v15  ;;  %v3350_v27 = vpop.f32.mrf.mxu3  ;;  %v3312_v33 = vpop.f32.mrf.mxu1  ;;  %v4352_v3 = vmul.f32 1.4285715, %v3331_v55  ;;  %v7475_v4 = vsel %vm4407_vm12, %v4515_v36, %v4478_v10  ;;  %v287_v15 = vld [vmem:[#allocation5 + $0x160] sm:$0xff]  ;;  %vm7495_vm6 = vcmp.ge.s32.totalorder %v5684_v16, 3435973837 }
 0x244   :  { %v4353_v44 = vmul.f32 1.4285715, %v3350_v27  ;;  %v2482_v13 = vpop.xlane.xlu0 %2481  ;;  %v4351_v41 = vmul.f32 1.4285715, %v3312_v33  ;;  %v3369_v31 = vpop.f32.mrf.mxu0  ;;  %v3105_v27 = vpack.c.bf16 %v287_v15, %v287_v15  ;;  %vm2863_vm7 = vcmp.ge.s32.totalorder %v5683_v0, 3435973837 }
 0x245   :  { %v7472_v7 = vpop.eup %5973  ;;  %5977 = vrcp.f32 %v2482_v13  ;;  %v4519_v17 = vrot.slane %v4352_v3, 4  ;;  %v4522_v45 = vsel %vm4407_vm12, %v4352_v3, %v4521_v62  ;;  %v4354_v15 = vmul.f32 1.4285715, %v3369_v31  ;;  %v290_v31 = vld [vmem:[#allocation5 + $0x178] sm:$0xff] }
 0x246   :  { %v4531_v37 = vrot.slane %v4353_v44, 4  ;;  %v4533_v54 = vrot.slane %v4351_v41, 4  ;;  %v4530_v60 = vperm.slane %v4522_v45, %v7345_v35  ;;  %v2531_v28 = vsel %vm1972_vm1, %v7472_v7, 0.0 }
 0x247   :  { %v4520_v14 = vsel %vm4407_vm12, %v4519_v17, %v4350_v5  ;;  %2532 = vadd.xlane.f32.xlu0 %v2531_v28 }
 0x248   :  { %v4532_v10 = vsel %vm4407_vm12, %v4531_v37, %v4351_v41  ;;  %v4526_v52 = vperm.slane %v4520_v14, %v7345_v35  ;;  %v4581_v58 = vrot.slane %v4530_v60, 4  ;;  %v4534_v21 = vsel %vm4407_vm12, %v4353_v44, %v4533_v54  ;;  %v2479_v8 = vpop.xlane.xlu2 %2478 }
 0x249   :  { %v5976_v42 = vpop.eup %5975  ;;  %v4538_v19 = vperm.slane %v4532_v10, %v7345_v35  ;;  %v4542_v5 = vperm.slane %v4534_v21, %v7345_v35  ;;  %5979 = vrcp.f32 %v2479_v8  ;;  %v3966_v54 = vsel %vm3128_vm2, %v3105_v27, 0 }
 0x24a   :  { %v2655_v55 = vmul.f32 %v5976_v42, %v7028_v51  ;;  %v4569_v62 = vrot.slane %v4526_v52, 4  ;;  %v3333_v13 = vpop.f32.mrf.mxu2  ;;  %3975 = vmatpush.bf16.msrb.mxu0 %v3966_v54 }
 0x24b   :  { %v5978_v36 = vpop.eup %5977  ;;  %v4567_v33 = vrot.slane %v4538_v19, 4  ;;  %v3352_v44 = vpop.f32.mrf.mxu3  ;;  %v4579_v17 = vrot.slane %v4542_v5, 4  ;;  %v4582_v10 = vsel %vm4407_vm12, %v4542_v5, %v4581_v58  ;;  %v288_v5 = vld [vmem:[#allocation5 + $0x168] sm:$0xff] }
 0x24c   :  { %v2975_v41 = vsel %vm7481_vm5, %v2655_v55, 0.0  ;;  %v2654_v51 = vmul.f32 %v5978_v36, %v7058_v40  ;;  %v3314_v45 = vpop.f32.mrf.mxu1  ;;  %v2146_v37 = vpop.xlane.xlu0 %2145  ;;  %v7521_v58 = vsel %vm4407_vm12, %v4538_v19, %v4569_v62  ;;  %v3106_v27 = vpack.c.bf16 %v288_v5, %v288_v5 }
 0x24d   :  { %v3039_v28 = vpack.c.bf16 %v2975_v41, %v2975_v41  ;;  %v2222_v14 = vsub.f32 %v7084_v46, %v2146_v37  ;;  %v3371_v16 = vpop.f32.mrf.mxu0  ;;  %v7506_v24 = vsel %vm4407_vm12, %v4567_v33, %v4526_v52  ;;  %v7511_v42 = vsel %vm4407_vm12, %v4579_v17, %v4530_v60  ;;  %v2720_v46 = vld [vmem:[%s8325_s3 + $0x158] sm:$0xff]  ;;  %v2723_v52 = vld [vmem:[%s8325_s3 + $0x170] sm:$0xff] }
 0x24e   :  { %v2974_v6 = vsel %vm7495_vm6, %v2654_v51, 0.0  ;;  %v3108_v36 = vpack.c.bf16 %v290_v31, %v290_v31  ;;  %v5686_v3 = vxor.u32 2147483648, %v2720_v46  ;;  %v5689_v44 = vxor.u32 2147483648, %v2723_v52  ;;  %v2721_v52 = vld [vmem:[%s8325_s3 + $0x160] sm:$0xff] }
 0x24f   :  { %v3038_v40 = vpack.c.bf16 %v2974_v6, %v2974_v6  ;;  %v2343_v21 = vmul.f32 1.442695, %v2222_v14  ;;  %5749 = vmatmul.msk.bf16.vlgmr.msra.gmra.mxu2 %vm1972_vm1, %v3039_v28  ;;  %v5980_v8 = vpop.eup %5979  ;;  %v4545_v41 = vrot.slane %v4354_v15, 4  ;;  %v3985_v54 = vsel %vm3128_vm2, %v3106_v27, 0  ;;  %v7586_v27 = vld [vmem:[%s8325_s3 + $0x168] sm:$0xff] }
 0x250   :  { %v2653_v60 = vmul.f32 %v5980_v8, %v7086_v34  ;;  %v2488_v55 = vpop.xlane.xlu2 %2487  ;;  %v4023_v28 = vsel %vm3128_vm2, %v3108_v36, 0  ;;  %3994 = vmatpush.bf16.msrb.mxu1 %v3985_v54  ;;  %vm7531_vm8 = vcmp.ge.s32.totalorder %v5686_v3, 3435973837  ;;  %vm7544_vm9 = vcmp.ge.s32.totalorder %v5689_v44, 3435973837 }
 0x251   :  { %5981 = vpow2.f32 %v2343_v21  ;;  %5748 = vmatmul.msk.bf16.vlgmr.msra.gmra.mxu1 %vm1972_vm1, %v3038_v40  ;;  %4032 = vmatpush.bf16.msrb.mxu3 %v4023_v28  ;;  %v7565_v54 = vperm.slane %v7506_v24, %v7403_v18  ;;  %v7576_v24 = vld [vmem:[%s8325_s3 + $0x178] sm:$0xff] }
 0x252   :  { %5983 = vrcp.f32 %v2488_v55  ;;  %v2973_v33 = vsel %vm2863_vm7, %v2653_v60, 0.0  ;;  %v3407_v0 = vpop.f32.mrf.mxu2  ;;  %v7540_v60 = vperm.slane %v4582_v10, %v7403_v18 }
 0x253   :  { %v3426_v13 = vpop.f32.mrf.mxu3  ;;  %v3037_v17 = vpack.c.bf16 %v2973_v33, %v2973_v33  ;;  %v4356_v62 = vmul.f32 1.4285715, %v3407_v0 }
 0x254   :  { %v3388_v19 = vpop.f32.mrf.mxu1  ;;  %v4357_v51 = vmul.f32 1.4285715, %v3426_v13  ;;  %v2497_v34 = vpop.xlane.xlu0 %2496 }
 0x255   :  { %v4355_v45 = vmul.f32 1.4285715, %v3388_v19  ;;  %5985 = vrcp.f32 %v2497_v34  ;;  %v3445_v37 = vpop.f32.mrf.mxu0  ;;  %v4543_v14 = vrot.slane %v4356_v62, 4  ;;  %v4546_v16 = vsel %vm4407_vm12, %v4356_v62, %v4545_v41  ;;  %5747 = vmatmul.msk.bf16.vlgmr.msra.gmra.mxu0 %vm1972_vm1, %v3037_v17 }
 0x256   :  { %v4555_v6 = vrot.slane %v4357_v51, 4  ;;  %v4554_v46 = vperm.slane %v4546_v16, %v7345_v35  ;;  %v5687_v17 = vxor.u32 2147483648, %v2721_v52 }
 0x257   :  { %v7529_v40 = vpop.eup %5981  ;;  %v4557_v8 = vrot.slane %v4355_v45, 4  ;;  %v4544_v5 = vsel %vm4407_vm12, %v4543_v14, %v4354_v15 }
 0x258   :  { %v5984_v55 = vpop.eup %5983  ;;  %v4556_v31 = vsel %vm4407_vm12, %v4555_v6, %v4355_v45  ;;  %v2528_v36 = vsel %vm1972_vm1, %v7529_v40, 0.0  ;;  %v4550_v3 = vperm.slane %v4544_v5, %v7345_v35  ;;  %v4605_v0 = vrot.slane %v4554_v46, 4  ;;  %v2152_v13 = vpop.xlane.xlu2 %2151 }
 0x259   :  { %v2656_v33 = vmul.f32 %v5984_v55, %v7097_v59  ;;  %v4558_v10 = vsel %vm4407_vm12, %v4357_v51, %v4557_v8  ;;  %2529 = vadd.xlane.f32.xlu0 %v2528_v36  ;;  %v4562_v15 = vperm.slane %v4556_v31, %v7345_v35  ;;  %v2224_v44 = vsub.f32 %v7122_v38, %v2152_v13 }
 0x25a   :  { %v4566_v41 = vperm.slane %v4558_v10, %v7345_v35  ;;  %v3409_v34 = vpop.f32.mrf.mxu2  ;;  %v4629_v45 = vrot.slane %v7540_v60, 4  ;;  %v7561_v51 = vperm.slane %v7511_v42, %v7403_v18  ;;  %v4593_v8 = vrot.slane %v4550_v3, 4 }
 0x25b   :  { %v5986_v19 = vpop.eup %5985  ;;  %v2976_v62 = vsel %vm7531_vm8, %v2656_v33, 0.0  ;;  %v3428_v59 = vpop.f32.mrf.mxu3  ;;  %v4591_v14 = vrot.slane %v4562_v15, 4  ;;  %v2347_v52 = vmul.f32 1.442695, %v2224_v44  ;;  %v4358_v10 = vmul.f32 1.4285715, %v3445_v37 }
 0x25c   :  { %v3040_v28 = vpack.c.bf16 %v2976_v62, %v2976_v62  ;;  %v4603_v38 = vrot.slane %v4566_v41, 4  ;;  %v2659_v16 = vmul.f32 %v5986_v19, %v7112_v29  ;;  %v3390_v6 = vpop.f32.mrf.mxu1  ;;  %v2161_v21 = vpop.xlane.xlu0 %2160  ;;  %v4606_v31 = vsel %vm4407_vm12, %v4566_v41, %v4605_v0  ;;  %v293_v44 = vld [vmem:[#allocation5 + $0x190] sm:$0xff]  ;;  %v294_v19 = vld [vmem:[#allocation5 + $0x198] sm:$0xff] }
 0x25d   :  { %v2227_v55 = vsub.f32 %v7137_v48, %v2161_v21  ;;  %v3447_v5 = vpop.f32.mrf.mxu0  ;;  %v7579_v29 = vperm.slane %v4606_v31, %v7403_v18  ;;  %v4592_v48 = vsel %vm4407_vm12, %v4591_v14, %v4550_v3  ;;  %5987 = vpow2.f32 %v2347_v52  ;;  %v291_v52 = vld [vmem:[#allocation5 + $0x180] sm:$0xff] }
 0x25e   :  { %v2979_v42 = vsel %vm7544_vm9, %v2659_v16, 0.0  ;;  %5750 = vmatmul.msk.bf16.vlgmr.msra.gmra.mxu3 %vm1972_vm1, %v3040_v28  ;;  %v4604_v36 = vsel %vm4407_vm12, %v4603_v38, %v4554_v46  ;;  %vm7596_vm10 = vcmp.ge.s32.totalorder %v5687_v17, 3435973837  ;;  %v4625_v62 = vrot.slane %v7561_v51, 4 }
 0x25f   :  { %v3043_v33 = vpack.c.bf16 %v2979_v42, %v2979_v42  ;;  %v7590_v0 = vsel %vm4407_vm12, %v7579_v29, %v4629_v45  ;;  %v7593_v13 = vperm.slane %v4604_v36, %v7403_v18  ;;  %v2353_v41 = vmul.f32 1.442695, %v2227_v55 }
 0x260   :  { %v2143_v37 = vpop.xlane.xlu2 %2142  ;;  %v7603_v34 = vsel %vm4407_vm12, %v4562_v15, %v4593_v8  ;;  %v3111_v28 = vpack.c.bf16 %v293_v44, %v293_v44  ;;  %v3112_v14 = vpack.c.bf16 %v294_v19, %v294_v19  ;;  %v4617_v17 = vrot.slane %v7565_v54, 4 }
 0x261   :  { %5753 = vmatmul.msk.bf16.vlgmr.msrb.gmra.mxu2 %vm1972_vm1, %v3043_v33  ;;  %v2491_v59 = vpop.xlane.xlu1 %2490  ;;  %v2221_v45 = vsub.f32 %v7157_v39, %v2143_v37  ;;  %v4633_v38 = vrot.slane %v4358_v10, 4  ;;  %v5688_v21 = vxor.u32 2147483648, %v7586_v27  ;;  %v7610_v55 = vsel %vm4407_vm12, %v7593_v13, %v4625_v62 }
 0x262   :  { %5989 = vrcp.f32 %v2491_v59  ;;  %v3483_v16 = vpop.f32.mrf.mxu2  ;;  %v7614_v39 = vperm.slane %v7521_v58, %v7403_v18  ;;  %v4080_v37 = vsel %vm3128_vm2, %v3111_v28, 0  ;;  %v4099_v44 = vsel %vm3128_vm2, %v3112_v14, 0 }
 0x263   :  { %v3502_v6 = vpop.f32.mrf.mxu3  ;;  %v2341_v15 = vmul.f32 1.442695, %v2221_v45  ;;  %v4360_v5 = vmul.f32 1.4285715, %v3483_v16  ;;  %v7616_v42 = vpop.eup %5987  ;;  %5991 = vpow2.f32 %v2353_v41  ;;  %4089 = vmatpush.bf16.msra.mxu2 %v4080_v37  ;;  %4108 = vmatpush.bf16.msra.mxu3 %v4099_v44  ;;  %v3109_v41 = vpack.c.bf16 %v291_v52, %v291_v52 }
 0x264   :  { %v3464_v8 = vpop.f32.mrf.mxu1  ;;  %v4361_v31 = vmul.f32 1.4285715, %v3502_v6  ;;  %v2534_v16 = vsel %vm1972_vm1, %v7616_v42, 0.0  ;;  %v4598_v14 = vperm.slane %v4592_v48, %v7403_v18  ;;  %v4602_v46 = vperm.slane %v7603_v34, %v7403_v18  ;;  %v2728_v34 = vld [vmem:[%s8325_s3 + $0x198] sm:$0xff] }
 0x265   :  { %v4359_v36 = vmul.f32 1.4285715, %v3464_v8  ;;  %v3521_v33 = vpop.f32.mrf.mxu0  ;;  %5993 = vpow2.f32 %v2341_v15  ;;  %v4631_v19 = vrot.slane %v4360_v5, 4  ;;  %v4634_v62 = vsel %vm4407_vm12, %v4360_v5, %v4633_v38  ;;  %2535 = vadd.xlane.f32.xlu1 %v2534_v16 }
 0x266   :  { %v4643_v59 = vrot.slane %v4361_v31, 4  ;;  %v4642_v58 = vperm.slane %v4634_v62, %v7345_v35  ;;  %v4621_v15 = vrot.slane %v7614_v39, 4  ;;  %vm2878_vm11 = vcmp.ge.s32.totalorder %v5688_v21, 3435973837 }
 0x267   :  { %v4645_v45 = vrot.slane %v4359_v36, 4  ;;  %v4632_v6 = vsel %vm4407_vm12, %v4631_v19, %v4358_v10 }
 0x268   :  { %v4644_v28 = vsel %vm4407_vm12, %v4643_v59, %v4359_v36  ;;  %v5990_v38 = vpop.eup %5989  ;;  %v4638_v8 = vperm.slane %v4632_v6, %v7345_v35  ;;  %v4693_v5 = vrot.slane %v4642_v58, 4  ;;  %v2494_v62 = vpop.xlane.xlu2 %2493  ;;  %v4623_v36 = vrot.slane %v7593_v13, 4 }
 0x269   :  { %v4646_v37 = vsel %vm4407_vm12, %v4361_v31, %v4645_v45  ;;  %v4650_v44 = vperm.slane %v4644_v28, %v7345_v35  ;;  %v2657_v52 = vmul.f32 %v5990_v38, %v7175_v11  ;;  %v2500_v19 = vpop.xlane.xlu1 %2499  ;;  %5995 = vrcp.f32 %v2494_v62  ;;  %v7634_v48 = vpop.eup %5991 }
 0x26a   :  { %v4654_v10 = vperm.slane %v4646_v37, %v7345_v35  ;;  %v4681_v59 = vrot.slane %v4638_v8, 4  ;;  %5997 = vrcp.f32 %v2500_v19  ;;  %v3485_v6 = vpop.f32.mrf.mxu2  ;;  %v4042_v31 = vsel %vm3128_vm2, %v3109_v41, 0 }
 0x26b   :  { %v4679_v16 = vrot.slane %v4650_v44, 4  ;;  %v3504_v3 = vpop.f32.mrf.mxu3  ;;  %v7637_v45 = vpop.eup %5993  ;;  %v2977_v11 = vsel %vm7596_vm10, %v2657_v52, 0.0  ;;  %4051 = vmatpush.bf16.msra.mxu0 %v4042_v31  ;;  %v7642_v37 = vsel %vm4407_vm12, %v4598_v14, %v4617_v17  ;;  %v4627_v41 = vrot.slane %v7579_v29, 4 }
 0x26c   :  { %v4691_v28 = vrot.slane %v4654_v10, 4  ;;  %v3466_v38 = vpop.f32.mrf.mxu1  ;;  %v7645_v13 = vsel %vm4407_vm12, %v4654_v10, %v4693_v5  ;;  %v3041_v62 = vpack.c.bf16 %v2977_v11, %v2977_v11  ;;  %v2525_v3 = vsel %vm1972_vm1, %v7637_v45, 0.0 }
 0x26d   :  { %v3523_v19 = vpop.f32.mrf.mxu0  ;;  %v4615_v6 = vrot.slane %v4598_v14, 4  ;;  %2526 = vadd.xlane.f32.xlu2 %v2525_v3  ;;  %v7653_v52 = vsel %vm4407_vm12, %v4650_v44, %v4681_v59  ;;  %v7659_v5 = vsel %vm4407_vm12, %v4679_v16, %v4638_v8  ;;  %v4362_v10 = vmul.f32 1.4285715, %v3521_v33 }
 0x26e   :  { %v7656_v17 = vsel %vm4407_vm12, %v4691_v28, %v4642_v58  ;;  %5751 = vmatmul.msk.bf16.vlgmr.msrb.gmra.mxu0 %vm1972_vm1, %v3041_v62  ;;  %v2543_v29 = vsel %vm1972_vm1, %v7634_v48, 0.0  ;;  %v4619_v58 = vrot.slane %v4602_v46, 4  ;;  %v7670_v44 = vsel %vm4407_vm12, %v4602_v46, %v4621_v15 }
 0x26f   :  { %v5996_v14 = vpop.eup %5995  ;;  %2544 = vadd.xlane.f32.xlu1 %v2543_v29  ;;  %v7674_v33 = vsel %vm4407_vm12, %v4623_v36, %v7561_v51  ;;  %v8392_v59 = vxor.u32 2147483648, %v7576_v24  ;;  %v7681_v21 = vsel %vm4407_vm12, %v4627_v41, %v7540_v60  ;;  %v7686_v15 = vsel %vm4407_vm12, %v4615_v6, %v7565_v54  ;;  %v292_v60 = vld [vmem:[#allocation5 + $0x188] sm:$0xff] }
 0x270   :  { %v5998_v8 = vpop.eup %5997  ;;  %v2658_v27 = vmul.f32 %v5996_v14, %v7197_v49  ;;  %8393 = vst [vmem:[#allocation12_spill] sm:$0xff] %v7686_v15  ;;  %v7690_v51 = vsel %vm4407_vm12, %v4619_v58, %v7614_v39  ;;  %v4657_v36 = vrot.slane %v4362_v10, 4  ;;  %v5694_v38 = vxor.u32 2147483648, %v2728_v34 }
 0x271   :  { %vm2884_vm13 = vcmp.ge.s32.totalorder %v8392_v59, 3435973837  ;;  %v2660_v16 = vmul.f32 %v5998_v8, %v7203_v57  ;;  %v2164_v31 = vpop.xlane.xlu1 %2163  ;;  %8394 = vst [vmem:[#allocation13_spill] sm:$0xff] %v7690_v51  ;;  %v3110_v34 = vpack.c.bf16 %v292_v60, %v292_v60 }
 0x272   :  { %v2978_v24 = vsel %vm2878_vm11, %v2658_v27, 0.0  ;;  %v2228_v11 = vsub.f32 %v7230_v25, %v2164_v31  ;;  %v3559_v49 = vpop.f32.mrf.mxu2  ;;  %v2727_v31 = vld [vmem:[%s8325_s3 + $0x190] sm:$0xff]  ;;  %vm7708_vm14 = vcmp.ge.s32.totalorder %v5694_v38, 3435973837 }
 0x273   :  { %v3578_v28 = vpop.f32.mrf.mxu3  ;;  %v2980_v62 = vsel %vm2884_vm13, %v2660_v16, 0.0  ;;  %v3042_v19 = vpack.c.bf16 %v2978_v24, %v2978_v24  ;;  %v4364_v3 = vmul.f32 1.4285715, %v3559_v49  ;;  %v2512_v46 = vpop.xlane.xlu0 %2511  ;;  %v298_v24 = vld [vmem:[#allocation5 + $0x1b8] sm:$0xff] }
 0x274   :  { %v3540_v57 = vpop.f32.mrf.mxu1  ;;  %v4365_v41 = vmul.f32 1.4285715, %v3578_v28  ;;  %v3044_v54 = vpack.c.bf16 %v2980_v62, %v2980_v62  ;;  %v2355_v6 = vmul.f32 1.442695, %v2228_v11  ;;  %5999 = vrcp.f32 %v2512_v46 }
 0x275   :  { %v4363_v29 = vmul.f32 1.4285715, %v3540_v57  ;;  %v7693_v39 = vpop.f32.mrf.mxu0  ;;  %v4655_v14 = vrot.slane %v4364_v3, 4  ;;  %v4658_v58 = vsel %vm4407_vm12, %v4364_v3, %v4657_v36  ;;  %5752 = vmatmul.msk.bf16.vlgmr.msrb.gmra.mxu1 %vm1972_vm1, %v3042_v19  ;;  %v4061_v57 = vsel %vm3128_vm2, %v3110_v34, 0  ;;  %v297_v3 = vld [vmem:[#allocation5 + $0x1b0] sm:$0xff] }
 0x276   :  { %v4667_v25 = vrot.slane %v4365_v41, 4  ;;  %6001 = vpow2.f32 %v2355_v6  ;;  %v4666_v59 = vperm.slane %v4658_v58, %v7345_v35  ;;  %5754 = vmatmul.msk.bf16.vlgmr.msrb.gmra.mxu3 %vm1972_vm1, %v3044_v54  ;;  %v5693_v6 = vxor.u32 2147483648, %v2727_v31  ;;  %4070 = vmatpush.bf16.msra.mxu1 %v4061_v57 }
 0x277   :  { %v4669_v8 = vrot.slane %v4363_v29, 4  ;;  %v4656_v27 = vsel %vm4407_vm12, %v4655_v14, %v4362_v10  ;;  %v3116_v58 = vpack.c.bf16 %v298_v24, %v298_v24 }
 0x278   :  { %v4668_v16 = vsel %vm4407_vm12, %v4667_v25, %v4363_v29  ;;  %v4662_v36 = vperm.slane %v4656_v27, %v7345_v35  ;;  %v4717_v11 = vrot.slane %v4666_v59, 4  ;;  %v2509_v60 = vpop.xlane.xlu2 %2508  ;;  %v2725_v27 = vld [vmem:[%s8325_s3 + $0x180] sm:$0xff]  ;;  %vm2893_vm15 = vcmp.ge.s32.totalorder %v5693_v6, 3435973837 }
 0x279   :  { %v4670_v49 = vsel %vm4407_vm12, %v4365_v41, %v4669_v8  ;;  %v4674_v28 = vperm.slane %v4668_v16, %v7345_v35  ;;  %6003 = vrcp.f32 %v2509_v60  ;;  %v2155_v10 = vpop.xlane.xlu1 %2154 }
 0x27a   :  { %v4678_v62 = vperm.slane %v4670_v49, %v7345_v35  ;;  %v6000_v46 = vpop.eup %5999  ;;  %v4705_v54 = vrot.slane %v4662_v36, 4  ;;  %v2225_v29 = vsub.f32 %v7257_v12, %v2155_v10  ;;  %v3561_v41 = vpop.f32.mrf.mxu2  ;;  %v3115_v49 = vpack.c.bf16 %v297_v3, %v297_v3 }
 0x27b   :  { %v3580_v14 = vpop.f32.mrf.mxu3  ;;  %v4703_v25 = vrot.slane %v4674_v28, 4  ;;  %v2503_v16 = vpop.xlane.xlu0 %2502  ;;  %v4175_v10 = vsel %vm3128_vm2, %v3116_v58, 0  ;;  %v2664_v57 = vmul.f32 %v6000_v46, %v7245_v1 }
 0x27c   :  { %v4715_v8 = vrot.slane %v4678_v62, 4  ;;  %v3542_v38 = vpop.f32.mrf.mxu1  ;;  %v4718_v34 = vsel %vm4407_vm12, %v4678_v62, %v4717_v11  ;;  %v7718_v60 = vpop.eup %6001  ;;  %v2349_v31 = vmul.f32 1.442695, %v2225_v29  ;;  %6005 = vrcp.f32 %v2503_v16  ;;  %4184 = vmatpush.bf16.msrb.mxu3 %v4175_v10 }
 0x27d   :  { %v3599_v12 = vpop.f32.mrf.mxu0  ;;  %v7722_v24 = vperm.slane %v4718_v34, %v7403_v18  ;;  %v2546_v41 = vsel %vm1972_vm1, %v7718_v60, 0.0  ;;  %v4156_v3 = vsel %vm3128_vm2, %v3115_v49, 0  ;;  %v4706_v11 = vsel %vm4407_vm12, %v4674_v28, %v4705_v54 }
 0x27e   :  { %6007 = vpow2.f32 %v2349_v31  ;;  %v5691_v62 = vxor.u32 2147483648, %v2725_v27  ;;  %2547 = vadd.xlane.f32.xlu2 %v2546_v41  ;;  %4165 = vmatpush.bf16.msrb.mxu2 %v4156_v3  ;;  %v7731_v29 = vperm.slane %v7645_v13, %v7403_v18  ;;  %v7735_v1 = vperm.slane %v4706_v11, %v7403_v18 }
 0x27f   :  { %v4739_v14 = vrot.slane %v7722_v24, 4  ;;  %v6004_v58 = vpop.eup %6003  ;;  %v4716_v46 = vsel %vm4407_vm12, %v4715_v8, %v4666_v59  ;;  %v4704_v38 = vsel %vm4407_vm12, %v4703_v25, %v4662_v36  ;;  %v2984_v6 = vsel %vm7708_vm14, %v2664_v57, 0.0 }
 0x280   :  { %v2663_v28 = vmul.f32 %v6004_v58, %v7266_v56  ;;  %v2158_v54 = vpop.xlane.xlu2 %2157  ;;  %v7741_v27 = vperm.slane %v4716_v46, %v7403_v18  ;;  %v4731_v49 = vrot.slane %v7735_v1, 4  ;;  %vm2887_vm3 = vcmp.ge.s32.totalorder %v5691_v62, 3435973837 }
 0x281   :  { %v7745_v13 = vsel %vm4407_vm12, %v4739_v14, %v7731_v29  ;;  %v2226_v16 = vsub.f32 %v7285_v26, %v2158_v54  ;;  %v7753_v25 = vperm.slane %v7653_v52, %v7403_v18  ;;  %v7756_v34 = vperm.slane %v4704_v38, %v7403_v18 }
 0x282   :  { %v6006_v59 = vpop.eup %6005  ;;  %v2983_v8 = vsel %vm2893_vm15, %v2663_v28, 0.0  ;;  %v3635_v36 = vpop.f32.mrf.mxu2  ;;  %v4735_v26 = vrot.slane %v7741_v27, 4  ;;  %v3048_v41 = vpack.c.bf16 %v2984_v6, %v2984_v6  ;;  %v7769_v62 = vperm.slane %v7656_v17, %v7403_v18  ;;  %v2732_v17 = vld [vmem:[%s8325_s3 + $0x1b8] sm:$0xff] }
 0x283   :  { %v3654_v56 = vpop.f32.mrf.mxu3  ;;  %v3047_v31 = vpack.c.bf16 %v2983_v8, %v2983_v8  ;;  %v2661_v19 = vmul.f32 %v6006_v59, %v7278_v32  ;;  %v2351_v12 = vmul.f32 1.442695, %v2226_v16  ;;  %v7764_v11 = vsel %vm4407_vm12, %v4731_v49, %v7753_v25  ;;  %v2726_v59 = vld [vmem:[%s8325_s3 + $0x188] sm:$0xff] }
 0x284   :  { %v3616_v10 = vpop.f32.mrf.mxu1  ;;  %v7760_v57 = vpop.eup %6007  ;;  %8397 = vst [vmem:[#allocation14_spill] sm:$0xff] %v7764_v11  ;;  %v4368_v14 = vmul.f32 1.4285715, %v3635_v36  ;;  %v4727_v58 = vrot.slane %v7756_v34, 4  ;;  %v4369_v46 = vmul.f32 1.4285715, %v3654_v56  ;;  %v7777_v28 = vsel %vm4407_vm12, %v4735_v26, %v7769_v62 }
 0x285   :  { %v3673_v3 = vpop.f32.mrf.mxu0  ;;  %v2981_v52 = vsel %vm2887_vm3, %v2661_v19, 0.0  ;;  %6009 = vpow2.f32 %v2351_v12  ;;  %5757 = vmatmul.msk.bf16.vlgmr.msra.gmra.mxu2 %vm1972_vm1, %v3047_v31  ;;  %v2537_v38 = vsel %vm1972_vm1, %v7760_v57, 0.0  ;;  %8398 = vst [vmem:[#allocation11_spill] sm:$0xff] %v7777_v28  ;;  %v4366_v54 = vmul.f32 1.4285715, %v7693_v39 }
 0x286   :  { %v3045_v32 = vpack.c.bf16 %v2981_v52, %v2981_v52  ;;  %5758 = vmatmul.msk.bf16.vlgmr.msra.gmra.mxu3 %vm1972_vm1, %v3048_v41  ;;  %2538 = vadd.xlane.f32.xlu0 %v2537_v38  ;;  %v7786_v16 = vperm.slane %v7659_v5, %v7403_v18  ;;  %v4367_v49 = vmul.f32 1.4285715, %v3616_v10  ;;  %v4743_v39 = vrot.slane %v4368_v14, 4 }
 0x287   :  { %v4755_v12 = vrot.slane %v4369_v46, 4  ;;  %v5698_v5 = vxor.u32 2147483648, %v2732_v17  ;;  %v4745_v10 = vrot.slane %v4366_v54, 4  ;;  %v5692_v41 = vxor.u32 2147483648, %v2726_v59 }
 0x288   :  { %5755 = vmatmul.msk.bf16.vlgmr.msra.gmra.mxu0 %vm1972_vm1, %v3045_v32  ;;  %v2524_v6 = vpop.xlane.xlu0 %2523  ;;  %v7793_v31 = vsel %vm4407_vm12, %v4727_v58, %v7786_v16  ;;  %v4757_v38 = vrot.slane %v4367_v49, 4  ;;  %v4744_v58 = vsel %vm4407_vm12, %v4743_v39, %v4366_v54 }
 0x289   :  { %6011 = vrcp.f32 %v2524_v6  ;;  %v2506_v8 = vpop.xlane.xlu1 %2505  ;;  %8399 = vst [vmem:[#allocation15_spill] sm:$0xff] %v7793_v31  ;;  %v2731_v6 = vld [vmem:[%s8325_s3 + $0x1b0] sm:$0xff]  ;;  %v4756_v17 = vsel %vm4407_vm12, %v4755_v12, %v4367_v49  ;;  %vm2908_vm4 = vcmp.ge.s32.totalorder %v5698_v5, 3435973837  ;;  %vm2890_vm5 = vcmp.ge.s32.totalorder %v5692_v41, 3435973837 }
 0x28a   :  { %6013 = vrcp.f32 %v2506_v8  ;;  %v3637_v36 = vpop.f32.mrf.mxu2  ;;  %v4746_v8 = vsel %vm4407_vm12, %v4368_v14, %v4745_v10  ;;  %v4758_v28 = vsel %vm4407_vm12, %v4369_v46, %v4757_v38 }
 0x28b   :  { %v3656_v56 = vpop.f32.mrf.mxu3  ;;  %v7795_v19 = vpop.eup %6009  ;;  %v4370_v36 = vmul.f32 1.4285715, %v3673_v3  ;;  %v7808_v31 = vperm.slane %v4746_v8, %v7345_v35  ;;  %v4762_v3 = vperm.slane %v4756_v17, %v7345_v35  ;;  %v4766_v46 = vperm.slane %v4758_v28, %v7345_v35 }
 0x28c   :  { %v3618_v26 = vpop.f32.mrf.mxu1  ;;  %v2540_v32 = vsel %vm1972_vm1, %v7795_v19, 0.0 }
 0x28d   :  { %v3675_v52 = vpop.f32.mrf.mxu0  ;;  %2541 = vadd.xlane.f32.xlu1 %v2540_v32  ;;  %v4750_v32 = vperm.slane %v4744_v58, %v7345_v35  ;;  %v4769_v39 = vrot.slane %v4370_v36, 4 }
 0x28e   :  { %v5697_v52 = vxor.u32 2147483648, %v2731_v6 }
 0x28f   :  { %v6012_v56 = vpop.eup %6011 }
 0x290   :  { %v6014_v59 = vpop.eup %6013  ;;  %v2668_v26 = vmul.f32 %v6012_v56, %v7321_v53  ;;  %vm7822_vm6 = vcmp.ge.s32.totalorder %v5697_v52, 3435973837 }
 0x291   :  { %v2662_v54 = vmul.f32 %v6014_v59, %v7323_v20  ;;  %v2521_v14 = vpop.xlane.xlu2 %2520  ;;  %v4793_v59 = vrot.slane %v4750_v32, 4 }
 0x292   :  { %v2988_v49 = vsel %vm2908_vm4, %v2668_v26, 0.0  ;;  %6015 = vrcp.f32 %v2521_v14  ;;  %v3711_v12 = vpop.f32.mrf.mxu2  ;;  %v4805_v26 = vrot.slane %v7808_v31, 4 }
 0x293   :  { %v3730_v5 = vpop.f32.mrf.mxu3  ;;  %v3052_v53 = vpack.c.bf16 %v2988_v49, %v2988_v49  ;;  %v2982_v10 = vsel %vm2890_vm5, %v2662_v54, 0.0  ;;  %v4372_v6 = vmul.f32 1.4285715, %v3711_v12  ;;  %v4791_v54 = vrot.slane %v4762_v3, 4 }
 0x294   :  { %v3692_v41 = vpop.f32.mrf.mxu1  ;;  %v4373_v58 = vmul.f32 1.4285715, %v3730_v5  ;;  %v3046_v56 = vpack.c.bf16 %v2982_v10, %v2982_v10 }
 0x295   :  { %v4371_v8 = vmul.f32 1.4285715, %v3692_v41  ;;  %v7813_v11 = vpop.f32.mrf.mxu0  ;;  %v4767_v20 = vrot.slane %v4372_v6, 4  ;;  %v4770_v38 = vsel %vm4407_vm12, %v4372_v6, %v4769_v39 }
 0x296   :  { %v4779_v17 = vrot.slane %v4373_v58, 4  ;;  %v4778_v49 = vperm.slane %v4770_v38, %v7345_v35  ;;  %5762 = vmatmul.msk.bf16.vlgmr.msrb.gmra.mxu3 %vm1972_vm1, %v3052_v53  ;;  %5311 = vrot.lane.b32.xlu2 %v7448_v50, %s6121_s7  ;;  %v4803_v50 = vrot.slane %v4766_v46, 4 }
 0x297   :  { %v4781_v14 = vrot.slane %v4371_v8, 4  ;;  %v4768_v28 = vsel %vm4407_vm12, %v4767_v20, %v4370_v36  ;;  %5756 = vmatmul.msk.bf16.vlgmr.msra.gmra.mxu1 %vm1972_vm1, %v3046_v56  ;;  %v4806_v56 = vsel %vm4407_vm12, %v4766_v46, %v4805_v26 }
 0x298   :  { %v4780_v39 = vsel %vm4407_vm12, %v4779_v17, %v4371_v8  ;;  %v6016_v5 = vpop.eup %6015  ;;  %v4774_v10 = vperm.slane %v4768_v28, %v7345_v35  ;;  %v4829_v41 = vrot.slane %v4778_v49, 4  ;;  %v4794_v8 = vsel %vm4407_vm12, %v4762_v3, %v4793_v59 }
 0x299   :  { %v4782_v53 = vsel %vm4407_vm12, %v4373_v58, %v4781_v14  ;;  %v4786_v6 = vperm.slane %v4780_v39, %v7345_v35  ;;  %v2667_v52 = vmul.f32 %v6016_v5, %v7347_v63  ;;  %v4792_v14 = vsel %vm4407_vm12, %v4791_v54, %v4750_v32 }
 0x29a   :  { %v4790_v38 = vperm.slane %v4782_v53, %v7345_v35  ;;  %v4817_v51 = vrot.slane %v4774_v10, 4  ;;  %v3713_v36 = vpop.f32.mrf.mxu2  ;;  %5375 = vrot.lane.b32.xlu0 %v7438_v30, %s6121_s7  ;;  %v295_v53 = vld [vmem:[#allocation5 + $0x1a0] sm:$0xff]  ;;  %v4804_v32 = vsel %vm4407_vm12, %v4803_v50, %v7808_v31 }
 0x29b   :  { %v4815_v15 = vrot.slane %v4786_v6, 4  ;;  %v3732_v20 = vpop.f32.mrf.mxu3  ;;  %v2987_v17 = vsel %vm7822_vm6, %v2667_v52, 0.0  ;;  %v3113_v59 = vpack.c.bf16 %v295_v53, %v295_v53  ;;  %v301_v53 = vld [vmem:[#allocation5 + $0x1d0] sm:$0xff] }
 0x29c   :  { %v4827_v28 = vrot.slane %v4790_v38, 4  ;;  %v3694_v58 = vpop.f32.mrf.mxu1  ;;  %v4830_v39 = vsel %vm4407_vm12, %v4790_v38, %v4829_v41  ;;  %v3051_v63 = vpack.c.bf16 %v2987_v17, %v2987_v17  ;;  %v4818_v3 = vsel %vm4407_vm12, %v4786_v6, %v4817_v51 }
 0x29d   :  { %v3751_v5 = vpop.f32.mrf.mxu0  ;;  %v4816_v36 = vsel %vm4407_vm12, %v4815_v15, %v4774_v10  ;;  %v7845_v46 = vperm.slane %v4830_v39, %v7403_v18  ;;  %v7860_v15 = vperm.slane %v4818_v3, %v7403_v18  ;;  %v4118_v12 = vsel %vm3128_vm2, %v3113_v59, 0 }
 0x29e   :  { %v7848_v26 = vperm.slane %v4816_v36, %v7403_v18  ;;  %v4828_v54 = vsel %vm4407_vm12, %v4827_v28, %v4778_v49  ;;  %5761 = vmatmul.msk.bf16.vlgmr.msrb.gmra.mxu2 %vm1972_vm1, %v3051_v63  ;;  %5343 = vrot.lane.b32.xlu2 %v7457_v47, %s6121_s7  ;;  %v7865_v10 = vperm.slane %v4792_v14, %v7403_v18  ;;  %v4374_v58 = vmul.f32 1.4285715, %v7813_v11  ;;  %v296_v5 = vld [vmem:[#allocation5 + $0x1a8] sm:$0xff] }
 0x29f   :  { %v7857_v30 = vperm.slane %v4828_v54, %v7403_v18  ;;  %v4851_v51 = vrot.slane %v7845_v46, 4  ;;  %v7869_v49 = vperm.slane %v4806_v56, %v7403_v18  ;;  %4127 = vmatpush.bf16.msrb.mxu0 %v4118_v12  ;;  %v7872_v47 = vperm.slane %v4804_v32, %v7403_v18 }
 0x2a0   :  { %v4839_v31 = vrot.slane %v7848_v26, 4  ;;  %v7876_v6 = vperm.slane %v4794_v8, %v7403_v18  ;;  %v4843_v50 = vrot.slane %v7860_v15, 4  ;;  %v3114_v36 = vpack.c.bf16 %v296_v5, %v296_v5 }
 0x2a1   :  { %v4847_v41 = vrot.slane %v7857_v30, 4  ;;  %v7885_v38 = vsel %vm4407_vm12, %v4851_v51, %v7869_v49  ;;  %v3119_v3 = vpack.c.bf16 %v301_v53, %v301_v53  ;;  %v4857_v59 = vrot.slane %v4374_v58, 4 }
 0x2a2   :  { %v7881_v52 = vsel %vm4407_vm12, %v4839_v31, %v7865_v10  ;;  %v3787_v20 = vpop.f32.mrf.mxu2  ;;  %v7889_v17 = vsel %vm4407_vm12, %v4843_v50, %v7876_v6  ;;  %5409 = vrot.lane.b32.xlu0 %v7590_v0, %s6121_s7  ;;  %v2729_v0 = vld [vmem:[%s8325_s3 + $0x1a0] sm:$0xff]  ;;  %v4137_v51 = vsel %vm3128_vm2, %v3114_v36, 0  ;;  %v4737_v36 = vrot.slane %v7769_v62, 4  ;;  %v7933_v62 = vld [vmem:[%s8325_s3 + $0x1d0] sm:$0xff] }
 0x2a3   :  { %v3806_v56 = vpop.f32.mrf.mxu3  ;;  %v7893_v8 = vsel %vm4407_vm12, %v4847_v41, %v7872_v47  ;;  %v4376_v63 = vmul.f32 1.4285715, %v3787_v20  ;;  %v4232_v12 = vsel %vm3128_vm2, %v3119_v3, 0  ;;  %4146 = vmatpush.bf16.msrb.mxu1 %v4137_v51  ;;  %v5695_v5 = vxor.u32 2147483648, %v2729_v0 }
 0x2a4   :  { %v3768_v28 = vpop.f32.mrf.mxu1  ;;  %v4377_v32 = vmul.f32 1.4285715, %v3806_v56  ;;  %4241 = vmatpush.bf16.msra.mxu2 %v4232_v12  ;;  %v4849_v0 = vrot.slane %v7872_v47, 4 }
 0x2a5   :  { %v3825_v14 = vpop.f32.mrf.mxu0  ;;  %v4375_v39 = vmul.f32 1.4285715, %v3768_v28  ;;  %v4855_v11 = vrot.slane %v4376_v63, 4  ;;  %v4858_v50 = vsel %vm4407_vm12, %v4376_v63, %v4857_v59  ;;  %v4733_v28 = vrot.slane %v7753_v25, 4 }
 0x2a6   :  { %5377 = vrot.lane.b32.xlu2 %v7610_v55, %s6121_s7  ;;  %5407 = vrot.lane.b32.xlu1 %v7464_v43, %s6121_s7  ;;  %v4741_v55 = vrot.slane %v7731_v29, 4  ;;  %v2730_v43 = vld [vmem:[%s8325_s3 + $0x1a8] sm:$0xff]  ;;  %v4867_v51 = vrot.slane %v4377_v32, 4  ;;  %v7921_v12 = vperm.slane %v4858_v50, %v7345_v35  ;;  %v4738_v25 = vsel %vm4407_vm12, %v7741_v27, %v4737_v36 }
 0x2a7   :  { %v4869_v54 = vrot.slane %v4375_v39, 4  ;;  %v4856_v3 = vsel %vm4407_vm12, %v4855_v11, %v4374_v58  ;;  %v5696_v59 = vxor.u32 2147483648, %v2730_v43  ;;  %v4729_v58 = vrot.slane %v7786_v16, 4 }
 0x2a8   :  { %v4742_v29 = vsel %vm4407_vm12, %v7722_v24, %v4741_v55  ;;  %v4734_v24 = vsel %vm4407_vm12, %v7735_v1, %v4733_v28  ;;  %vm7940_vm7 = vcmp.ge.s32.totalorder %v5695_v5, 3435973837  ;;  %v4841_v1 = vrot.slane %v7865_v10, 4 }
 0x2a9   :  { %v4870_v63 = vsel %vm4407_vm12, %v4377_v32, %v4869_v54  ;;  %v7937_v32 = vperm.slane %v4856_v3, %v7345_v35  ;;  %v4868_v27 = vsel %vm4407_vm12, %v4867_v51, %v4375_v39  ;;  %vm7946_vm8 = vcmp.ge.s32.totalorder %v5696_v59, 3435973837 }
 0x2aa   :  { %v3789_v31 = vpop.f32.mrf.mxu2  ;;  %5313 = vrot.lane.b32.xlu0 %v7642_v37, %s6121_s7  ;;  %v4378_v37 = vmul.f32 1.4285715, %v3825_v14  ;;  %v4878_v54 = vperm.slane %v4870_v63, %v7345_v35  ;;  %v4917_v55 = vrot.slane %v7921_v12, 4  ;;  %v4842_v10 = vsel %vm4407_vm12, %v7848_v26, %v4841_v1 }
 0x2ab   :  { %v3808_v41 = vpop.f32.mrf.mxu3  ;;  %v2515_v56 = vpop.xlane.xlu1 %2514  ;;  %v4845_v31 = vrot.slane %v7876_v6, 4  ;;  %v5701_v39 = vxor.u32 2147483648, %v7933_v62  ;;  %v4905_v47 = vrot.slane %v7937_v32, 4  ;;  %v4874_v6 = vperm.slane %v4868_v27, %v7345_v35 }
 0x2ac   :  { %v3770_v20 = vpop.f32.mrf.mxu1  ;;  %6017 = vrcp.f32 %v2515_v56  ;;  %v4918_v27 = vsel %vm4407_vm12, %v4878_v54, %v4917_v55 }
 0x2ad   :  { %v3827_v53 = vpop.f32.mrf.mxu0  ;;  %v4881_v20 = vrot.slane %v4378_v37, 4  ;;  %vm2917_vm9 = vcmp.ge.s32.totalorder %v5701_v39, 3435973837 }
 0x2ae   :  { %5411 = vrot.lane.b32.xlu2 %v4742_v29, %s6121_s7  ;;  %5345 = vrot.lane.b32.xlu1 %v7670_v44, %s6121_s7  ;;  %v4915_v29 = vrot.slane %v4878_v54, 4  ;;  %v4850_v44 = vsel %vm4407_vm12, %v7857_v30, %v4849_v0  ;;  %v4903_v54 = vrot.slane %v4874_v6, 4  ;;  %v4926_v30 = vperm.slane %v4918_v27, %v7403_v18 }
 0x2af   :  { %v4730_v27 = vsel %vm4407_vm12, %v7756_v34, %v4729_v58 }
 0x2b2   :  { %v2518_v11 = vpop.xlane.xlu2 %2517  ;;  %v6018_v41 = vpop.eup %6017  ;;  %5347 = vrot.lane.b32.xlu0 %v4734_v24, %s6121_s7 }
 0x2b3   :  { %6019 = vrcp.f32 %v2518_v11  ;;  %v3863_v43 = vpop.f32.mrf.mxu2  ;;  %v3882_v50 = vpop.f32.mrf.mxu3  ;;  %v2665_v56 = vmul.f32 %v6018_v41, %v7411_v2  ;;  %v4846_v41 = vsel %vm4407_vm12, %v7860_v15, %v4845_v31 }
 0x2b4   :  { %v3844_v28 = vpop.f32.mrf.mxu1  ;;  %v4380_v5 = vmul.f32 1.4285715, %v3863_v43  ;;  %v4381_v53 = vmul.f32 1.4285715, %v3882_v50 }
 0x2b5   :  { %v4379_v36 = vmul.f32 1.4285715, %v3844_v28  ;;  %v2985_v3 = vsel %vm7940_vm7, %v2665_v56, 0.0  ;;  %v4916_v28 = vsel %vm4407_vm12, %v4915_v29, %v7921_v12 }
 0x2b6   :  { %v4879_v26 = vrot.slane %v4380_v5, 4  ;;  %v4882_v51 = vsel %vm4407_vm12, %v4380_v5, %v4881_v20  ;;  %v4891_v63 = vrot.slane %v4381_v53, 4  ;;  %v3049_v59 = vpack.c.bf16 %v2985_v3, %v2985_v3  ;;  %5317 = vrot.lane.b32.xlu2 %v4842_v10, %s6121_s7  ;;  %5379 = vrot.lane.b32.xlu1 %v4738_v25, %s6121_s7 }
 0x2b7   :  { %v4893_v2 = vrot.slane %v4379_v36, 4  ;;  %v4890_v1 = vperm.slane %v4882_v51, %v7345_v35  ;;  %v4906_v5 = vsel %vm4407_vm12, %v4874_v6, %v4905_v47 }
 0x2b8   :  { %v4880_v24 = vsel %vm4407_vm12, %v4879_v26, %v4378_v37  ;;  %v4892_v11 = vsel %vm4407_vm12, %v4891_v63, %v4379_v36  ;;  %5759 = vmatmul.msk.bf16.vlgmr.msrb.gmra.mxu0 %vm1972_vm1, %v3049_v59 }
 0x2b9   :  { %v6020_v43 = vpop.eup %6019  ;;  %v4886_v50 = vperm.slane %v4880_v24, %v7345_v35  ;;  %v4941_v20 = vrot.slane %v4890_v1, 4  ;;  %v4894_v10 = vsel %vm4407_vm12, %v4381_v53, %v4893_v2  ;;  %v4898_v25 = vperm.slane %v4892_v11, %v7345_v35  ;;  %v300_v53 = vld [vmem:[#allocation5 + $0x1c8] sm:$0xff] }
 0x2ba   :  { %v2666_v37 = vmul.f32 %v6020_v43, %v7434_v9  ;;  %v4902_v55 = vperm.slane %v4894_v10, %v7345_v35  ;;  %v2533_v15 = vpop.xlane.xlu0 %2532  ;;  %5381 = vrot.lane.b32.xlu0 %v4850_v44, %s6121_s7  ;;  %v3118_v29 = vpack.c.bf16 %v300_v53, %v300_v53  ;;  %v4922_v44 = vperm.slane %v4916_v28, %v7403_v18 }
 0x2bb   :  { %v4929_v0 = vrot.slane %v4886_v50, 4  ;;  %v4927_v56 = vrot.slane %v4898_v25, 4  ;;  %v3865_v31 = vpop.f32.mrf.mxu2  ;;  %6021 = vrcp.f32 %v2533_v15  ;;  %v3884_v26 = vpop.f32.mrf.mxu3  ;;  %v4914_v43 = vperm.slane %v4906_v5, %v7403_v18  ;;  %v2734_v5 = vld [vmem:[%s8325_s3 + $0x1c8] sm:$0xff] }
 0x2bc   :  { %v2986_v36 = vsel %vm7946_vm8, %v2666_v37, 0.0  ;;  %v4939_v3 = vrot.slane %v4902_v55, 4  ;;  %v3846_v9 = vpop.f32.mrf.mxu1  ;;  %v4942_v51 = vsel %vm4407_vm12, %v4902_v55, %v4941_v20  ;;  %v4965_v20 = vrot.slane %v4926_v30, 4 }
 0x2bd   :  { %v3050_v63 = vpack.c.bf16 %v2986_v36, %v2986_v36  ;;  %v4950_v59 = vperm.slane %v4942_v51, %v7403_v18  ;;  %v4928_v2 = vsel %vm4407_vm12, %v4927_v56, %v4886_v50  ;;  %v4930_v12 = vsel %vm4407_vm12, %v4898_v25, %v4929_v0 }
 0x2be   :  { %v4940_v47 = vsel %vm4407_vm12, %v4939_v3, %v4890_v1  ;;  %v4934_v14 = vperm.slane %v4928_v2, %v7403_v18  ;;  %v4938_v6 = vperm.slane %v4930_v12, %v7403_v18  ;;  %5349 = vrot.lane.b32.xlu2 %v4846_v41, %s6121_s7  ;;  %v4904_v1 = vsel %vm4407_vm12, %v4903_v54, %v7937_v32  ;;  %v302_v3 = vld [vmem:[#allocation5 + $0x1d8] sm:$0xff] }
 0x2bf   :  { %5760 = vmatmul.msk.bf16.vlgmr.msrb.gmra.mxu1 %vm1972_vm1, %v3050_v63  ;;  %v4963_v24 = vrot.slane %v4950_v59, 4  ;;  %v4946_v11 = vperm.slane %v4940_v47, %v7403_v18  ;;  %5315 = vrot.lane.b32.xlu1 %v4730_v27, %s6121_s7  ;;  %v4213_v50 = vsel %vm3128_vm2, %v3118_v29, 0  ;;  %v4910_v32 = vperm.slane %v4904_v1, %v7403_v18  ;;  %v299_v47 = vld [vmem:[#allocation5 + $0x1c0] sm:$0xff] }
 0x2c0   :  { %v4955_v41 = vrot.slane %v4938_v6, 4  ;;  %4222 = vmatpush.bf16.msra.mxu1 %v4213_v50  ;;  %v4951_v10 = vrot.slane %v4934_v14, 4  ;;  %v4966_v62 = vsel %vm4407_vm12, %v4950_v59, %v4965_v20  ;;  %v4961_v39 = vrot.slane %v4922_v44, 4  ;;  %v2736_v50 = vld [vmem:[%s8325_s3 + $0x1d8] sm:$0xff] }
 0x2c1   :  { %v4959_v16 = vrot.slane %v4946_v11, 4  ;;  %v8009_v34 = vsel %vm4407_vm12, %v4963_v24, %v4926_v30  ;;  %v6022_v58 = vpop.eup %6021  ;;  %v4853_v30 = vrot.slane %v7869_v49, 4  ;;  %v4953_v31 = vrot.slane %v4910_v32, 4 }
 0x2c2   :  { %v8013_v25 = vsel %vm4407_vm12, %v4955_v41, %v4914_v43  ;;  %v2671_v54 = vmul.f32 %v6022_v58, %v7472_v7  ;;  %v8021_v55 = vsel %vm4407_vm12, %v4951_v10, %v4910_v32  ;;  %5415 = vrot.lane.b32.xlu0 %v4966_v62, %s6121_s7  ;;  %v4962_v15 = vsel %vm4407_vm12, %v4946_v11, %v4961_v39  ;;  %v306_v32 = vld [vmem:[#allocation5 + $0x1f8] sm:$0xff] }
 0x2c3   :  { %v8017_v37 = vsel %vm4407_vm12, %v4959_v16, %v4922_v44  ;;  %v4854_v7 = vsel %vm4407_vm12, %v7845_v46, %v4853_v30  ;;  %v4954_v28 = vsel %vm4407_vm12, %v4934_v14, %v4953_v31  ;;  %v4957_v53 = vrot.slane %v4914_v43, 4  ;;  %v305_v14 = vld [vmem:[#allocation5 + $0x1f0] sm:$0xff] }
 0x2c4   :  { %v2991_v0 = vsel %vm2917_vm9, %v2671_v54, 0.0  ;;  %v5700_v9 = vxor.u32 2147483648, %v2734_v5  ;;  %v3120_v26 = vpack.c.bf16 %v302_v3, %v302_v3  ;;  %v3117_v29 = vpack.c.bf16 %v299_v47, %v299_v47  ;;  %v304_v47 = vld [vmem:[#allocation5 + $0x1e8] sm:$0xff] }
 0x2c5   :  { %v3055_v56 = vpack.c.bf16 %v2991_v0, %v2991_v0  ;;  %v4958_v46 = vsel %vm4407_vm12, %v4938_v6, %v4957_v53  ;;  %v3123_v27 = vpack.c.bf16 %v305_v14, %v305_v14  ;;  %v5702_v62 = vxor.u32 2147483648, %v2736_v50  ;;  %v2739_v53 = vld [vmem:[%s8325_s3 + $0x1f0] sm:$0xff] }
 0x2c6   :  { %5383 = vrot.lane.b32.xlu2 %v4962_v15, %s6121_s7  ;;  %v4251_v51 = vsel %vm3128_vm2, %v3120_v26, 0  ;;  %vm2914_vm10 = vcmp.ge.s32.totalorder %v5700_v9, 3435973837  ;;  %v4194_v44 = vsel %vm3128_vm2, %v3117_v29, 0  ;;  %v3124_v39 = vpack.c.bf16 %v306_v32, %v306_v32  ;;  %v2733_v15 = vld [vmem:[%s8325_s3 + $0x1c0] sm:$0xff] }
 0x2c7   :  { %5765 = vmatmul.msk.bf16.vlgmr.msra.gmra.mxu2 %vm1972_vm1, %v3055_v56  ;;  %5413 = vrot.lane.b32.xlu1 %v4854_v7, %s6121_s7  ;;  %v4308_v43 = vsel %vm3128_vm2, %v3123_v27, 0  ;;  %vm2920_vm11 = vcmp.ge.s32.totalorder %v5702_v62, 3435973837  ;;  %v5699_v9 = vxor.u32 2147483648, %v2733_v15  ;;  %v3122_v27 = vpack.c.bf16 %v304_v47, %v304_v47 }
 0x2c8   :  { %4260 = vmatpush.bf16.msra.mxu3 %v4251_v51  ;;  %4203 = vmatpush.bf16.msra.mxu0 %v4194_v44  ;;  %v4327_v0 = vsel %vm3128_vm2, %v3124_v39, 0 }
 0x2c9   :  { %4317 = vmatpush.bf16.msrb.mxu2 %v4308_v43  ;;  %vm2911_vm13 = vcmp.ge.s32.totalorder %v5699_v9, 3435973837  ;;  %v4289_v43 = vsel %vm3128_vm2, %v3122_v27, 0 }
 0x2ca   :  { %5319 = vrot.lane.b32.xlu0 %v4954_v28, %s6121_s7  ;;  %4298 = vmatpush.bf16.msrb.mxu1 %v4289_v43 }
 0x2cc   :  { %v2530_v49 = vpop.xlane.xlu0 %2529  ;;  %4336 = vmatpush.bf16.msrb.mxu3 %v4327_v0 }
 0x2cd   :  { %6023 = vrcp.f32 %v2530_v49 }
 0x2ce   :  { %v3920_v36 = vpop.f32.mrf.mxu1 }
 0x2cf   :  { %5351 = vrot.lane.b32.xlu1 %v4958_v46, %s6121_s7  ;;  %v4383_v10 = vmul.f32 1.4285715, %v3920_v36 }
 0x2d1   :  { %v4981_v28 = vrot.slane %v4383_v10, 4 }
 0x2d2   :  { %v3939_v63 = vpop.f32.mrf.mxu2  ;;  %v3901_v2 = vpop.f32.mrf.mxu0 }
 0x2d3   :  { %v6024_v59 = vpop.eup %6023  ;;  %v8040_v11 = vmul.f32 1.4285715, %v3901_v2  ;;  %v4384_v20 = vmul.f32 1.4285715, %v3939_v63  ;;  %v5705_v2 = vxor.u32 2147483648, %v2739_v53 }
 0x2d4   :  { %v2670_v12 = vmul.f32 %v6024_v59, %v7529_v40 }
 0x2d5   :  { %v4969_v41 = vrot.slane %v8040_v11, 4  ;;  %vm2929_vm14 = vcmp.ge.s32.totalorder %v5705_v2, 3435973837  ;;  %v4967_v50 = vrot.slane %v4384_v20, 4 }
 0x2d6   :  { %v2990_v24 = vsel %vm2914_vm10, %v2670_v12, 0.0  ;;  %v3922_v6 = vpop.f32.mrf.mxu1 }
 0x2d7   :  { %v3054_v1 = vpack.c.bf16 %v2990_v24, %v2990_v24  ;;  %v4970_v54 = vsel %vm4407_vm12, %v4384_v20, %v4969_v41  ;;  %v4968_v0 = vsel %vm4407_vm12, %v4967_v50, %v8040_v11 }
 0x2d8   :  { %v2536_v16 = vpop.xlane.xlu1 %2535  ;;  %v8052_v30 = vperm.slane %v4970_v54, %v7345_v35  ;;  %v4974_v15 = vperm.slane %v4968_v0, %v7345_v35 }
 0x2d9   :  { %5764 = vmatmul.msk.bf16.vlgmr.msra.gmra.mxu1 %vm1972_vm1, %v3054_v1  ;;  %6025 = vrcp.f32 %v2536_v16 }
 0x2da   :  { %v3941_v40 = vpop.f32.mrf.mxu2  ;;  %v3903_v58 = vpop.f32.mrf.mxu0  ;;  %v5029_v26 = vrot.slane %v8052_v30, 4 }
 0x2df   :  { %v6026_v31 = vpop.eup %6025 }
 0x2e0   :  { %v2527_v7 = vpop.xlane.xlu2 %2526  ;;  %v2672_v49 = vmul.f32 %v6026_v31, %v7616_v42  ;;  %v303_v42 = vld [vmem:[#allocation5 + $0x1e0] sm:$0xff] }
 0x2e1   :  { %v3958_v56 = vpop.f32.mrf.mxu3  ;;  %6027 = vrcp.f32 %v2527_v7  ;;  %v3121_v29 = vpack.c.bf16 %v303_v42, %v303_v42 }
 0x2e2   :  { %v4385_v5 = vmul.f32 1.4285715, %v3958_v56  ;;  %v2545_v36 = vpop.xlane.xlu1 %2544  ;;  %v2992_v51 = vsel %vm2920_vm11, %v2672_v49, 0.0 }
 0x2e3   :  { %6029 = vrcp.f32 %v2545_v36  ;;  %v3056_v59 = vpack.c.bf16 %v2992_v51, %v2992_v51  ;;  %v4270_v44 = vsel %vm3128_vm2, %v3121_v29, 0  ;;  %v5017_v36 = vrot.slane %v4974_v15, 4 }
 0x2e4   :  { %v4982_v3 = vsel %vm4407_vm12, %v4385_v5, %v4981_v28  ;;  %v4015_v46 = vpop.f32.mrf.mxu2  ;;  %4279 = vmatpush.bf16.msrb.mxu0 %v4270_v44  ;;  %v4979_v54 = vrot.slane %v4385_v5, 4 }
 0x2e5   :  { %v4990_v63 = vperm.slane %v4982_v3, %v7345_v35  ;;  %5766 = vmatmul.msk.bf16.vlgmr.msra.gmra.mxu3 %vm1972_vm1, %v3056_v59  ;;  %v4388_v7 = vmul.f32 1.4285715, %v4015_v46 }
 0x2e6   :  { %v4980_v56 = vsel %vm4407_vm12, %v4979_v54, %v4383_v10 }
 0x2e7   :  { %v5030_v12 = vsel %vm4407_vm12, %v4990_v63, %v5029_v26  ;;  %v6028_v14 = vpop.eup %6027  ;;  %v4986_v5 = vperm.slane %v4980_v56, %v7345_v35  ;;  %v5027_v49 = vrot.slane %v4990_v63, 4  ;;  %v4991_v3 = vrot.slane %v4388_v7, 4  ;;  %v2737_v26 = vld [vmem:[%s8325_s3 + $0x1e0] sm:$0xff] }
 0x2e8   :  { %v2669_v24 = vmul.f32 %v6028_v14, %v7637_v45  ;;  %v5703_v27 = vxor.u32 2147483648, %v2737_v26 }
 0x2e9   :  { %v3960_v6 = vpop.f32.mrf.mxu3  ;;  %v6030_v1 = vpop.eup %6029  ;;  %v5015_v51 = vrot.slane %v4986_v5, 4  ;;  %v5028_v46 = vsel %vm4407_vm12, %v5027_v49, %v8052_v30  ;;  %v5018_v63 = vsel %vm4407_vm12, %v4986_v5, %v5017_v36 }
 0x2ea   :  { %v2989_v41 = vsel %vm2911_vm13, %v2669_v24, 0.0  ;;  %v2675_v40 = vmul.f32 %v6030_v1, %v7634_v48  ;;  %v2740_v48 = vld [vmem:[%s8325_s3 + $0x1f8] sm:$0xff]  ;;  %v5038_v24 = vperm.slane %v5030_v12, %v7403_v18  ;;  %v5034_v43 = vperm.slane %v5028_v46, %v7403_v18 }
 0x2eb   :  { %v3053_v16 = vpack.c.bf16 %v2989_v41, %v2989_v41  ;;  %v3977_v58 = vpop.f32.mrf.mxu0  ;;  %v5706_v11 = vxor.u32 2147483648, %v2740_v48  ;;  %v5016_v12 = vsel %vm4407_vm12, %v5015_v51, %v4974_v15  ;;  %vm8103_vm15 = vcmp.ge.s32.totalorder %v5703_v27, 3435973837 }
 0x2ec   :  { %v4017_v32 = vpop.f32.mrf.mxu2  ;;  %v2995_v62 = vsel %vm2929_vm14, %v2675_v40, 0.0  ;;  %v4386_v45 = vmul.f32 1.4285715, %v3977_v58  ;;  %v5022_v56 = vperm.slane %v5016_v12, %v7403_v18 }
 0x2ed   :  { %v3059_v39 = vpack.c.bf16 %v2995_v62, %v2995_v62  ;;  %5763 = vmatmul.msk.bf16.vlgmr.msra.gmra.mxu0 %vm1972_vm1, %v3053_v16  ;;  %vm2932_vm2 = vcmp.ge.s32.totalorder %v5706_v11, 3435973837  ;;  %v5026_v16 = vperm.slane %v5018_v63, %v7403_v18 }
 0x2ee   :  { %v4993_v31 = vrot.slane %v4386_v45, 4  ;;  %v4992_v2 = vsel %vm4407_vm12, %v4991_v3, %v4386_v45 }
 0x2ef   :  { %5769 = vmatmul.msk.bf16.vlgmr.msrb.gmra.mxu2 %vm1972_vm1, %v3059_v39  ;;  %v4998_v41 = vperm.slane %v4992_v2, %v7345_v35  ;;  %v5069_v5 = vrot.slane %v5026_v16, 4 }
 0x2f0   :  { %v4994_v10 = vsel %vm4407_vm12, %v4388_v7, %v4993_v31 }
 0x2f1   :  { %v2548_v20 = vpop.xlane.xlu2 %2547  ;;  %v5002_v42 = vperm.slane %v4994_v10, %v7345_v35  ;;  %v5041_v48 = vrot.slane %v4998_v41, 4 }
 0x2f2   :  { %6031 = vrcp.f32 %v2548_v20  ;;  %v3996_v28 = vpop.f32.mrf.mxu1 }
 0x2f3   :  { %v3979_v53 = vpop.f32.mrf.mxu0  ;;  %v4387_v9 = vmul.f32 1.4285715, %v3996_v28  ;;  %v5053_v54 = vrot.slane %v5002_v42, 4  ;;  %v5073_v28 = vrot.slane %v5034_v43, 4 }
 0x2f4   :  { %v5077_v53 = vrot.slane %v5038_v24, 4 }
 0x2f5   :  { %v5005_v6 = vrot.slane %v4387_v9, 4 }
 0x2f8   :  { %v6032_v59 = vpop.eup %6031 }
 0x2f9   :  { %v2676_v47 = vmul.f32 %v6032_v59, %v7718_v60  ;;  %v4034_v14 = vpop.f32.mrf.mxu3  ;;  %v5312_v29 = vpop.permute.xlu2 %5311  ;;  %v2738_v60 = vld [vmem:[%s8325_s3 + $0x1e8] sm:$0xff]  ;;  %s6122_s3 = smov [#allocation7]  }
 0x2fa   :  { %v4389_v1 = vmul.f32 1.4285715, %v4034_v14  ;;  %v5431_v30 = vsel %vm307_vm0, %v7461_v23, %v5312_v29  ;;  %v3998_v44 = vpop.f32.mrf.mxu1  ;;  %v2539_v50 = vpop.xlane.xlu0 %2538  ;;  %v5704_v0 = vxor.u32 2147483648, %v2738_v60  ;;  %v5065_v14 = vrot.slane %v5022_v56, 4  ;;  %s5499_s1 = sshll.u32 %s6122_s3, 4  ;;  %s5500_s1 = int_to_ptr.vmem [resolvable:$true] %s5499_s1 }
 0x2fb   :  { %v2996_v40 = vsel %vm2932_vm2, %v2676_v47, 0.0  ;;  %5463 = vst [vmem:[#allocation7] sm:$0xff] %v5431_v30  ;;  %6033 = vrcp.f32 %v2539_v50 }
 0x2fc   :  { %v3060_v58 = vpack.c.bf16 %v2996_v40, %v2996_v40  ;;  %v5003_v32 = vrot.slane %v4389_v1, 4  ;;  %v5006_v23 = vsel %vm4407_vm12, %v4389_v1, %v5005_v6  ;;  %vm2926_vm3 = vcmp.ge.s32.totalorder %v5704_v0, 3435973837 }
 0x2fd   :  { %v5014_v62 = vperm.slane %v5006_v23, %v7345_v35 }
 0x2fe   :  { %v5004_v39 = vsel %vm4407_vm12, %v5003_v32, %v4387_v9  ;;  %5770 = vmatmul.msk.bf16.vlgmr.msrb.gmra.mxu3 %vm1972_vm1, %v3060_v58 }
 0x2ff   :  { %v5010_v20 = vperm.slane %v5004_v39, %v7345_v35  ;;  %v5051_v15 = vrot.slane %v5014_v62, 4  ;;  %v5054_v7 = vsel %vm4407_vm12, %v5014_v62, %v5053_v54 }
 0x300   :  { %v2542_v31 = vpop.xlane.xlu1 %2541  ;;  %v5062_v49 = vperm.slane %v5054_v7, %v7403_v18 }
 0x301   :  { %v5039_v11 = vrot.slane %v5010_v20, 4  ;;  %v4036_v36 = vpop.f32.mrf.mxu3  ;;  %v5344_v3 = vpop.permute.xlu2 %5343  ;;  %6035 = vrcp.f32 %v2542_v31  ;;  %v5052_v10 = vsel %vm4407_vm12, %v5051_v15, %v5002_v42  ;;  %v5042_v9 = vsel %vm4407_vm12, %v5010_v20, %v5041_v48 }
 0x302   :  { %v6034_v26 = vpop.eup %6033  ;;  %v5439_v51 = vsel %vm307_vm0, %v7467_v22, %v5344_v3  ;;  %v5058_v46 = vperm.slane %v5052_v10, %v7403_v18  ;;  %v5050_v59 = vperm.slane %v5042_v9, %v7403_v18  ;;  %v8119_v2 = vsel %vm4407_vm12, %v5062_v49, %v5077_v53 }
 0x303   :  { %v2673_v63 = vmul.f32 %v6034_v26, %v7760_v57  ;;  %5464 = vst [vmem:[#allocation7 + $0x8] sm:$0xff] %v5439_v51  ;;  %v5040_v47 = vsel %vm4407_vm12, %v5039_v11, %v4998_v41  ;;  %v5075_v42 = vrot.slane %v5062_v49, 4 }
 0x304   :  { %v5074_v29 = vsel %vm4407_vm12, %v5058_v46, %v5073_v28  ;;  %v5070_v27 = vsel %vm4407_vm12, %v5050_v59, %v5069_v5  ;;  %v5046_v22 = vperm.slane %v5040_v47, %v7403_v18  ;;  %v5067_v6 = vrot.slane %v5050_v59, 4 }
 0x305   :  { %v2993_v1 = vsel %vm8103_vm15, %v2673_v63, 0.0  ;;  %v4053_v30 = vpop.f32.mrf.mxu0  ;;  %5385 = vrot.lane.b32.xlu1 %v5074_v29, %s6121_s7  ;;  %5353 = vrot.lane.b32.xlu0 %v5070_v27, %s6121_s7  ;;  %v5071_v57 = vrot.slane %v5058_v46, 4  ;;  %v8131_v44 = vsel %vm4407_vm12, %v5075_v42, %v5038_v24  ;;  %v8408_v42 = vld [vmem:[#allocation12_spill] sm:$0xff] }
 0x306   :  { %v3057_v41 = vpack.c.bf16 %v2993_v1, %v2993_v1  ;;  %v5066_v40 = vsel %vm4407_vm12, %v5046_v22, %v5065_v14  ;;  %v5063_v50 = vrot.slane %v5046_v22, 4  ;;  %v8136_v12 = vsel %vm4407_vm12, %v5067_v6, %v5026_v16  ;;  %v8409_v6 = vld [vmem:[#allocation13_spill] sm:$0xff] }
 0x307   :  { %v6036_v60 = vpop.eup %6035  ;;  %5321 = vrot.lane.b32.xlu2 %v5066_v40, %s6121_s7  ;;  %v8139_v58 = vsel %vm4407_vm12, %v5071_v57, %v5034_v43  ;;  %v8148_v16 = vmul.f32 1.4285715, %v4053_v30 }
 0x308   :  { %v2674_v32 = vmul.f32 %v6036_v60, %v7795_v19  ;;  %5767 = vmatmul.msk.bf16.vlgmr.msrb.gmra.mxu0 %vm1972_vm1, %v3057_v41  ;;  %v4091_v24 = vpop.f32.mrf.mxu2  ;;  %v8144_v23 = vsel %vm4407_vm12, %v5063_v50, %v5022_v56  ;;  %v8410_v41 = vld [vmem:[#allocation14_spill] sm:$0xff] }
 0x309   :  { %v4110_v54 = vpop.f32.mrf.mxu3  ;;  %v5378_v62 = vpop.permute.xlu2 %5377  ;;  %v4392_v48 = vmul.f32 1.4285715, %v4091_v24  ;;  %v5081_v15 = vrot.slane %v8148_v16, 4 }
 0x30a   :  { %v2994_v39 = vsel %vm2926_vm3, %v2674_v32, 0.0  ;;  %v5448_v45 = vsel %vm307_vm0, %v7674_v33, %v5378_v62  ;;  %v4393_v36 = vmul.f32 1.4285715, %v4110_v54  ;;  %v8411_v32 = vld [vmem:[#allocation11_spill] sm:$0xff] }
 0x30b   :  { %v3058_v0 = vpack.c.bf16 %v2994_v39, %v2994_v39  ;;  %5469 = vst [vmem:[#allocation7 + $0x30] sm:$0xff] %v5448_v45  ;;  %v5082_v28 = vsel %vm4407_vm12, %v4392_v48, %v5081_v15  ;;  %v5079_v39 = vrot.slane %v4392_v48, 4  ;;  %v8412_v15 = vld [vmem:[#allocation15_spill] sm:$0xff] }
 0x30c   :  { %v5376_v19 = vpop.permute.xlu0 %5375  ;;  %v8158_v53 = vperm.slane %v5082_v28, %v7345_v35  ;;  %v5091_v45 = vrot.slane %v4393_v36, 4 }
 0x30d   :  { %v4055_v43 = vpop.f32.mrf.mxu0  ;;  %5768 = vmatmul.msk.bf16.vlgmr.msrb.gmra.mxu1 %vm1972_vm1, %v3058_v0  ;;  %v5447_v20 = vsel %vm307_vm0, %v7454_v61, %v5376_v19 }
 0x30e   :  { %5465 = vst [vmem:[#allocation7 + $0x10] sm:$0xff] %v5447_v20  ;;  %v5141_v46 = vrot.slane %v8158_v53, 4  ;;  %v5080_v20 = vsel %vm4407_vm12, %v5079_v39, %v8148_v16 }
 0x30f   :  { %v5086_v48 = vperm.slane %v5080_v20, %v7345_v35 }
 0x310   :  { %v4093_v56 = vpop.f32.mrf.mxu2 }
 0x311   :  { %v4112_v7 = vpop.f32.mrf.mxu3  ;;  %v5412_v31 = vpop.permute.xlu2 %5411 }
 0x312   :  { %v5457_v33 = vsel %vm307_vm0, %v7745_v13, %v5412_v31 }
 0x313   :  { %5474 = vst [vmem:[#allocation7 + $0x58] sm:$0xff] %v5457_v33 }
 0x314   :  { %v4072_v5 = vpop.f32.mrf.mxu1  ;;  %v5410_v11 = vpop.permute.xlu0 %5409 }
 0x315   :  { %v4391_v49 = vmul.f32 1.4285715, %v4072_v5  ;;  %v5456_v3 = vsel %vm307_vm0, %v7681_v21, %v5410_v11 }
 0x316   :  { %5470 = vst [vmem:[#allocation7 + $0x38] sm:$0xff] %v5456_v3 }
 0x317   :  { %v5093_v61 = vrot.slane %v4391_v49, 4  ;;  %v5092_v43 = vsel %vm4407_vm12, %v5091_v45, %v4391_v49 }
 0x318   :  { %v5408_v10 = vpop.permute.xlu1 %5407 }
 0x319   :  { %v5094_v9 = vsel %vm4407_vm12, %v4393_v36, %v5093_v61  ;;  %v4186_v26 = vpop.f32.mrf.mxu3  ;;  %v5318_v13 = vpop.permute.xlu2 %5317  ;;  %v5455_v51 = vsel %vm307_vm0, %v7475_v4, %v5408_v10  ;;  %v5129_v61 = vrot.slane %v5086_v48, 4 }
 0x31a   :  { %v8167_v59 = vperm.slane %v5094_v9, %v7345_v35  ;;  %5466 = vst [vmem:[#allocation7 + $0x18] sm:$0xff] %v5455_v51  ;;  %v5434_v63 = vsel %vm307_vm0, %v7881_v52, %v5318_v13  ;;  %v4397_v11 = vmul.f32 1.4285715, %v4186_v26 }
 0x31b   :  { %5475 = vst [vmem:[#allocation7 + $0x60] sm:$0xff] %v5434_v63 }
 0x31c   :  { %v4074_v21 = vpop.f32.mrf.mxu1  ;;  %v8173_v47 = vsel %vm4407_vm12, %v8167_v59, %v5141_v46  ;;  %v5314_v14 = vpop.permute.xlu0 %5313  ;;  %v5139_v3 = vrot.slane %v8167_v59, 4  ;;  %v5115_v63 = vrot.slane %v4397_v11, 4 }
 0x31d   :  { %v5432_v29 = vsel %vm307_vm0, %v8408_v42, %v5314_v14 }
 0x31e   :  { %5467 = vst [vmem:[#allocation7 + $0x20] sm:$0xff] %v5432_v29  ;;  %v5140_v59 = vsel %vm4407_vm12, %v5139_v3, %v8158_v53 }
 0x31f   :  { %v5146_v53 = vperm.slane %v5140_v59, %v7403_v18 }
 0x320   :  { %v5346_v4 = vpop.permute.xlu1 %5345 }
 0x321   :  { %v4167_v27 = vpop.f32.mrf.mxu2  ;;  %v4188_v22 = vpop.f32.mrf.mxu3  ;;  %v5440_v1 = vsel %vm307_vm0, %v8409_v6, %v5346_v4 }
 0x322   :  { %v5350_v30 = vpop.permute.xlu2 %5349  ;;  %5468 = vst [vmem:[#allocation7 + $0x28] sm:$0xff] %v5440_v1  ;;  %v4396_v56 = vmul.f32 1.4285715, %v4167_v27 }
 0x323   :  { %v5442_v52 = vsel %vm307_vm0, %v7889_v17, %v5350_v30 }
 0x324   :  { %5476 = vst [vmem:[#allocation7 + $0x68] sm:$0xff] %v5442_v52  ;;  %v5348_v57 = vpop.permute.xlu0 %5347  ;;  %v5103_v33 = vrot.slane %v4396_v56, 4  ;;  %v5150_v52 = vperm.slane %v8173_v47, %v7403_v18 }
 0x325   :  { %v5441_v40 = vsel %vm307_vm0, %v8410_v41, %v5348_v57 }
 0x326   :  { %5472 = vst [vmem:[#allocation7 + $0x48] sm:$0xff] %v5441_v40 }
 0x328   :  { %v5380_v50 = vpop.permute.xlu1 %5379 }
 0x329   :  { %v4169_v60 = vpop.f32.mrf.mxu2  ;;  %v5449_v24 = vsel %vm307_vm0, %v8411_v32, %v5380_v50 }
 0x32a   :  { %v5384_v54 = vpop.permute.xlu2 %5383  ;;  %5473 = vst [vmem:[#allocation7 + $0x50] sm:$0xff] %v5449_v24 }
 0x32b   :  { %v5451_v62 = vsel %vm307_vm0, %v8017_v37, %v5384_v54  ;;  %v5098_v37 = vperm.slane %v5092_v43, %v7345_v35 }
 0x32c   :  { %5481 = vst [vmem:[#allocation7 + $0x90] sm:$0xff] %v5451_v62  ;;  %v5382_v17 = vpop.permute.xlu0 %5381 }
 0x32d   :  { %v5450_v0 = vsel %vm307_vm0, %v7893_v8, %v5382_v17  ;;  %v5127_v5 = vrot.slane %v5098_v37, 4  ;;  %v5130_v51 = vsel %vm4407_vm12, %v5098_v37, %v5129_v61 }
 0x32e   :  { %5477 = vst [vmem:[#allocation7 + $0x70] sm:$0xff] %v5450_v0  ;;  %v5138_v27 = vperm.slane %v5130_v51, %v7403_v18  ;;  %v5189_v0 = vrot.slane %v5150_v52, 4 }
 0x32f   :  { %v5128_v26 = vsel %vm4407_vm12, %v5127_v5, %v5086_v48 }
 0x330   :  { %v5134_v22 = vperm.slane %v5128_v26, %v7403_v18  ;;  %v5181_v54 = vrot.slane %v5138_v27, 4 }
 0x331   :  { %v5316_v19 = vpop.permute.xlu1 %5315 }
 0x332   :  { %v5433_v7 = vsel %vm307_vm0, %v8412_v15, %v5316_v19  ;;  %v5177_v62 = vrot.slane %v5134_v22, 4  ;;  %v5185_v15 = vrot.slane %v5146_v53, 4 }
 0x333   :  { %5471 = vst [vmem:[#allocation7 + $0x40] sm:$0xff] %v5433_v7 }
 0x334   :  { %v5416_v28 = vpop.permute.xlu0 %5415 }
 0x335   :  { %v4129_v31 = vpop.f32.mrf.mxu0  ;;  %v5459_v49 = vsel %vm307_vm0, %v8009_v34, %v5416_v28 }
 0x336   :  { %v4394_v8 = vmul.f32 1.4285715, %v4129_v31  ;;  %5482 = vst [vmem:[#allocation7 + $0x98] sm:$0xff] %v5459_v49 }
 0x338   :  { %v5104_v16 = vsel %vm4407_vm12, %v5103_v33, %v4394_v8  ;;  %v5105_v36 = vrot.slane %v4394_v8, 4 }
 0x339   :  { %v5414_v10 = vpop.permute.xlu1 %5413  ;;  %v5110_v46 = vperm.slane %v5104_v16, %v7345_v35 }
 0x33a   :  { %v5106_v9 = vsel %vm4407_vm12, %v4396_v56, %v5105_v36  ;;  %v5458_v13 = vsel %vm307_vm0, %v7885_v38, %v5414_v10 }
 0x33b   :  { %5478 = vst [vmem:[#allocation7 + $0x78] sm:$0xff] %v5458_v13  ;;  %v5114_v14 = vperm.slane %v5106_v9, %v7345_v35  ;;  %v5153_v6 = vrot.slane %v5110_v46, 4 }
 0x33c   :  { %v4148_v34 = vpop.f32.mrf.mxu1  ;;  %v5320_v38 = vpop.permute.xlu0 %5319 }
 0x33d   :  { %v4395_v21 = vmul.f32 1.4285715, %v4148_v34  ;;  %v4131_v42 = vpop.f32.mrf.mxu0  ;;  %v5435_v30 = vsel %vm307_vm0, %v8021_v55, %v5320_v38  ;;  %v5165_v41 = vrot.slane %v5114_v14, 4 }
 0x33e   :  { %5479 = vst [vmem:[#allocation7 + $0x80] sm:$0xff] %v5435_v30 }
 0x33f   :  { %v5116_v29 = vsel %vm4407_vm12, %v5115_v63, %v4395_v21  ;;  %v5117_v4 = vrot.slane %v4395_v21, 4 }
 0x340   :  { %v5122_v1 = vperm.slane %v5116_v29, %v7345_v35 }
 0x341   :  { %v5118_v57 = vsel %vm4407_vm12, %v4397_v11, %v5117_v4  ;;  %v5352_v60 = vpop.permute.xlu1 %5351 }
 0x342   :  { %v5126_v40 = vperm.slane %v5118_v57, %v7345_v35  ;;  %v5151_v50 = vrot.slane %v5122_v1, 4  ;;  %v5154_v32 = vsel %vm4407_vm12, %v5122_v1, %v5153_v6  ;;  %v5443_v24 = vsel %vm307_vm0, %v8013_v25, %v5352_v60 }
 0x343   :  { %v5162_v55 = vperm.slane %v5154_v32, %v7403_v18  ;;  %5480 = vst [vmem:[#allocation7 + $0x88] sm:$0xff] %v5443_v24 }
 0x344   :  { %v5163_v47 = vrot.slane %v5126_v40, 4  ;;  %v4150_v39 = vpop.f32.mrf.mxu1  ;;  %v5152_v45 = vsel %vm4407_vm12, %v5151_v50, %v5110_v46  ;;  %v5166_v17 = vsel %vm4407_vm12, %v5126_v40, %v5165_v41 }
 0x345   :  { %v5182_v43 = vsel %vm4407_vm12, %v5162_v55, %v5181_v54  ;;  %v5158_v19 = vperm.slane %v5152_v45, %v7403_v18  ;;  %v5174_v20 = vperm.slane %v5166_v17, %v7403_v18  ;;  %v5179_v56 = vrot.slane %v5162_v55, 4 }
 0x346   :  { %5355 = vrot.lane.b32.xlu2 %v5182_v43, %s6121_s7  ;;  %v5164_v25 = vsel %vm4407_vm12, %v5163_v47, %v5114_v14 }
 0x347   :  { %v5178_v7 = vsel %vm4407_vm12, %v5158_v19, %v5177_v62  ;;  %v5170_v37 = vperm.slane %v5164_v25, %v7403_v18  ;;  %v8234_v48 = vsel %vm4407_vm12, %v5174_v20, %v5189_v0  ;;  %v8237_v31 = vsel %vm4407_vm12, %v5179_v56, %v5138_v27 }
 0x348   :  { %5323 = vrot.lane.b32.xlu1 %v5178_v7, %s6121_s7  ;;  %v5175_v33 = vrot.slane %v5158_v19, 4  ;;  %v5187_v28 = vrot.slane %v5174_v20, 4 }
 0x349   :  { %v5186_v8 = vsel %vm4407_vm12, %v5170_v37, %v5185_v15  ;;  %v5183_v5 = vrot.slane %v5170_v37, 4 }
 0x34a   :  { %5387 = vrot.lane.b32.xlu0 %v5186_v8, %s6121_s7  ;;  %v8243_v49 = vsel %vm4407_vm12, %v5175_v33, %v5134_v22  ;;  %v8246_v11 = vsel %vm4407_vm12, %v5187_v28, %v5150_v52  ;;  %v4243_v16 = vpop.f32.mrf.mxu2 }
 0x34b   :  { %v8249_v36 = vsel %vm4407_vm12, %v5183_v5, %v5146_v53  ;;  %v4400_v4 = vmul.f32 1.4285715, %v4243_v16 }
 0x34d   :  { %v5191_v22 = vrot.slane %v4400_v4, 4 }
 0x352   :  { %v4245_v61 = vpop.f32.mrf.mxu2 }
 0x356   :  { %v4224_v3 = vpop.f32.mrf.mxu1 }
 0x357   :  { %v4399_v6 = vmul.f32 1.4285715, %v4224_v3 }
 0x359   :  { %v5205_v41 = vrot.slane %v4399_v6, 4 }
 0x35e   :  { %v4226_v10 = vpop.f32.mrf.mxu1 }
 0x361   :  { %v5322_v9 = vpop.permute.xlu2 %5321 }
 0x362   :  { %v5436_v13 = vsel %vm307_vm0, %v8144_v23, %v5322_v9 }
 0x363   :  { %5483 = vst [vmem:[#allocation7 + $0xa0] sm:$0xff] %v5436_v13 }
 0x368   :  { %v4262_v51 = vpop.f32.mrf.mxu3 }
 0x369   :  { %v4401_v42 = vmul.f32 1.4285715, %v4262_v51 }
 0x36a   :  { %v4205_v46 = vpop.f32.mrf.mxu0 }
 0x36b   :  { %v4398_v23 = vmul.f32 1.4285715, %v4205_v46  ;;  %v5203_v27 = vrot.slane %v4401_v42, 4  ;;  %v5206_v40 = vsel %vm4407_vm12, %v4401_v42, %v5205_v41 }
 0x36c   :  { %v5214_v47 = vperm.slane %v5206_v40, %v7345_v35 }
 0x36d   :  { %v5192_v1 = vsel %vm4407_vm12, %v5191_v22, %v4398_v23  ;;  %v5204_v30 = vsel %vm4407_vm12, %v5203_v27, %v4399_v6  ;;  %v5193_v57 = vrot.slane %v4398_v23, 4 }
 0x36e   :  { %v5198_v53 = vperm.slane %v5192_v1, %v7345_v35  ;;  %v5251_v37 = vrot.slane %v5214_v47, 4 }
 0x36f   :  { %v5194_v60 = vsel %vm4407_vm12, %v4400_v4, %v5193_v57 }
 0x370   :  { %v4264_v34 = vpop.f32.mrf.mxu3  ;;  %v5241_v32 = vrot.slane %v5198_v53, 4  ;;  %v5202_v17 = vperm.slane %v5194_v60, %v7345_v35 }
 0x372   :  { %v4319_v26 = vpop.f32.mrf.mxu2  ;;  %v4207_v63 = vpop.f32.mrf.mxu0  ;;  %v5253_v28 = vrot.slane %v5202_v17, 4  ;;  %v5252_v13 = vsel %vm4407_vm12, %v5251_v37, %v5202_v17 }
 0x373   :  { %v5258_v42 = vperm.slane %v5252_v13, %v7403_v18 }
 0x377   :  { %v5354_v21 = vpop.permute.xlu0 %5353  ;;  %v5386_v14 = vpop.permute.xlu1 %5385 }
 0x378   :  { %v5444_v59 = vsel %vm307_vm0, %v8136_v12, %v5354_v21  ;;  %v5452_v29 = vsel %vm307_vm0, %v8139_v58, %v5386_v14  ;;  %v4404_v12 = vmul.f32 1.4285715, %v4319_v26  ;;  %v5210_v58 = vperm.slane %v5204_v30, %v7345_v35 }
 0x379   :  { %5484 = vst [vmem:[#allocation7 + $0xa8] sm:$0xff] %v5444_v59  ;;  %v5254_v59 = vsel %vm4407_vm12, %v5214_v47, %v5253_v28 }
 0x37a   :  { %5485 = vst [vmem:[#allocation7 + $0xb0] sm:$0xff] %v5452_v29  ;;  %v4321_v38 = vpop.f32.mrf.mxu2  ;;  %v5215_v24 = vrot.slane %v4404_v12, 4  ;;  %v5239_v54 = vrot.slane %v5210_v58, 4  ;;  %v5242_v56 = vsel %vm4407_vm12, %v5210_v58, %v5241_v32  ;;  %v5262_v41 = vperm.slane %v5254_v59, %v7403_v18 }
 0x37b   :  { %v5250_v61 = vperm.slane %v5242_v56, %v7403_v18 }
 0x37c   :  { %v5240_v25 = vsel %vm4407_vm12, %v5239_v54, %v5198_v53  ;;  %v5297_v53 = vrot.slane %v5258_v42, 4  ;;  %v5301_v54 = vrot.slane %v5262_v41, 4 }
 0x37d   :  { %v5246_v9 = vperm.slane %v5240_v25, %v7403_v18  ;;  %v5293_v14 = vrot.slane %v5250_v61, 4 }
 0x37f   :  { %v5289_v23 = vrot.slane %v5246_v9, 4 }
 0x381   :  { %v4338_v52 = vpop.f32.mrf.mxu3 }
 0x382   :  { %v4405_v62 = vmul.f32 1.4285715, %v4338_v52 }
 0x384   :  { %v5227_v15 = vrot.slane %v4405_v62, 4 }
 0x385   :  { %v4281_v50 = vpop.f32.mrf.mxu0 }
 0x386   :  { %v4402_v55 = vmul.f32 1.4285715, %v4281_v50 }
 0x388   :  { %v5216_v39 = vsel %vm4407_vm12, %v5215_v24, %v4402_v55  ;;  %v5217_v45 = vrot.slane %v4402_v55, 4 }
 0x389   :  { %v4340_v0 = vpop.f32.mrf.mxu3  ;;  %v5222_v19 = vperm.slane %v5216_v39, %v7345_v35 }
 0x38a   :  { %v5218_v43 = vsel %vm4407_vm12, %v4404_v12, %v5217_v45  ;;  %v4300_v20 = vpop.f32.mrf.mxu1 }
 0x38b   :  { %v4403_v7 = vmul.f32 1.4285715, %v4300_v20  ;;  %v5226_v33 = vperm.slane %v5218_v43, %v7345_v35  ;;  %v5265_v3 = vrot.slane %v5222_v19, 4 }
 0x38d   :  { %v4283_v8 = vpop.f32.mrf.mxu0  ;;  %v5228_v5 = vsel %vm4407_vm12, %v5227_v15, %v4403_v7  ;;  %v5229_v16 = vrot.slane %v4403_v7, 4  ;;  %v5277_v46 = vrot.slane %v5226_v33, 4 }
 0x38e   :  { %v5234_v10 = vperm.slane %v5228_v5, %v7345_v35 }
 0x38f   :  { %v5230_v51 = vsel %vm4407_vm12, %v4405_v62, %v5229_v16 }
 0x390   :  { %v5238_v34 = vperm.slane %v5230_v51, %v7345_v35  ;;  %v5263_v26 = vrot.slane %v5234_v10, 4  ;;  %v5266_v63 = vsel %vm4407_vm12, %v5234_v10, %v5265_v3 }
 0x391   :  { %v5274_v21 = vperm.slane %v5266_v63, %v7403_v18 }
 0x392   :  { %v5275_v29 = vrot.slane %v5238_v34, 4  ;;  %v4302_v4 = vpop.f32.mrf.mxu1  ;;  %v5264_v38 = vsel %vm4407_vm12, %v5263_v26, %v5222_v19  ;;  %v5278_v27 = vsel %vm4407_vm12, %v5238_v34, %v5277_v46 }
 0x393   :  { %v5294_v22 = vsel %vm4407_vm12, %v5274_v21, %v5293_v14  ;;  %v5270_v35 = vperm.slane %v5264_v38, %v7403_v18  ;;  %v5286_v6 = vperm.slane %v5278_v27, %v7403_v18  ;;  %v5291_v1 = vrot.slane %v5274_v21, 4 }
 0x394   :  { %5357 = vrot.lane.b32.xlu1 %v5294_v22, %s6121_s7  ;;  %v5276_v30 = vsel %vm4407_vm12, %v5275_v29, %v5226_v33 }
 0x395   :  { %v5290_v52 = vsel %vm4407_vm12, %v5270_v35, %v5289_v23  ;;  %v5282_v57 = vperm.slane %v5276_v30, %v7403_v18  ;;  %v5292_v12 = vsel %vm4407_vm12, %v5291_v1, %v5250_v61  ;;  %v5287_v58 = vrot.slane %v5270_v35, 4 }
 0x396   :  { %5325 = vrot.lane.b32.xlu0 %v5290_v52, %s6121_s7  ;;  %v5299_v40 = vrot.slane %v5286_v6, 4  ;;  %v5302_v62 = vsel %vm4407_vm12, %v5286_v6, %v5301_v54 }
 0x397   :  { %v5298_v50 = vsel %vm4407_vm12, %v5282_v57, %v5297_v53  ;;  %v5295_v60 = vrot.slane %v5282_v57, 4  ;;  %v5288_v32 = vsel %vm4407_vm12, %v5287_v58, %v5246_v9 }
 0x398   :  { %5389 = vrot.lane.b32.xlu2 %v5298_v50, %s6121_s7  ;;  %v5300_v24 = vsel %vm4407_vm12, %v5299_v40, %v5262_v41 }
 0x399   :  { %v5296_v55 = vsel %vm4407_vm12, %v5295_v60, %v5258_v42 }
 0x39c   :  { %5419 = vrot.lane.b32.xlu1 %v8234_v48, %s6121_s7 }
 0x39e   :  { %5421 = vrot.lane.b32.xlu0 %v5302_v62, %s6121_s7 }
 0x3a0   :  { %v5356_v18 = vpop.permute.xlu2 %5355  ;;  %5417 = vrot.lane.b32.xlu2 %v8119_v2, %s6121_s7 }
 0x3a1   :  { %v5445_v47 = vsel %vm307_vm0, %v8237_v31, %v5356_v18 }
 0x3a2   :  { %5488 = vst [vmem:[#allocation7 + $0xc8] sm:$0xff] %v5445_v47 }
 0x3ba   :  { %v5324_v39 = vpop.permute.xlu1 %5323 }
 0x3bb   :  { %v5437_v45 = vsel %vm307_vm0, %v8243_v49, %v5324_v39 }
 0x3bc   :  { %5487 = vst [vmem:[#allocation7 + $0xc0] sm:$0xff] %v5437_v45  ;;  %v5388_v17 = vpop.permute.xlu0 %5387 }
 0x3bd   :  { %v5453_v48 = vsel %vm307_vm0, %v8249_v36, %v5388_v17 }
 0x3be   :  { %5489 = vst [vmem:[#allocation7 + $0xd0] sm:$0xff] %v5453_v48 }
 0x3f2   :  { %v5390_v0 = vpop.permute.xlu2 %5389 }
 0x3f3   :  { %v5454_v43 = vsel %vm307_vm0, %v5296_v55, %v5390_v0 }
 0x3f4   :  { %5493 = vst [vmem:[#allocation7 + $0xf0] sm:$0xff] %v5454_v43 }
 0x3fa   :  { %v5418_v19 = vpop.permute.xlu2 %5417 }
 0x3fb   :  { %v5460_v31 = vsel %vm307_vm0, %v8131_v44, %v5418_v19 }
 0x3fc   :  { %5486 = vst [vmem:[#allocation7 + $0xb8] sm:$0xff] %v5460_v31 }
 0x406   :  { %v5358_v2 = vpop.permute.xlu1 %5357 }
 0x407   :  { %v5446_v20 = vsel %vm307_vm0, %v5292_v12, %v5358_v2 }
 0x408   :  { %5492 = vst [vmem:[#allocation7 + $0xe8] sm:$0xff] %v5446_v20  ;;  %v5326_v49 = vpop.permute.xlu0 %5325 }
 0x409   :  { %v5438_v56 = vsel %vm307_vm0, %v5288_v32, %v5326_v49 }
 0x40a   :  { %5491 = vst [vmem:[#allocation7 + $0xe0] sm:$0xff] %v5438_v56 }
 0x40e   :  { %v5420_v36 = vpop.permute.xlu1 %5419 }
 0x40f   :  { %v5461_v25 = vsel %vm307_vm0, %v8246_v11, %v5420_v36 }
 0x410   :  { %5490 = vst [vmem:[#allocation7 + $0xd8] sm:$0xff] %v5461_v25  ;;  %v5422_v44 = vpop.permute.xlu0 %5421 }
 0x411   :  { %v5462_v15 = vsel %vm307_vm0, %v5300_v24, %v5422_v44 }
 0x412   :  { %5494 = vst [vmem:[#allocation7 + $0xf8] sm:$0xff] %v5462_v15 }
 0x413   :  { %5507 = dma.vmem_to_hbm [thread:$0]  %s5500_s1, 4096, %s5502_s28, [#allocation4], %s6123_s29, %s6123_s29, %s6124_s30  }
 0x414   :  { %6113 = dma.done.wait [#allocation4], 4096  }
 0x415   :  { %6114 = vsyncadd [#allocation4], 4294963200 }
 0x416   :  { %5512 = vsyncpa [#allocation3], 1 }
 0x417   :  { %5513 = vsyncpa [#allocation6], 1 }
 0x418   :  { %5514 = vsyncpa [#allocation4], 1 }

</bundles_post_ra>
